<compile_context>
chip_gen: v7x
topology: tpu7x:2x2x1
jax: 0.10.0
libtpu: 0.0.40
codegen_flags: <defaults>
</compile_context>

<pallas_src>
import functools

import numpy as np

import jax
import jax.numpy as jnp
from jax.experimental import pallas as pl
from jax.experimental.pallas import tpu as pltpu


# Resolved lazily on first call: does this JAX accept pipeline_mode=pl.Buffered(1)?
_SINGLE_BUFFER_WEIGHTS_OK = None


# ----------------------------------------------------------------------------
# Pallas kernel (one batch tile per grid step)
# ----------------------------------------------------------------------------
def _global_attention_kernel(m_ref, mask_ref, same_ref, cbias_ref, srep_ref,
                             wq_ref, wkvg_ref, bg_ref, wo_ref, bo_ref, out_ref,
                             *, no_heads, c_hidden, seq_len, inf, eps):
    f32 = jnp.float32
    rows, C = m_ref.shape                 # rows = batch_tile * seq_len
    S = seq_len
    BT = rows // S                        # batches in this tile
    H, ch = no_heads, c_hidden
    Hc = H * ch

    m2 = m_ref[...]                       # (rows, C), compute dtype (f32/bf16)
    mxu = m2.dtype                        # MXU operand dtype
    mask = mask_ref[...].astype(f32)      # (BT, S)
    same = same_ref[...]                  # (BT, rows) f32, 1=same batch else 0
    cbias = cbias_ref[...]                # (BT, rows) f32, -inf same / -2inf cross

    # ---- masked mean pool over each batch's sequence (one 2D matmul) -------
    mask_tiled = jnp.concatenate([mask] * BT, axis=1)          # (BT, rows)
    mask_sel = same * mask_tiled                               # block-diag mask
    pooled = jnp.dot(mask_sel.astype(mxu), m2,
                     preferred_element_type=f32)               # (BT, C)
    denom = jnp.sum(mask, axis=1, keepdims=True) + eps         # (BT, 1)
    q_pool = pooled * pl.reciprocal(denom, approx=False)       # (BT, C) f32

    # ---- projections (wq is pre-scaled by c_hidden**-0.5; k|v|g fused) -----
    q_flat = jnp.dot(q_pool.astype(mxu), wq_ref[...],
                     preferred_element_type=f32)               # (BT, Hc)
    kvg = jnp.dot(m2, wkvg_ref[...],
                  preferred_element_type=f32)                  # (rows, 2ch+Hc)
    k2 = kvg[:, :ch]                                           # (rows, ch) f32
    v2 = kvg[:, ch:2 * ch]                                     # (rows, ch) f32
    g2 = jax.nn.sigmoid(kvg[:, 2 * ch:] + bg_ref[...].astype(f32))  # (rows, Hc)

    # ---- split heads once per tile: (BT, H*ch) -> (H*BT, ch), r = h*BT + b -
    q_heads = jnp.concatenate(
        [q_flat[:, h * ch:(h + 1) * ch] for h in range(H)], axis=0)

    # ---- attention: one query per (batch, head) vs all keys of the tile ----
    # Key operand contracted on its last dim inside the MXU (no materialized
    # transpose).
    # TODO(synk): for production-size S, switch to a per-batch batched
    # dot_general to avoid the BT-fold redundant cross-batch columns.
    logits = jax.lax.dot_general(
        q_heads.astype(mxu), k2.astype(mxu), (((1,), (1,)), ((), ())),
        preferred_element_type=f32)                            # (H*BT, rows)

    # additive bias: inf*(mask-1) on same-batch columns, -2*inf cross-batch.
    bias_tile = mask_sel * inf + cbias                         # (BT, rows) f32
    logits3 = logits.reshape(H, BT, rows) + bias_tile[None]    # broadcast over H

    lmax = jnp.max(logits3, axis=-1, keepdims=True)
    p = jnp.exp(logits3 - lmax)
    p = p * pl.reciprocal(jnp.sum(p, axis=-1, keepdims=True), approx=True)

    o_full = jnp.dot(p.reshape(H * BT, rows).astype(mxu), v2.astype(mxu),
                     preferred_element_type=f32)               # (H*BT, ch)

    # ---- merge heads back into lanes: (H*BT, ch) -> (BT, H*ch) -------------
    o_flat = jnp.concatenate(
        [o_full[h * BT:(h + 1) * BT, :] for h in range(H)], axis=1)

    # broadcast each batch's attention output over its S rows via the constant
    # selector matmul (srep[n, b] = 1 iff row n belongs to batch b).
    o_rows = jnp.dot(srep_ref[...], o_flat.astype(mxu),
                     preferred_element_type=f32)               # (rows, Hc)

    gated = g2 * o_rows                                        # (rows, Hc) f32
    out = jnp.dot(gated.astype(mxu), wo_ref[...],
                  preferred_element_type=f32) + bo_ref[...].astype(f32)
    out_ref[...] = out.astype(out_ref.dtype)


# ----------------------------------------------------------------------------
# Tile-size selection helpers
# ----------------------------------------------------------------------------
def _vmem_estimate_bytes(bt, S, C, no_heads, c_hidden, itemsize):
    Hc = no_heads * c_hidden
    rows = bt * S
    kvg_w = 2 * c_hidden + Hc
    est = 0
    est += 2 * rows * C * itemsize                    # m block (double buffered)
    est += 2 * rows * C * 4                           # out block (double buffered)
    est += (C * Hc + C * kvg_w + Hc * C) * itemsize   # weights (single buffered)
    est += (Hc + C) * 4                               # biases
    est += 2 * bt * rows * 4 + rows * bt * itemsize   # constant selectors
    est += rows * kvg_w * 4                           # fused k|v|g result (f32)
    est += 2 * rows * Hc * 4                          # g2 + gated/o_rows (f32)
    est += 3 * no_heads * bt * rows * 4               # logits / p live copies
    return est


def _auto_batch_tile(B, S, C, no_heads, c_hidden, itemsize):
    try:
        vmem_bytes = int(pltpu.get_tpu_info().vmem_capacity_bytes)
    except Exception:
        vmem_bytes = 64 << 20                         # v7x-safe default
    budget = max(4 << 20, min(vmem_bytes // 4, 24 << 20))
    # Keep >= 2 balanced tiles so the parallel grid axis can shard across the
    # two TensorCores of a v7x chip; tiles are always a multiple of 8 so block
    # shapes satisfy the (8, 128) sublane constraint.
    half = -(-B // 2)
    cap = max(8, (half // 8) * 8)
    bt, cand = 8, 8
    while cand <= cap:
        if (cand * S <= 4096 and
                _vmem_estimate_bytes(cand, S, C, no_heads, c_hidden,
                                     itemsize) <= budget):
            bt = cand
        cand += 8
    return bt


# ----------------------------------------------------------------------------
# Wrapper
# ----------------------------------------------------------------------------
def global_attention(m, mask, params, *, no_heads, c_hidden, inf=1e9, eps=1e-8,
                     batch_tile=None, compute_dtype=None):
    B, S, C = m.shape
    Hc = no_heads * c_hidden
    kvg_w = 2 * c_hidden + Hc
    out_dtype = m.dtype

    wq, wk, wv, wg, bg, wo, bo = (params[k] for k in
                                  ("wq", "wk", "wv", "wg", "bg", "wo", "bo"))

    # MXU / storage dtype; elementwise + softmax math stays f32 in-kernel.
    w_dtype = compute_dtype if compute_dtype is not None else wq.dtype
    itemsize = np.dtype(w_dtype).itemsize

    # ---- adaptive batch tile (multiple of 8, VMEM- and core-count aware) ---
    if batch_tile is None:
        BT = _auto_batch_tile(B, S, C, no_heads, c_hidden, itemsize)
    else:
        BT = ((max(1, int(batch_tile)) + 7) // 8) * 8
    n_tiles = -(-B // BT)
    B_pad = n_tiles * BT
    rows = BT * S

    if B_pad != B:
        m = jnp.pad(m, ((0, B_pad - B), (0, 0), (0, 0)))
        mask = jnp.pad(mask, ((0, B_pad - B), (0, 0)))

    # ---- wrapper-side one-off preprocessing ---------------------------------
    m2 = m.reshape(B_pad * S, C).astype(w_dtype)               # fold rows
    mask_f = mask.astype(jnp.float32)
    wq_s = (wq.astype(jnp.float32) * (c_hidden ** -0.5)).astype(w_dtype)
    w_kvg = jnp.concatenate([wk, wv, wg], axis=1).astype(w_dtype)
    wo_c = wo.astype(w_dtype)
    bg_f = bg.astype(jnp.float32).reshape(1, Hc)
    bo_f = bo.astype(jnp.float32).reshape(1, C)

    # Grid-invariant block-diagonal selectors (built once, passed as constants).
    col_b = np.arange(rows) // S                               # batch of column n
    same_np = (np.arange(BT)[:, None] == col_b[None, :]).astype(np.float32)
    cbias_np = np.where(same_np > 0.0, -float(inf),
                        -2.0 * float(inf)).astype(np.float32)
    srep_np = (col_b[:, None] == np.arange(BT)[None, :]).astype(np.float32)
    same_f = jnp.asarray(same_np)
    cbias = jnp.asarray(cbias_np)
    srep = jnp.asarray(srep_np).astype(w_dtype)

    kernel = functools.partial(
        _global_attention_kernel, no_heads=no_heads, c_hidden=c_hidden,
        seq_len=S, inf=float(inf), eps=float(eps))

    flops = (2 * B_pad * rows * C                      # masked pooling matmul
             + 2 * B_pad * C * Hc                      # q projection
             + 2 * B_pad * S * C * kvg_w               # fused k|v|g projection
             + 4 * no_heads * B_pad * rows * c_hidden  # logits + p@v
             + 2 * B_pad * S * BT * Hc                 # row-broadcast matmul
             + 2 * B_pad * S * Hc * C)                 # output projection
    transcendentals = B_pad * S * Hc + no_heads * B_pad * rows
    bytes_accessed = (B_pad * S * C * (itemsize + np.dtype(out_dtype).itemsize)
                      + B_pad * S * 4
                      + (C * Hc + C * kvg_w + Hc * C) * itemsize
                      + (Hc + C) * 4
                      + 2 * BT * rows * 4 + rows * BT * itemsize)
    vmem_limit = int(min(128 << 20, max(
        32 << 20, 2 * _vmem_estimate_bytes(BT, S, C, no_heads, c_hidden,
                                           itemsize))))

    def run(single_buffer):
        def whole(shape):
            zeros = (0,) * len(shape)

            def idx(i):
                return zeros

            if single_buffer:
                # Constant-index blocks: single buffer halves their VMEM cost.
                return pl.BlockSpec(shape, idx, pipeline_mode=pl.Buffered(1))
            return pl.BlockSpec(shape, idx)

        return pl.pallas_call(
            kernel,
            out_shape=jax.ShapeDtypeStruct((B_pad * S, C), out_dtype),
            grid=(n_tiles,),
            in_specs=[
                pl.BlockSpec((rows, C), lambda i: (i, 0)),   # m (folded rows)
                pl.BlockSpec((BT, S), lambda i: (i, 0)),     # mask
                whole((BT, rows)),                           # same-batch selector
                whole((BT, rows)),                           # constant bias
                whole((rows, BT)),                           # row-broadcast sel
                whole((C, Hc)),                              # wq (pre-scaled)
                whole((C, kvg_w)),                           # fused wk|wv|wg
                whole((1, Hc)),                              # bg
                whole((Hc, C)),                              # wo
                whole((1, C)),                               # bo
            ],
            out_specs=pl.BlockSpec((rows, C), lambda i: (i, 0)),
            compiler_params=pltpu.CompilerParams(
                dimension_semantics=("parallel",),
                vmem_limit_bytes=vmem_limit),
            cost_estimate=pl.CostEstimate(
                flops=int(flops), transcendentals=int(transcendentals),
                bytes_accessed=int(bytes_accessed)),
        )(m2, mask_f, same_f, cbias, srep, wq_s, w_kvg, bg_f, wo_c, bo_f)

    global _SINGLE_BUFFER_WEIGHTS_OK
    if _SINGLE_BUFFER_WEIGHTS_OK is None:
        try:
            out2 = jax.block_until_ready(run(True))
            _SINGLE_BUFFER_WEIGHTS_OK = True
        except Exception:
            _SINGLE_BUFFER_WEIGHTS_OK = False
            out2 = run(False)
    else:
        out2 = run(_SINGLE_BUFFER_WEIGHTS_OK)

    return out2.reshape(B_pad, S, C)[:B]


# ----------------------------------------------------------------------------
# Pure-JAX reference (mirrors the PyTorch forward, use_lma=False path)
# ----------------------------------------------------------------------------
def global_attention_ref(m, mask, params, *, no_heads, c_hidden, inf=1e9, eps=1e-8):
    wq, wk, wv, wg, bg, wo, bo = (params[k] for k in
                                  ("wq", "wk", "wv", "wg", "bg", "wo", "bo"))
    q = jnp.sum(m * mask[..., None], axis=-2) / (
        jnp.sum(mask, axis=-1)[..., None] + eps)                 # (B, C)
    q = (q @ wq) * (c_hidden ** -0.5)                            # (B, H*ch)
    q = q.reshape(q.shape[:-1] + (no_heads, c_hidden))           # (B, H, ch)
    k = m @ wk                                                   # (B, S, ch)
    v = m @ wv                                                   # (B, S, ch)
    bias = (inf * (mask - 1.0))[..., None, :]                    # (B, 1, S)
    a = jnp.einsum('bhd,bsd->bhs', q, k) + bias
    a = jax.nn.softmax(a, axis=-1)
    o = jnp.einsum('bhs,bsd->bhd', a, v)                         # (B, H, ch)
    g = jax.nn.sigmoid(m @ wg + bg[0])                           # (B, S, H*ch)
    g = g.reshape(g.shape[:-1] + (no_heads, c_hidden))           # (B, S, H, ch)
    o = o[:, None, :, :] * g                                     # (B, S, H, ch)
    o = o.reshape(o.shape[:-2] + (no_heads * c_hidden,))
    return o @ wo + bo[0]


# ----------------------------------------------------------------------------
# Main
# ----------------------------------------------------------------------------
if __name__ == "__main__":
    B, S = 32, 8
    c_in, c_hidden, no_heads = 32, 16, 4
    inf, eps = 1e9, 1e-8
    Hc = c_hidden * no_heads

    key = jax.random.PRNGKey(0)
    keys = jax.random.split(key, 7)

    # Deterministic synthetic parameters.  The module's own init would zero
    # linear_o / linear_g weights (trivially constant output); random values
    # exercise the full kernel path instead.
    def init(k, shape, fan_in):
        return jax.random.normal(k, shape, jnp.float32) / jnp.sqrt(fan_in)

    params = {
        "wq": init(keys[0], (c_in, Hc), c_in),
        "wk": init(keys[1], (c_in, c_hidden), c_in),
        "wv": init(keys[2], (c_in, c_hidden), c_in),
        "wg": init(keys[3], (c_in, Hc), c_in),
        "bg": jnp.ones((1, Hc), jnp.float32),        # gating bias = 1 (module)
        "wo": init(keys[4], (Hc, c_in), Hc),
        "bo": jnp.zeros((1, c_in), jnp.float32),     # final bias = 0 (module)
    }

    m = jax.random.normal(keys[5], (B, S, c_in), jnp.float32)
    mask = (jax.random.uniform(keys[6], (B, S)) < 0.7).astype(jnp.float32)

    ref = global_attention_ref(m, mask, params, no_heads=no_heads,
                               c_hidden=c_hidden, inf=inf, eps=eps)

    # float32 run (strict correctness check); batch_tile chosen automatically
    # (B=32 -> BT=16 -> 2 parallel grid tiles).
    out = global_attention(m, mask, params, no_heads=no_heads,
                           c_hidden=c_hidden, inf=inf, eps=eps)
    out = jax.block_until_ready(out)
    assert out.shape == (B, S, c_in)
    err = float(jnp.max(jnp.abs(out - ref)))
    assert err < 1e-2, f"f32 mismatch vs JAX reference: {err}"

    # bf16 MXU operands with f32 accumulation + f32 softmax/sigmoid (smoke).
    out_bf16 = global_attention(m, mask, params, no_heads=no_heads,
                                c_hidden=c_hidden, inf=inf, eps=eps,
                                compute_dtype=jnp.bfloat16)
    out_bf16 = jax.block_until_ready(out_bf16)
    err_bf16 = float(jnp.max(jnp.abs(out_bf16 - ref)))
    assert err_bf16 < 0.2, f"bf16 mismatch vs JAX reference: {err_bf16}"

    print("KERNEL_OK")
</pallas_src>

<mosaic_0001>
module attributes {stable_mosaic.version = 11 : i64} {
  func.func @_global_attention_kernel(%arg0: i32, %arg1: memref<128x32xf32, #tpu.memory_space<vmem>>, %arg2: memref<16x8xf32, #tpu.memory_space<vmem>>, %arg3: memref<16x128xf32, #tpu.memory_space<vmem>>, %arg4: memref<16x128xf32, #tpu.memory_space<vmem>>, %arg5: memref<128x16xf32, #tpu.memory_space<vmem>>, %arg6: memref<32x64xf32, #tpu.memory_space<vmem>>, %arg7: memref<32x96xf32, #tpu.memory_space<vmem>>, %arg8: memref<1x64xf32, #tpu.memory_space<vmem>>, %arg9: memref<64x32xf32, #tpu.memory_space<vmem>>, %arg10: memref<1x32xf32, #tpu.memory_space<vmem>>, %arg11: memref<128x32xf32, #tpu.memory_space<vmem>>) attributes {dimension_semantics = [#tpu.dimension_semantics<parallel>], iteration_bounds = array<i64: 2>, scalar_prefetch = 0 : i64, scratch_operands = 0 : i64, tpu.core_type = #tpu.core_type<tc>, window_params = [{transform_indices = @transform_0, window_bounds = array<i64: 128, 32>}, {transform_indices = @transform_1, window_bounds = array<i64: 16, 8>}, {pipeline_mode = #tpu.pipeline_mode<synchronous>, transform_indices = @transform_2, window_bounds = array<i64: 16, 128>}, {pipeline_mode = #tpu.pipeline_mode<synchronous>, transform_indices = @transform_3, window_bounds = array<i64: 16, 128>}, {pipeline_mode = #tpu.pipeline_mode<synchronous>, transform_indices = @transform_4, window_bounds = array<i64: 128, 16>}, {pipeline_mode = #tpu.pipeline_mode<synchronous>, transform_indices = @transform_5, window_bounds = array<i64: 32, 64>}, {pipeline_mode = #tpu.pipeline_mode<synchronous>, transform_indices = @transform_6, window_bounds = array<i64: 32, 96>}, {pipeline_mode = #tpu.pipeline_mode<synchronous>, transform_indices = @transform_7, window_bounds = array<i64: 1, 64>}, {pipeline_mode = #tpu.pipeline_mode<synchronous>, transform_indices = @transform_8, window_bounds = array<i64: 64, 32>}, {pipeline_mode = #tpu.pipeline_mode<synchronous>, transform_indices = @transform_9, window_bounds = array<i64: 1, 32>}, {transform_indices = @transform_10, window_bounds = array<i64: 128, 32>}]} {
    %c0 = arith.constant 0 : index
    %c0_0 = arith.constant 0 : index
    %0 = vector.load %arg1[%c0, %c0_0] : memref<128x32xf32, #tpu.memory_space<vmem>>, vector<128x32xf32>
    %c0_1 = arith.constant 0 : index
    %c0_2 = arith.constant 0 : index
    %1 = vector.load %arg2[%c0_1, %c0_2] : memref<16x8xf32, #tpu.memory_space<vmem>>, vector<16x8xf32>
    %c0_3 = arith.constant 0 : index
    %c0_4 = arith.constant 0 : index
    %2 = vector.load %arg3[%c0_3, %c0_4] : memref<16x128xf32, #tpu.memory_space<vmem>>, vector<16x128xf32>
    %c0_5 = arith.constant 0 : index
    %c0_6 = arith.constant 0 : index
    %3 = vector.load %arg4[%c0_5, %c0_6] : memref<16x128xf32, #tpu.memory_space<vmem>>, vector<16x128xf32>
    %4 = tpu.concatenate %1, %1, %1, %1, %1, %1, %1, %1, %1, %1, %1, %1, %1, %1, %1, %1 in 1 : vector<16x8xf32>, vector<16x8xf32>, vector<16x8xf32>, vector<16x8xf32>, vector<16x8xf32>, vector<16x8xf32>, vector<16x8xf32>, vector<16x8xf32>, vector<16x8xf32>, vector<16x8xf32>, vector<16x8xf32>, vector<16x8xf32>, vector<16x8xf32>, vector<16x8xf32>, vector<16x8xf32>, vector<16x8xf32> -> vector<16x128xf32>
    %5 = arith.mulf %2, %4 : vector<16x128xf32>
    %cst = arith.constant dense<0.000000e+00> : vector<16x32xf32>
    %6 = tpu.matmul %5, %0, %cst {dimension_numbers = #tpu.dot_dimension_numbers<[1], [0], [0], [1], [0, 0, 1, 1], [], []>} : vector<16x128xf32>, vector<128x32xf32>, vector<16x32xf32> -> vector<16x32xf32>
    %cst_7 = arith.constant dense<0.000000e+00> : vector<16xf32>
    %7 = vector.multi_reduction <add>, %1, %cst_7 [1] : vector<16x8xf32> to vector<16xf32>
    %8 = vector.shape_cast %7 : vector<16xf32> to vector<16x1xf32>
    %cst_8 = arith.constant 9.99999993E-9 : f32
    %9 = vector.broadcast %cst_8 : f32 to vector<16x1xf32>
    %10 = arith.addf %8, %9 : vector<16x1xf32>
    %11 = tpu.reciprocal %10 : vector<16x1xf32> -> vector<16x1xf32>
    %12 = vector.broadcast %11 : vector<16x1xf32> to vector<16x32xf32>
    %13 = arith.mulf %6, %12 : vector<16x32xf32>
    %c0_9 = arith.constant 0 : index
    %c0_10 = arith.constant 0 : index
    %14 = vector.load %arg6[%c0_9, %c0_10] : memref<32x64xf32, #tpu.memory_space<vmem>>, vector<32x64xf32>
    %cst_11 = arith.constant dense<0.000000e+00> : vector<16x64xf32>
    %15 = tpu.matmul %13, %14, %cst_11 {dimension_numbers = #tpu.dot_dimension_numbers<[1], [0], [0], [1], [0, 0, 1, 1], [], []>} : vector<16x32xf32>, vector<32x64xf32>, vector<16x64xf32> -> vector<16x64xf32>
    %c0_12 = arith.constant 0 : index
    %c0_13 = arith.constant 0 : index
    %16 = vector.load %arg7[%c0_12, %c0_13] : memref<32x96xf32, #tpu.memory_space<vmem>>, vector<32x96xf32>
    %cst_14 = arith.constant dense<0.000000e+00> : vector<128x96xf32>
    %17 = tpu.matmul %0, %16, %cst_14 {dimension_numbers = #tpu.dot_dimension_numbers<[1], [0], [0], [1], [0, 0, 1, 1], [], []>} : vector<128x32xf32>, vector<32x96xf32>, vector<128x96xf32> -> vector<128x96xf32>
    %18 = vector.extract_strided_slice %17 {offsets = [0, 0], sizes = [128, 16], strides = [1, 1]} : vector<128x96xf32> to vector<128x16xf32>
    %19 = vector.extract_strided_slice %17 {offsets = [0, 16], sizes = [128, 16], strides = [1, 1]} : vector<128x96xf32> to vector<128x16xf32>
    %20 = vector.extract_strided_slice %17 {offsets = [0, 32], sizes = [128, 64], strides = [1, 1]} : vector<128x96xf32> to vector<128x64xf32>
    %c0_15 = arith.constant 0 : index
    %c0_16 = arith.constant 0 : index
    %21 = vector.load %arg8[%c0_15, %c0_16] : memref<1x64xf32, #tpu.memory_space<vmem>>, vector<1x64xf32>
    %22 = vector.broadcast %21 : vector<1x64xf32> to vector<128x64xf32>
    %23 = arith.addf %20, %22 : vector<128x64xf32>
    %24 = arith.negf %23 : vector<128x64xf32>
    %25 = math.exp %24 : vector<128x64xf32>
    %cst_17 = arith.constant 1.000000e+00 : f32
    %26 = vector.broadcast %cst_17 : f32 to vector<128x64xf32>
    %27 = arith.addf %26, %25 : vector<128x64xf32>
    %28 = arith.divf %26, %27 : vector<128x64xf32>
    %29 = vector.extract_strided_slice %15 {offsets = [0, 0], sizes = [16, 16], strides = [1, 1]} : vector<16x64xf32> to vector<16x16xf32>
    %30 = vector.extract_strided_slice %15 {offsets = [0, 16], sizes = [16, 16], strides = [1, 1]} : vector<16x64xf32> to vector<16x16xf32>
    %31 = vector.extract_strided_slice %15 {offsets = [0, 32], sizes = [16, 16], strides = [1, 1]} : vector<16x64xf32> to vector<16x16xf32>
    %32 = vector.extract_strided_slice %15 {offsets = [0, 48], sizes = [16, 16], strides = [1, 1]} : vector<16x64xf32> to vector<16x16xf32>
    %33 = tpu.concatenate %29, %30, %31, %32 in 0 : vector<16x16xf32>, vector<16x16xf32>, vector<16x16xf32>, vector<16x16xf32> -> vector<64x16xf32>
    %cst_18 = arith.constant dense<0.000000e+00> : vector<64x128xf32>
    %34 = tpu.matmul %33, %18, %cst_18 {dimension_numbers = #tpu.dot_dimension_numbers<[1], [1], [0], [0], [0, 0, 1, 0], [], []>} : vector<64x16xf32>, vector<128x16xf32>, vector<64x128xf32> -> vector<64x128xf32>
    %cst_19 = arith.constant 1.000000e+09 : f32
    %35 = vector.broadcast %cst_19 : f32 to vector<16x128xf32>
    %36 = arith.mulf %5, %35 : vector<16x128xf32>
    %37 = arith.addf %36, %3 : vector<16x128xf32>
    %38 = vector.shape_cast %34 : vector<64x128xf32> to vector<4x16x128xf32>
    %39 = vector.shape_cast %37 : vector<16x128xf32> to vector<1x16x128xf32>
    %40 = vector.broadcast %39 : vector<1x16x128xf32> to vector<4x16x128xf32>
    %41 = arith.addf %38, %40 : vector<4x16x128xf32>
    %cst_20 = arith.constant dense<0xFF800000> : vector<4x16xf32>
    %42 = vector.multi_reduction <maximumf>, %41, %cst_20 [2] : vector<4x16x128xf32> to vector<4x16xf32>
    %43 = vector.shape_cast %42 : vector<4x16xf32> to vector<4x16x1xf32>
    %44 = vector.broadcast %43 : vector<4x16x1xf32> to vector<4x16x128xf32>
    %45 = arith.subf %41, %44 : vector<4x16x128xf32>
    %46 = math.exp %45 : vector<4x16x128xf32>
    %cst_21 = arith.constant dense<0.000000e+00> : vector<4x16xf32>
    %47 = vector.multi_reduction <add>, %46, %cst_21 [2] : vector<4x16x128xf32> to vector<4x16xf32>
    %48 = vector.shape_cast %47 : vector<4x16xf32> to vector<4x16x1xf32>
    %49 = tpu.reciprocal %48 {approx = true} : vector<4x16x1xf32> -> vector<4x16x1xf32>
    %50 = vector.broadcast %49 : vector<4x16x1xf32> to vector<4x16x128xf32>
    %51 = arith.mulf %46, %50 : vector<4x16x128xf32>
    %52 = vector.shape_cast %51 : vector<4x16x128xf32> to vector<64x128xf32>
    %cst_22 = arith.constant dense<0.000000e+00> : vector<64x16xf32>
    %53 = tpu.matmul %52, %19, %cst_22 {dimension_numbers = #tpu.dot_dimension_numbers<[1], [0], [0], [1], [0, 0, 1, 1], [], []>} : vector<64x128xf32>, vector<128x16xf32>, vector<64x16xf32> -> vector<64x16xf32>
    %54 = vector.extract_strided_slice %53 {offsets = [0, 0], sizes = [16, 16], strides = [1, 1]} : vector<64x16xf32> to vector<16x16xf32>
    %55 = vector.extract_strided_slice %53 {offsets = [16, 0], sizes = [16, 16], strides = [1, 1]} : vector<64x16xf32> to vector<16x16xf32>
    %56 = vector.extract_strided_slice %53 {offsets = [32, 0], sizes = [16, 16], strides = [1, 1]} : vector<64x16xf32> to vector<16x16xf32>
    %57 = vector.extract_strided_slice %53 {offsets = [48, 0], sizes = [16, 16], strides = [1, 1]} : vector<64x16xf32> to vector<16x16xf32>
    %58 = tpu.concatenate %54, %55, %56, %57 in 1 : vector<16x16xf32>, vector<16x16xf32>, vector<16x16xf32>, vector<16x16xf32> -> vector<16x64xf32>
    %c0_23 = arith.constant 0 : index
    %c0_24 = arith.constant 0 : index
    %59 = vector.load %arg5[%c0_23, %c0_24] : memref<128x16xf32, #tpu.memory_space<vmem>>, vector<128x16xf32>
    %cst_25 = arith.constant dense<0.000000e+00> : vector<128x64xf32>
    %60 = tpu.matmul %59, %58, %cst_25 {dimension_numbers = #tpu.dot_dimension_numbers<[1], [0], [0], [1], [0, 0, 1, 1], [], []>} : vector<128x16xf32>, vector<16x64xf32>, vector<128x64xf32> -> vector<128x64xf32>
    %61 = arith.mulf %28, %60 : vector<128x64xf32>
    %c0_26 = arith.constant 0 : index
    %c0_27 = arith.constant 0 : index
    %62 = vector.load %arg9[%c0_26, %c0_27] : memref<64x32xf32, #tpu.memory_space<vmem>>, vector<64x32xf32>
    %cst_28 = arith.constant dense<0.000000e+00> : vector<128x32xf32>
    %63 = tpu.matmul %61, %62, %cst_28 {dimension_numbers = #tpu.dot_dimension_numbers<[1], [0], [0], [1], [0, 0, 1, 1], [], []>} : vector<128x64xf32>, vector<64x32xf32>, vector<128x32xf32> -> vector<128x32xf32>
    %c0_29 = arith.constant 0 : index
    %c0_30 = arith.constant 0 : index
    %64 = vector.load %arg10[%c0_29, %c0_30] : memref<1x32xf32, #tpu.memory_space<vmem>>, vector<1x32xf32>
    %65 = vector.broadcast %64 : vector<1x32xf32> to vector<128x32xf32>
    %66 = arith.addf %63, %65 : vector<128x32xf32>
    %c0_31 = arith.constant 0 : index
    %c0_32 = arith.constant 0 : index
    %67 = vector.load %arg11[%c0_31, %c0_32] : memref<128x32xf32, #tpu.memory_space<vmem>>, vector<128x32xf32>
    tpu.vector_store %arg11[%c0_31, %c0_32], %66 {strides = array<i32>} : memref<128x32xf32, #tpu.memory_space<vmem>>, vector<128x32xf32>,
    return
  }
  func.func @transform_0(%arg0: i32) -> (i32, i32) {
    %c0_i32 = arith.constant 0 : i32
    %c0_i32_0 = arith.constant 0 : i32
    return %arg0, %c0_i32 : i32, i32
  }
  func.func @transform_1(%arg0: i32) -> (i32, i32) {
    %c0_i32 = arith.constant 0 : i32
    %c0_i32_0 = arith.constant 0 : i32
    return %arg0, %c0_i32 : i32, i32
  }
  func.func @transform_2(%arg0: i32) -> (i32, i32) {
    %c0_i32 = arith.constant 0 : i32
    %c0_i32_0 = arith.constant 0 : i32
    %c0_i32_1 = arith.constant 0 : i32
    return %c0_i32, %c0_i32_0 : i32, i32
  }
  func.func @transform_3(%arg0: i32) -> (i32, i32) {
    %c0_i32 = arith.constant 0 : i32
    %c0_i32_0 = arith.constant 0 : i32
    %c0_i32_1 = arith.constant 0 : i32
    return %c0_i32, %c0_i32_0 : i32, i32
  }
  func.func @transform_4(%arg0: i32) -> (i32, i32) {
    %c0_i32 = arith.constant 0 : i32
    %c0_i32_0 = arith.constant 0 : i32
    %c0_i32_1 = arith.constant 0 : i32
    return %c0_i32, %c0_i32_0 : i32, i32
  }
  func.func @transform_5(%arg0: i32) -> (i32, i32) {
    %c0_i32 = arith.constant 0 : i32
    %c0_i32_0 = arith.constant 0 : i32
    %c0_i32_1 = arith.constant 0 : i32
    return %c0_i32, %c0_i32_0 : i32, i32
  }
  func.func @transform_6(%arg0: i32) -> (i32, i32) {
    %c0_i32 = arith.constant 0 : i32
    %c0_i32_0 = arith.constant 0 : i32
    %c0_i32_1 = arith.constant 0 : i32
    return %c0_i32, %c0_i32_0 : i32, i32
  }
  func.func @transform_7(%arg0: i32) -> (i32, i32) {
    %c0_i32 = arith.constant 0 : i32
    %c0_i32_0 = arith.constant 0 : i32
    %c0_i32_1 = arith.constant 0 : i32
    return %c0_i32, %c0_i32_0 : i32, i32
  }
  func.func @transform_8(%arg0: i32) -> (i32, i32) {
    %c0_i32 = arith.constant 0 : i32
    %c0_i32_0 = arith.constant 0 : i32
    %c0_i32_1 = arith.constant 0 : i32
    return %c0_i32, %c0_i32_0 : i32, i32
  }
  func.func @transform_9(%arg0: i32) -> (i32, i32) {
    %c0_i32 = arith.constant 0 : i32
    %c0_i32_0 = arith.constant 0 : i32
    %c0_i32_1 = arith.constant 0 : i32
    return %c0_i32, %c0_i32_0 : i32, i32
  }
  func.func @transform_10(%arg0: i32) -> (i32, i32) {
    %c0_i32 = arith.constant 0 : i32
    %c0_i32_0 = arith.constant 0 : i32
    return %arg0, %c0_i32 : i32, i32
  }
}

module attributes {stable_mosaic.version = 11 : i64} {
  func.func @_global_attention_kernel(%arg0: i32, %arg1: memref<128x32xf32, #tpu.memory_space<vmem>>, %arg2: memref<16x8xf32, #tpu.memory_space<vmem>>, %arg3: memref<16x128xf32, #tpu.memory_space<vmem>>, %arg4: memref<16x128xf32, #tpu.memory_space<vmem>>, %arg5: memref<128x16xf32, #tpu.memory_space<vmem>>, %arg6: memref<32x64xf32, #tpu.memory_space<vmem>>, %arg7: memref<32x96xf32, #tpu.memory_space<vmem>>, %arg8: memref<1x64xf32, #tpu.memory_space<vmem>>, %arg9: memref<64x32xf32, #tpu.memory_space<vmem>>, %arg10: memref<1x32xf32, #tpu.memory_space<vmem>>, %arg11: memref<128x32xf32, #tpu.memory_space<vmem>>) attributes {dimension_semantics = [#tpu.dimension_semantics<parallel>], iteration_bounds = array<i64: 2>, scalar_prefetch = 0 : i64, scratch_operands = 0 : i64, tpu.core_type = #tpu.core_type<tc>, window_params = [{transform_indices = @transform_0, window_bounds = array<i64: 128, 32>}, {transform_indices = @transform_1, window_bounds = array<i64: 16, 8>}, {pipeline_mode = #tpu.pipeline_mode<synchronous>, transform_indices = @transform_2, window_bounds = array<i64: 16, 128>}, {pipeline_mode = #tpu.pipeline_mode<synchronous>, transform_indices = @transform_3, window_bounds = array<i64: 16, 128>}, {pipeline_mode = #tpu.pipeline_mode<synchronous>, transform_indices = @transform_4, window_bounds = array<i64: 128, 16>}, {pipeline_mode = #tpu.pipeline_mode<synchronous>, transform_indices = @transform_5, window_bounds = array<i64: 32, 64>}, {pipeline_mode = #tpu.pipeline_mode<synchronous>, transform_indices = @transform_6, window_bounds = array<i64: 32, 96>}, {pipeline_mode = #tpu.pipeline_mode<synchronous>, transform_indices = @transform_7, window_bounds = array<i64: 1, 64>}, {pipeline_mode = #tpu.pipeline_mode<synchronous>, transform_indices = @transform_8, window_bounds = array<i64: 64, 32>}, {pipeline_mode = #tpu.pipeline_mode<synchronous>, transform_indices = @transform_9, window_bounds = array<i64: 1, 32>}, {transform_indices = @transform_10, window_bounds = array<i64: 128, 32>}]} {
    %c0 = arith.constant 0 : index
    %c0_0 = arith.constant 0 : index
    %0 = vector.load %arg1[%c0, %c0_0] : memref<128x32xf32, #tpu.memory_space<vmem>>, vector<128x32xf32>
    %c0_1 = arith.constant 0 : index
    %c0_2 = arith.constant 0 : index
    %1 = vector.load %arg2[%c0_1, %c0_2] : memref<16x8xf32, #tpu.memory_space<vmem>>, vector<16x8xf32>
    %c0_3 = arith.constant 0 : index
    %c0_4 = arith.constant 0 : index
    %2 = vector.load %arg3[%c0_3, %c0_4] : memref<16x128xf32, #tpu.memory_space<vmem>>, vector<16x128xf32>
    %c0_5 = arith.constant 0 : index
    %c0_6 = arith.constant 0 : index
    %3 = vector.load %arg4[%c0_5, %c0_6] : memref<16x128xf32, #tpu.memory_space<vmem>>, vector<16x128xf32>
    %4 = tpu.concatenate %1, %1, %1, %1, %1, %1, %1, %1, %1, %1, %1, %1, %1, %1, %1, %1 in 1 : vector<16x8xf32>, vector<16x8xf32>, vector<16x8xf32>, vector<16x8xf32>, vector<16x8xf32>, vector<16x8xf32>, vector<16x8xf32>, vector<16x8xf32>, vector<16x8xf32>, vector<16x8xf32>, vector<16x8xf32>, vector<16x8xf32>, vector<16x8xf32>, vector<16x8xf32>, vector<16x8xf32>, vector<16x8xf32> -> vector<16x128xf32>
    %5 = arith.mulf %2, %4 : vector<16x128xf32>
    %cst = arith.constant dense<0.000000e+00> : vector<16x32xf32>
    %6 = tpu.matmul %5, %0, %cst {dimension_numbers = #tpu.dot_dimension_numbers<[1], [0], [0], [1], [0, 0, 1, 1], [], []>} : vector<16x128xf32>, vector<128x32xf32>, vector<16x32xf32> -> vector<16x32xf32>
    %cst_7 = arith.constant dense<0.000000e+00> : vector<16xf32>
    %7 = vector.multi_reduction <add>, %1, %cst_7 [1] : vector<16x8xf32> to vector<16xf32>
    %8 = vector.shape_cast %7 : vector<16xf32> to vector<16x1xf32>
    %cst_8 = arith.constant 9.99999993E-9 : f32
    %9 = vector.broadcast %cst_8 : f32 to vector<16x1xf32>
    %10 = arith.addf %8, %9 : vector<16x1xf32>
    %11 = tpu.reciprocal %10 : vector<16x1xf32> -> vector<16x1xf32>
    %12 = vector.broadcast %11 : vector<16x1xf32> to vector<16x32xf32>
    %13 = arith.mulf %6, %12 : vector<16x32xf32>
    %c0_9 = arith.constant 0 : index
    %c0_10 = arith.constant 0 : index
    %14 = vector.load %arg6[%c0_9, %c0_10] : memref<32x64xf32, #tpu.memory_space<vmem>>, vector<32x64xf32>
    %cst_11 = arith.constant dense<0.000000e+00> : vector<16x64xf32>
    %15 = tpu.matmul %13, %14, %cst_11 {dimension_numbers = #tpu.dot_dimension_numbers<[1], [0], [0], [1], [0, 0, 1, 1], [], []>} : vector<16x32xf32>, vector<32x64xf32>, vector<16x64xf32> -> vector<16x64xf32>
    %c0_12 = arith.constant 0 : index
    %c0_13 = arith.constant 0 : index
    %16 = vector.load %arg7[%c0_12, %c0_13] : memref<32x96xf32, #tpu.memory_space<vmem>>, vector<32x96xf32>
    %cst_14 = arith.constant dense<0.000000e+00> : vector<128x96xf32>
    %17 = tpu.matmul %0, %16, %cst_14 {dimension_numbers = #tpu.dot_dimension_numbers<[1], [0], [0], [1], [0, 0, 1, 1], [], []>} : vector<128x32xf32>, vector<32x96xf32>, vector<128x96xf32> -> vector<128x96xf32>
    %18 = vector.extract_strided_slice %17 {offsets = [0, 0], sizes = [128, 16], strides = [1, 1]} : vector<128x96xf32> to vector<128x16xf32>
    %19 = vector.extract_strided_slice %17 {offsets = [0, 16], sizes = [128, 16], strides = [1, 1]} : vector<128x96xf32> to vector<128x16xf32>
    %20 = vector.extract_strided_slice %17 {offsets = [0, 32], sizes = [128, 64], strides = [1, 1]} : vector<128x96xf32> to vector<128x64xf32>
    %c0_15 = arith.constant 0 : index
    %c0_16 = arith.constant 0 : index
    %21 = vector.load %arg8[%c0_15, %c0_16] : memref<1x64xf32, #tpu.memory_space<vmem>>, vector<1x64xf32>
    %22 = vector.broadcast %21 : vector<1x64xf32> to vector<128x64xf32>
    %23 = arith.addf %20, %22 : vector<128x64xf32>
    %24 = arith.negf %23 : vector<128x64xf32>
    %25 = math.exp %24 : vector<128x64xf32>
    %cst_17 = arith.constant 1.000000e+00 : f32
    %26 = vector.broadcast %cst_17 : f32 to vector<128x64xf32>
    %27 = arith.addf %26, %25 : vector<128x64xf32>
    %28 = arith.divf %26, %27 : vector<128x64xf32>
    %29 = vector.extract_strided_slice %15 {offsets = [0, 0], sizes = [16, 16], strides = [1, 1]} : vector<16x64xf32> to vector<16x16xf32>
    %30 = vector.extract_strided_slice %15 {offsets = [0, 16], sizes = [16, 16], strides = [1, 1]} : vector<16x64xf32> to vector<16x16xf32>
    %31 = vector.extract_strided_slice %15 {offsets = [0, 32], sizes = [16, 16], strides = [1, 1]} : vector<16x64xf32> to vector<16x16xf32>
    %32 = vector.extract_strided_slice %15 {offsets = [0, 48], sizes = [16, 16], strides = [1, 1]} : vector<16x64xf32> to vector<16x16xf32>
    %33 = tpu.concatenate %29, %30, %31, %32 in 0 : vector<16x16xf32>, vector<16x16xf32>, vector<16x16xf32>, vector<16x16xf32> -> vector<64x16xf32>
    %cst_18 = arith.constant dense<0.000000e+00> : vector<64x128xf32>
    %34 = tpu.matmul %33, %18, %cst_18 {dimension_numbers = #tpu.dot_dimension_numbers<[1], [1], [0], [0], [0, 0, 1, 0], [], []>} : vector<64x16xf32>, vector<128x16xf32>, vector<64x128xf32> -> vector<64x128xf32>
    %cst_19 = arith.constant 1.000000e+09 : f32
    %35 = vector.broadcast %cst_19 : f32 to vector<16x128xf32>
    %36 = arith.mulf %5, %35 : vector<16x128xf32>
    %37 = arith.addf %36, %3 : vector<16x128xf32>
    %38 = vector.shape_cast %34 : vector<64x128xf32> to vector<4x16x128xf32>
    %39 = vector.shape_cast %37 : vector<16x128xf32> to vector<1x16x128xf32>
    %40 = vector.broadcast %39 : vector<1x16x128xf32> to vector<4x16x128xf32>
    %41 = arith.addf %38, %40 : vector<4x16x128xf32>
    %cst_20 = arith.constant dense<0xFF800000> : vector<4x16xf32>
    %42 = vector.multi_reduction <maximumf>, %41, %cst_20 [2] : vector<4x16x128xf32> to vector<4x16xf32>
    %43 = vector.shape_cast %42 : vector<4x16xf32> to vector<4x16x1xf32>
    %44 = vector.broadcast %43 : vector<4x16x1xf32> to vector<4x16x128xf32>
    %45 = arith.subf %41, %44 : vector<4x16x128xf32>
    %46 = math.exp %45 : vector<4x16x128xf32>
    %cst_21 = arith.constant dense<0.000000e+00> : vector<4x16xf32>
    %47 = vector.multi_reduction <add>, %46, %cst_21 [2] : vector<4x16x128xf32> to vector<4x16xf32>
    %48 = vector.shape_cast %47 : vector<4x16xf32> to vector<4x16x1xf32>
    %49 = tpu.reciprocal %48 {approx = true} : vector<4x16x1xf32> -> vector<4x16x1xf32>
    %50 = vector.broadcast %49 : vector<4x16x1xf32> to vector<4x16x128xf32>
    %51 = arith.mulf %46, %50 : vector<4x16x128xf32>
    %52 = vector.shape_cast %51 : vector<4x16x128xf32> to vector<64x128xf32>
    %cst_22 = arith.constant dense<0.000000e+00> : vector<64x16xf32>
    %53 = tpu.matmul %52, %19, %cst_22 {dimension_numbers = #tpu.dot_dimension_numbers<[1], [0], [0], [1], [0, 0, 1, 1], [], []>} : vector<64x128xf32>, vector<128x16xf32>, vector<64x16xf32> -> vector<64x16xf32>
    %54 = vector.extract_strided_slice %53 {offsets = [0, 0], sizes = [16, 16], strides = [1, 1]} : vector<64x16xf32> to vector<16x16xf32>
    %55 = vector.extract_strided_slice %53 {offsets = [16, 0], sizes = [16, 16], strides = [1, 1]} : vector<64x16xf32> to vector<16x16xf32>
    %56 = vector.extract_strided_slice %53 {offsets = [32, 0], sizes = [16, 16], strides = [1, 1]} : vector<64x16xf32> to vector<16x16xf32>
    %57 = vector.extract_strided_slice %53 {offsets = [48, 0], sizes = [16, 16], strides = [1, 1]} : vector<64x16xf32> to vector<16x16xf32>
    %58 = tpu.concatenate %54, %55, %56, %57 in 1 : vector<16x16xf32>, vector<16x16xf32>, vector<16x16xf32>, vector<16x16xf32> -> vector<16x64xf32>
    %c0_23 = arith.constant 0 : index
    %c0_24 = arith.constant 0 : index
    %59 = vector.load %arg5[%c0_23, %c0_24] : memref<128x16xf32, #tpu.memory_space<vmem>>, vector<128x16xf32>
    %cst_25 = arith.constant dense<0.000000e+00> : vector<128x64xf32>
    %60 = tpu.matmul %59, %58, %cst_25 {dimension_numbers = #tpu.dot_dimension_numbers<[1], [0], [0], [1], [0, 0, 1, 1], [], []>} : vector<128x16xf32>, vector<16x64xf32>, vector<128x64xf32> -> vector<128x64xf32>
    %61 = arith.mulf %28, %60 : vector<128x64xf32>
    %c0_26 = arith.constant 0 : index
    %c0_27 = arith.constant 0 : index
    %62 = vector.load %arg9[%c0_26, %c0_27] : memref<64x32xf32, #tpu.memory_space<vmem>>, vector<64x32xf32>
    %cst_28 = arith.constant dense<0.000000e+00> : vector<128x32xf32>
    %63 = tpu.matmul %61, %62, %cst_28 {dimension_numbers = #tpu.dot_dimension_numbers<[1], [0], [0], [1], [0, 0, 1, 1], [], []>} : vector<128x64xf32>, vector<64x32xf32>, vector<128x32xf32> -> vector<128x32xf32>
    %c0_29 = arith.constant 0 : index
    %c0_30 = arith.constant 0 : index
    %64 = vector.load %arg10[%c0_29, %c0_30] : memref<1x32xf32, #tpu.memory_space<vmem>>, vector<1x32xf32>
    %65 = vector.broadcast %64 : vector<1x32xf32> to vector<128x32xf32>
    %66 = arith.addf %63, %65 : vector<128x32xf32>
    %c0_31 = arith.constant 0 : index
    %c0_32 = arith.constant 0 : index
    %67 = vector.load %arg11[%c0_31, %c0_32] : memref<128x32xf32, #tpu.memory_space<vmem>>, vector<128x32xf32>
    tpu.vector_store %arg11[%c0_31, %c0_32], %66 {strides = array<i32>} : memref<128x32xf32, #tpu.memory_space<vmem>>, vector<128x32xf32>,
    return
  }
  func.func @transform_0(%arg0: i32) -> (i32, i32) {
    %c0_i32 = arith.constant 0 : i32
    %c0_i32_0 = arith.constant 0 : i32
    return %arg0, %c0_i32 : i32, i32
  }
  func.func @transform_1(%arg0: i32) -> (i32, i32) {
    %c0_i32 = arith.constant 0 : i32
    %c0_i32_0 = arith.constant 0 : i32
    return %arg0, %c0_i32 : i32, i32
  }
  func.func @transform_2(%arg0: i32) -> (i32, i32) {
    %c0_i32 = arith.constant 0 : i32
    %c0_i32_0 = arith.constant 0 : i32
    %c0_i32_1 = arith.constant 0 : i32
    return %c0_i32, %c0_i32_0 : i32, i32
  }
  func.func @transform_3(%arg0: i32) -> (i32, i32) {
    %c0_i32 = arith.constant 0 : i32
    %c0_i32_0 = arith.constant 0 : i32
    %c0_i32_1 = arith.constant 0 : i32
    return %c0_i32, %c0_i32_0 : i32, i32
  }
  func.func @transform_4(%arg0: i32) -> (i32, i32) {
    %c0_i32 = arith.constant 0 : i32
    %c0_i32_0 = arith.constant 0 : i32
    %c0_i32_1 = arith.constant 0 : i32
    return %c0_i32, %c0_i32_0 : i32, i32
  }
  func.func @transform_5(%arg0: i32) -> (i32, i32) {
    %c0_i32 = arith.constant 0 : i32
    %c0_i32_0 = arith.constant 0 : i32
    %c0_i32_1 = arith.constant 0 : i32
    return %c0_i32, %c0_i32_0 : i32, i32
  }
  func.func @transform_6(%arg0: i32) -> (i32, i32) {
    %c0_i32 = arith.constant 0 : i32
    %c0_i32_0 = arith.constant 0 : i32
    %c0_i32_1 = arith.constant 0 : i32
    return %c0_i32, %c0_i32_0 : i32, i32
  }
  func.func @transform_7(%arg0: i32) -> (i32, i32) {
    %c0_i32 = arith.constant 0 : i32
    %c0_i32_0 = arith.constant 0 : i32
    %c0_i32_1 = arith.constant 0 : i32
    return %c0_i32, %c0_i32_0 : i32, i32
  }
  func.func @transform_8(%arg0: i32) -> (i32, i32) {
    %c0_i32 = arith.constant 0 : i32
    %c0_i32_0 = arith.constant 0 : i32
    %c0_i32_1 = arith.constant 0 : i32
    return %c0_i32, %c0_i32_0 : i32, i32
  }
  func.func @transform_9(%arg0: i32) -> (i32, i32) {
    %c0_i32 = arith.constant 0 : i32
    %c0_i32_0 = arith.constant 0 : i32
    %c0_i32_1 = arith.constant 0 : i32
    return %c0_i32, %c0_i32_0 : i32, i32
  }
  func.func @transform_10(%arg0: i32) -> (i32, i32) {
    %c0_i32 = arith.constant 0 : i32
    %c0_i32_0 = arith.constant 0 : i32
    return %arg0, %c0_i32 : i32, i32
  }
}

</mosaic_0001>

<bundles_post_ra>
// kernel: tpu_custom_call.1
= control target key start
LH: loop header
LB: loop body
LE: loop exit
PB: predicated region body
PF: predicated region fallthrough
CT: control target
= control target key end

     0   :  { %s2976_s13 = smov 0   ;;  %s3539_s0 = inlined_call_operand.vmem [shape: f32[256,32], index: 0, kind: input, shape index: {}]   ;;  %s3540_s1 = inlined_call_operand.vmem [shape: f32[32,8], index: 1, kind: input, shape index: {}]   ;;  %s3541_s2 = inlined_call_operand.vmem [shape: f32[16,128], index: 2, kind: input, shape index: {}]   ;;  %s3542_s3 = inlined_call_operand.vmem [shape: f32[16,128], index: 3, kind: input, shape index: {}]   ;;  %s3543_s4 = inlined_call_operand.vmem [shape: f32[128,16], index: 4, kind: input, shape index: {}]   ;;  %s3544_s5 = inlined_call_operand.vmem [shape: f32[32,64], index: 5, kind: input, shape index: {}]   ;;  %s3545_s6 = inlined_call_operand.vmem [shape: f32[32,96], index: 6, kind: input, shape index: {}]   ;;  %s3546_s7 = inlined_call_operand.vmem [shape: f32[1,64], index: 7, kind: input, shape index: {}]   ;;  %s3547_s8 = inlined_call_operand.vmem [shape: f32[64,32], index: 8, kind: input, shape index: {}]   ;;  %s3548_s9 = inlined_call_operand.vmem [shape: f32[1,32], index: 9, kind: input, shape index: {}]   ;;  %s3549_s10 = inlined_call_operand.vmem [shape: f32[256,32], index: 10, kind: output, shape index: {}]  }
   0x1 LB: > { %s2099_s14 = sadd.s32 4294967295, %s2904_s13   ;;  %p2103_p0 = scmp.ge.s32.totalorder %s2904_s13, 1  ;;  %s2904_s13 = sphi %s2976_s13, %s20_s13  }
   0x2   : > { %p324_p1 = scmp.lt.s32.totalorder %s2904_s13, 3 }
   0x4   : > { %p325_p2 = pnand %p2103_p0, %p324_p1 }
   0x5   : > { %s2106_s15 = sshll.u32 (!%p325_p2), %s2099_s14, 1  ;;  %s2906_s20 = smov (!%p325_p2), 16   ;;  %vm508_vm0 = vcmask (!%p325_p2), 261120   ;;  %v718_v26 = vld [vmem:[%s3545_s6] sm:$0xff] (!%p325_p2)  ;;  %v719_v27 = vld [vmem:[%s3545_s6 + $0x8] sm:$0xff] (!%p325_p2)  ;;  %v720_v29 = vld [vmem:[%s3545_s6 + $0x10] sm:$0xff] (!%p325_p2) }
   0x6   : > { %328 = sbr.rel (%p325_p2) target bundleno = 2323 (0x913), region = 60  ;;  %p374_p3 = scmp.lt.s32.totalorder (!%p325_p2), %s2106_s15, 3  ;;  %v2612_v28 = vpack.c.bf16 (!%p325_p2), %v719_v27, %v718_v26  ;;  %v721_v30 = vld [vmem:[%s3545_s6 + $0x18] sm:$0xff] (!%p325_p2)  ;;  %vm499_vm1 = vcmask (!%p325_p2), 64512   ;;  %v633_v34 = vld [vmem:[%s3544_s5] sm:$0xff] (!%p325_p2)  ;;  %v634_v35 = vld [vmem:[%s3544_s5 + $0x8] sm:$0xff] (!%p325_p2) }
   0x7   : > { %s2907_s21 = smov (!%p325_p2), 8   ;;  %s2104_s22 = sshll.u32 (!%p325_p2), %s2099_s14, 4  ;;  %v2616_v31 = vpack.c.bf16 (!%p325_p2), %v721_v30, %v720_v29  ;;  %v3125_v36 = vpack.c.bf16 (!%p325_p2), %v634_v35, %v633_v34  ;;  %vm502_vm2 = vcmask (!%p325_p2), 130048   ;;  %vm505_vm3 = vcmask (!%p325_p2), 195584   ;;  %v404_v27 = vld [vmem:[%s3541_s2 + $0x8] sm:$0xff] (!%p325_p2) }
   0x8   : > { %p368_p4 = scmp.lt.s32.totalorder (!%p325_p2), %s2104_s22, 31  ;;  %s2908_s23 = smov (!%p325_p2), 24   ;;  %2613 = vmatprep.subr.bf16.mxu1 (!%p325_p2), %v2612_v28  ;;  %vm511_vm4 = vcmask (!%p325_p2), 326656   ;;  %vm514_vm5 = vcmask (!%p325_p2), 392192   ;;  %vm517_vm6 = vcmask (!%p325_p2), 457728   ;;  %vm520_vm7 = vcmask (!%p325_p2), 523264   ;;  %vm3165_vm15 = vmpackc.low (!%p325_p2), %vm502_vm2, %vm502_vm2 }
   0x9   : > { %s2909_s28 = smov (!%p325_p2), 32   ;;  %s2910_s29 = smov (!%p325_p2), 40   ;;  %2615 = vmatpush3.bf16.msra.mxu1 (!%p325_p2), %v2612_v28  ;;  %vm523_vm8 = vcmask (!%p325_p2), 588800   ;;  %vm526_vm9 = vcmask (!%p325_p2), 654336   ;;  %vm529_vm10 = vcmask (!%p325_p2), 719872   ;;  %vm532_vm11 = vcmask (!%p325_p2), 785408  }
   0xa   : > { %s2911_s30 = smov (!%p325_p2), 48   ;;  %s2912_s11 = smov (!%p325_p2), 56   ;;  %2617 = vmatprep.subr.bf16.mxu1 (!%p325_p2), %v2616_v31  ;;  %vm535_vm12 = vcmask (!%p325_p2), 850944   ;;  %vm538_vm13 = vcmask (!%p325_p2), 916480   ;;  %vm541_vm14 = vcmask (!%p325_p2), 982016   ;;  %v403_v28 = vld [vmem:[%s3541_s2] sm:$0xff] (!%p325_p2) }
   0xb   : > { %s2913_s12 = smov (!%p325_p2), 64   ;;  %s2914_s14 = smov (!%p325_p2), 72  }
   0xc   : > { %s2917_s17 = smov (!%p325_p2), 96   ;;  %s2918_s18 = smov (!%p325_p2), 104  }
   0xd   : > { %s3553_s15 = smov (!%p374_p3, %s2106_s15), 3  ;;  %s3555_s22 = smov (!%p368_p4, %s2104_s22), 31  ;;  %2619 = vmatpush3.bf16.msra.mxu1 %v2616_v31 }
   0xe   : > { %s2107_s16 = sshll.u32 %s3553_s15, 3  ;;  %s2105_s24 = sshll.u32 %s3555_s22, 3 }
   0xf   : > { %s377_s19 = scalar_lea.vmem %s3540_s1, %s2107_s16  ;;  %s3007_s27 = scalar_lea.vmem %s3539_s0, %s2105_s24 }
  0x10   : > { %v2987_v0 = vld [vmem:[%s377_s19] sm:$0xff]  ;;  %v2992_v1 = vld [vmem:[%s377_s19 + $0x8] sm:$0xff]  ;;  %v3022_v5 = vld [vmem:[%s3007_s27 + $0x10] sm:$0xff]  ;;  %s2915_s15 = smov 80   ;;  %s2916_s16 = smov 88  }
  0x11   : > { %415 = vrot.lane.b32.xlu1 %v2987_v0, %s2906_s20  ;;  %409 = vrot.lane.b32.xlu0 %v2987_v0, %s2907_s21  ;;  %v385_v2 = vld [vmem:[%s3007_s27] sm:$0xff]  ;;  %v3015_v3 = vld [vmem:[%s3007_s27 + $0x8] sm:$0xff]  ;;  %v621_v32 = vsel %vm499_vm1, %v2987_v0, 0.0  ;;  %v624_v33 = vsel %vm499_vm1, %v2992_v1, 0.0 }
  0x12   : > { %v2572_v4 = vpack.c.bf16 %v3015_v3, %v385_v2  ;;  %2392 = vmatprep.mubr.msk.f32.mxu1 %vm508_vm0, %v385_v2  ;;  %v3025_v6 = vld [vmem:[%s3007_s27 + $0x18] sm:$0xff]  ;;  %v3034_v8 = vld [vmem:[%s3007_s27 + $0x20] sm:$0xff]  ;;  %v3037_v9 = vld [vmem:[%s3007_s27 + $0x28] sm:$0xff] }
  0x13   : > { %v2576_v7 = vpack.c.bf16 %v3025_v6, %v3022_v5  ;;  %v2580_v10 = vpack.c.bf16 %v3037_v9, %v3034_v8  ;;  %v3044_v11 = vld [vmem:[%s3007_s27 + $0x30] sm:$0xff]  ;;  %v3047_v12 = vld [vmem:[%s3007_s27 + $0x38] sm:$0xff]  ;;  %v393_v14 = vld [vmem:[%s3007_s27 + $0x40] sm:$0xff]  ;;  %2393 = vmatmul.mubr.msk.f32.vlgmr.msra.gmra.mrb[0].mxu1 %vm508_vm0, %v3015_v3 }
  0x14   : > { %2573 = vmatprep.subr.bf16.mxu0 %v2572_v4  ;;  %v2584_v13 = vpack.c.bf16 %v3047_v12, %v3044_v11  ;;  %v394_v15 = vld [vmem:[%s3007_s27 + $0x48] sm:$0xff]  ;;  %v395_v17 = vld [vmem:[%s3007_s27 + $0x50] sm:$0xff]  ;;  %v396_v18 = vld [vmem:[%s3007_s27 + $0x58] sm:$0xff]  ;;  %2395 = vmatprep.mubr.msk.f32.mxu1 %vm508_vm0, %v3022_v5 }
  0x15   : > { %417 = vrot.lane.b32.xlu1 %v2992_v1, %s2906_s20  ;;  %411 = vrot.lane.b32.xlu0 %v2992_v1, %s2907_s21  ;;  %v2588_v16 = vpack.c.bf16 %v394_v15, %v393_v14  ;;  %v2592_v19 = vpack.c.bf16 %v396_v18, %v395_v17  ;;  %v397_v20 = vld [vmem:[%s3007_s27 + $0x60] sm:$0xff]  ;;  %v398_v21 = vld [vmem:[%s3007_s27 + $0x68] sm:$0xff] }
  0x16   : > { %2575 = vmatpush3.bf16.msra.mxu0 %v2572_v4  ;;  %v2596_v22 = vpack.c.bf16 %v398_v21, %v397_v20  ;;  %v399_v23 = vld [vmem:[%s3007_s27 + $0x70] sm:$0xff]  ;;  %v400_v24 = vld [vmem:[%s3007_s27 + $0x78] sm:$0xff] }
  0x17   : > { %2577 = vmatprep.subr.bf16.mxu0 %v2576_v7  ;;  %v2600_v25 = vpack.c.bf16 %v400_v24, %v399_v23  ;;  %2396 = vmatmul.mubr.msk.f32.gmra.mrb[2].mxu1 %vm508_vm0, %v3025_v6 }
  0x18   : > { %2398 = vmatprep.mubr.msk.f32.mxu1 %vm508_vm0, %v3034_v8 }
  0x19   : > { %423 = vrot.lane.b32.xlu1 %v2992_v1, %s2908_s23  ;;  %421 = vrot.lane.b32.xlu0 %v2987_v0, %s2908_s23 }
  0x1a   : > { %2579 = vmatpush3.bf16.msra.mxu0 %v2576_v7 }
  0x1b   : > { %2581 = vmatprep.subr.bf16.mxu0 %v2580_v10  ;;  %2399 = vmatmul.mubr.msk.f32.gmra.mrb[4].mxu1 %vm508_vm0, %v3037_v9 }
  0x1c   : > { %2401 = vmatprep.mubr.msk.f32.mxu1 %vm508_vm0, %v3044_v11 }
  0x1d   : > { %429 = vrot.lane.b32.xlu1 %v2992_v1, %s2909_s28  ;;  %427 = vrot.lane.b32.xlu0 %v2987_v0, %s2909_s28 }
  0x1e   : > { %2583 = vmatpush3.bf16.msra.mxu0 %v2580_v10 }
  0x1f   : > { %2585 = vmatprep.subr.bf16.mxu0 %v2584_v13  ;;  %2402 = vmatmul.mubr.msk.f32.gmra.mrb[6].mxu1 %vm508_vm0, %v3047_v12 }
  0x20   : > { %2404 = vmatprep.mubr.msk.f32.mxu1 %vm508_vm0, %v393_v14 }
  0x21   : > { %435 = vrot.lane.b32.xlu1 %v2992_v1, %s2910_s29  ;;  %433 = vrot.lane.b32.xlu0 %v2987_v0, %s2910_s29  ;;  %s3502_s29 = scalar_lea.vmem %s3549_s10, %s2105_s24 }
  0x22   : > { %2587 = vmatpush3.bf16.msra.mxu0 %v2584_v13 }
  0x23   : > { %2589 = vmatprep.subr.bf16.mxu0 %v2588_v16  ;;  %2405 = vmatmul.mubr.msk.f32.gmra.mrb[8].mxu1 %vm508_vm0, %v394_v15 }
  0x24   : > { %2407 = vmatprep.mubr.msk.f32.mxu1 %vm508_vm0, %v395_v17 }
  0x25   : > { %441 = vrot.lane.b32.xlu1 %v2992_v1, %s2911_s30  ;;  %439 = vrot.lane.b32.xlu0 %v2987_v0, %s2911_s30 }
  0x26   : > { %2591 = vmatpush3.bf16.msra.mxu0 %v2588_v16 }
  0x27   : > { %2593 = vmatprep.subr.bf16.mxu0 %v2592_v19  ;;  %2408 = vmatmul.mubr.msk.f32.gmra.mrb[10].mxu1 %vm508_vm0, %v396_v18 }
  0x28   : > { %2410 = vmatprep.mubr.msk.f32.mxu1 %vm508_vm0, %v397_v20 }
  0x29   : > { %447 = vrot.lane.b32.xlu1 %v2992_v1, %s2912_s11  ;;  %445 = vrot.lane.b32.xlu0 %v2987_v0, %s2912_s11 }
  0x2a   : > { %2595 = vmatpush3.bf16.msra.mxu0 %v2592_v19 }
  0x2b   : > { %2597 = vmatprep.subr.bf16.mxu0 %v2596_v22  ;;  %2411 = vmatmul.mubr.msk.f32.gmra.mrb[12].mxu1 %vm508_vm0, %v398_v21 }
  0x2c   : > { %2413 = vmatprep.mubr.msk.f32.mxu1 %vm508_vm0, %v399_v23 }
  0x2d   : > { %453 = vrot.lane.b32.xlu1 %v2992_v1, %s2913_s12  ;;  %451 = vrot.lane.b32.xlu0 %v2987_v0, %s2913_s12  ;;  %s2919_s12 = smov 112  }
  0x2e   : > { %2599 = vmatpush3.bf16.msra.mxu0 %v2596_v22 }
  0x2f   : > { %2601 = vmatprep.subr.bf16.mxu0 %v2600_v25  ;;  %2414 = vmatmul.mubr.msk.f32.gmra.mrb[14].mxu1 %vm508_vm0, %v400_v24 }
  0x31   : > { %459 = vrot.lane.b32.xlu1 %v2992_v1, %s2914_s14  ;;  %457 = vrot.lane.b32.xlu0 %v2987_v0, %s2914_s14  ;;  %s2920_s14 = smov 120  }
  0x32   : > { %2603 = vmatpush3.bf16.msra.mxu0 %v2600_v25 }
  0x33   : > { %2605 = vmatprep.subr.bf16.mxu0 %v3125_v36 }
  0x35   : > { %465 = vrot.lane.b32.xlu1 %v2992_v1, %s2915_s15  ;;  %463 = vrot.lane.b32.xlu0 %v2987_v0, %s2915_s15 }
  0x39   : > { %471 = vrot.lane.b32.xlu1 %v2992_v1, %s2916_s16  ;;  %469 = vrot.lane.b32.xlu0 %v2987_v0, %s2916_s16 }
  0x3d   : > { %477 = vrot.lane.b32.xlu1 %v2992_v1, %s2917_s17  ;;  %475 = vrot.lane.b32.xlu0 %v2987_v0, %s2917_s17 }
  0x41   : > { %483 = vrot.lane.b32.xlu1 %v2992_v1, %s2918_s18  ;;  %481 = vrot.lane.b32.xlu0 %v2987_v0, %s2918_s18 }
  0x45   : > { %489 = vrot.lane.b32.xlu1 %v2992_v1, %s2919_s12  ;;  %487 = vrot.lane.b32.xlu0 %v2987_v0, %s2919_s12 }
  0x49   : > { %495 = vrot.lane.b32.xlu1 %v2992_v1, %s2920_s14  ;;  %493 = vrot.lane.b32.xlu0 %v2987_v0, %s2920_s14 }
  0x68   : > { %622 = vadd.xlane.f32.xlu0 %v621_v32 }
  0x6d   : > { %625 = vadd.xlane.f32.xlu1 %v624_v33 }
  0x83   : > { %v416_v37 = vpop.permute.xlu1 %415  ;;  %v410_v38 = vpop.permute.xlu0 %409 }
  0x84   : > { %v500_v59 = vsel %vm499_vm1, %v2987_v0, %v410_v38  ;;  %v635_v38 = vld [vmem:[%s3544_s5 + $0x10] sm:$0xff] }
  0x85   : > { %v503_v62 = vsel %vm502_vm2, %v500_v59, %v416_v37 }
  0x87   : > { %v418_v39 = vpop.permute.xlu1 %417  ;;  %v412_v40 = vpop.permute.xlu0 %411 }
  0x88   : > { %v501_v60 = vsel %vm499_vm1, %v2992_v1, %v412_v40 }
  0x89   : > { %v504_v61 = vsel %vm502_vm2, %v501_v60, %v418_v39  ;;  %v636_v39 = vld [vmem:[%s3544_s5 + $0x18] sm:$0xff] }
  0x8a   : > { %v2608_v40 = vpack.c.bf16 %v636_v39, %v635_v38  ;;  %v406_v39 = vld [vmem:[%s3542_s3 + $0x8] sm:$0xff] }
  0x8b   : > { %v424_v41 = vpop.permute.xlu1 %423  ;;  %v422_v42 = vpop.permute.xlu0 %421 }
  0x8c   : > { %v507_v3 = vsel %vm505_vm3, %v504_v61, %v424_v41  ;;  %v506_v4 = vsel %vm505_vm3, %v503_v62, %v422_v42 }
  0x8f   : > { %v430_v43 = vpop.permute.xlu1 %429  ;;  %v428_v44 = vpop.permute.xlu0 %427 }
  0x90   : > { %v510_v5 = vsel %vm508_vm0, %v507_v3, %v430_v43  ;;  %v509_v6 = vsel %vm508_vm0, %v506_v4, %v428_v44  ;;  %v405_v43 = vld [vmem:[%s3542_s3] sm:$0xff] }
  0x93   : > { %v436_v45 = vpop.permute.xlu1 %435  ;;  %v434_v46 = vpop.permute.xlu0 %433 }
  0x94   : > { %v513_v0 = vsel %vm511_vm4, %v510_v5, %v436_v45  ;;  %v512_v7 = vsel %vm511_vm4, %v509_v6, %v434_v46 }
  0x97   : > { %v442_v47 = vpop.permute.xlu1 %441  ;;  %v440_v48 = vpop.permute.xlu0 %439 }
  0x98   : > { %v516_v1 = vsel %vm514_vm5, %v513_v0, %v442_v47  ;;  %v515_v8 = vsel %vm514_vm5, %v512_v7, %v440_v48 }
  0x9b   : > { %v448_v49 = vpop.permute.xlu1 %447  ;;  %v446_v50 = vpop.permute.xlu0 %445 }
  0x9c   : > { %v519_v11 = vsel %vm517_vm6, %v516_v1, %v448_v49  ;;  %v518_v12 = vsel %vm517_vm6, %v515_v8, %v446_v50 }
  0x9f   : > { %v454_v51 = vpop.permute.xlu1 %453  ;;  %v452_v52 = vpop.permute.xlu0 %451 }
  0xa0   : > { %v522_v13 = vsel %vm520_vm7, %v519_v11, %v454_v51  ;;  %v521_v14 = vsel %vm520_vm7, %v518_v12, %v452_v52 }
  0xa3   : > { %v460_v53 = vpop.permute.xlu1 %459  ;;  %v458_v54 = vpop.permute.xlu0 %457 }
  0xa4   : > { %v525_v15 = vsel %vm523_vm8, %v522_v13, %v460_v53  ;;  %v524_v16 = vsel %vm523_vm8, %v521_v14, %v458_v54 }
  0xa7   : > { %v466_v55 = vpop.permute.xlu1 %465  ;;  %v464_v56 = vpop.permute.xlu0 %463 }
  0xa8   : > { %v528_v17 = vsel %vm526_vm9, %v525_v15, %v466_v55  ;;  %v527_v18 = vsel %vm526_vm9, %v524_v16, %v464_v56 }
  0xab   : > { %v472_v57 = vpop.permute.xlu1 %471  ;;  %v470_v58 = vpop.permute.xlu0 %469 }
  0xac   : > { %v531_v21 = vsel %vm529_vm10, %v528_v17, %v472_v57  ;;  %v530_v22 = vsel %vm529_vm10, %v527_v18, %v470_v58 }
  0xaf   : > { %v478_v63 = vpop.permute.xlu1 %477  ;;  %v476_v2 = vpop.permute.xlu0 %475 }
  0xb0   : > { %v534_v23 = vsel %vm532_vm11, %v531_v21, %v478_v63  ;;  %v533_v24 = vsel %vm532_vm11, %v530_v22, %v476_v2 }
  0xb3   : > { %v484_v9 = vpop.permute.xlu1 %483  ;;  %v482_v10 = vpop.permute.xlu0 %481 }
  0xb4   : > { %v537_v25 = vsel %vm535_vm12, %v534_v23, %v484_v9  ;;  %v536_v26 = vsel %vm535_vm12, %v533_v24, %v482_v10 }
  0xb7   : > { %v490_v19 = vpop.permute.xlu1 %489  ;;  %v488_v20 = vpop.permute.xlu0 %487 }
  0xb8   : > { %v540_v29 = vsel %vm538_vm13, %v537_v25, %v490_v19  ;;  %v539_v30 = vsel %vm538_vm13, %v536_v26, %v488_v20 }
  0xbb   : > { %v496_v31 = vpop.permute.xlu1 %495  ;;  %v494_v32 = vpop.permute.xlu0 %493 }
  0xbc   : > { %v543_v33 = vsel %vm541_vm14, %v540_v29, %v496_v31  ;;  %v542_v34 = vsel %vm541_vm14, %v539_v30, %v494_v32 }
  0xbd   : > { %v3146_v35 = vmul.f32 %v543_v33, %v404_v27  ;;  %v3148_v37 = vmul.f32 %v542_v34, %v403_v28 }
  0xbf   : > { %2370 = vmatprep.mubr.f32.mxu0 %v3148_v37  ;;  %v1220_v38 = vmul.f32 1e+09, %v3146_v35 }
  0xc0   : > { %2371 = vmatmul.mubr.f32.vlgmr.msra.gmra.mrb[0].mxu0 %v3146_v35 }
  0xc1   : > { %2607 = vmatpush3.bf16.msra.mxu0 %v3125_v36 }
  0xc2   : > { %2609 = vmatprep.subr.bf16.mxu0 %v2608_v40 }
  0xc5   : > { %2611 = vmatpush3.bf16.msra.mxu0 %v2608_v40  ;;  %v1219_v40 = vmul.f32 1e+09, %v3148_v37 }
  0xe6   : > { %v3159_v41 = vpop.f32.mrb[0].mxu1 }
  0xe7   : > { %v3161_v42 = vpop.f32.mrb[1].mxu1 }
  0xe8   : > { %v2743_v36 = vpack.i.bf16 %v3159_v41, %v3161_v42  ;;  %v2620_v44 = vpack.c.bf16 %v3159_v41, %v3161_v42 }
  0xea   : > { %2622 = vmatprep.subr.msk.bf16.mxu1 %vm3165_vm15, %v2620_v44  ;;  %v3175_v45 = vpop.f32.mrb[2].mxu1 }
  0xeb   : > { %2625 = vmatpush3.bf16.xpose.msk.msra.mxu1 %vm3165_vm15, %v2620_v44  ;;  %v3179_v46 = vpop.f32.mrb[3].mxu1  ;;  %v1221_v44 = vadd.f32 %v1219_v40, %v405_v43 }
  0xec   : > { %v2748_v47 = vpack.i.bf16 %v3175_v45, %v3179_v46  ;;  %v2626_v48 = vpack.c.bf16 %v3175_v45, %v3179_v46 }
  0xee   : > { %2628 = vmatprep.subr.msk.bf16.mxu1 %vm3165_vm15, %v2626_v48  ;;  %v3187_v49 = vpop.f32.mrb[4].mxu1 }
  0xef   : > { %v3189_v50 = vpop.f32.mrb[5].mxu1 }
  0xf0   : > { %v2753_v51 = vpack.i.bf16 %v3187_v49, %v3189_v50  ;;  %v2632_v52 = vpack.c.bf16 %v3187_v49, %v3189_v50 }
  0xf2   : > { %v3195_v53 = vpop.f32.mrb[6].mxu1 }
  0xf3   : > { %2631 = vmatpush3.bf16.xpose.msk.msra.mxu1 %vm3165_vm15, %v2626_v48  ;;  %v3199_v54 = vpop.f32.mrb[7].mxu1 }
  0xf4   : > { %2634 = vmatprep.subr.msk.bf16.mxu1 %vm3165_vm15, %v2632_v52  ;;  %v2758_v55 = vpack.i.bf16 %v3195_v53, %v3199_v54  ;;  %v2638_v56 = vpack.c.bf16 %v3195_v53, %v3199_v54 }
  0xf5   : > { %v623_v9 = vpop.xlane.xlu0 %622 }
  0xf6   : > { %v3207_v57 = vpop.f32.mrb[8].mxu1  ;;  %v627_v11 = vadd.f32 1e-08, %v623_v9 }
  0xf7   : > { %v3209_v58 = vpop.f32.mrb[9].mxu1 }
  0xf8   : > { %v2763_v59 = vpack.i.bf16 %v3207_v57, %v3209_v58  ;;  %v2644_v60 = vpack.c.bf16 %v3207_v57, %v3209_v58  ;;  %2798 = vrcp.f32 %v627_v11 }
  0xfa   : > { %v3215_v61 = vpop.f32.mrb[10].mxu1  ;;  %v626_v10 = vpop.xlane.xlu1 %625 }
  0xfb   : > { %2637 = vmatpush3.bf16.xpose.msk.msra.mxu1 %vm3165_vm15, %v2632_v52  ;;  %v3219_v62 = vpop.f32.mrb[11].mxu1  ;;  %v628_v12 = vadd.f32 1e-08, %v626_v10 }
  0xfc   : > { %2640 = vmatprep.subr.msk.bf16.mxu1 %vm3165_vm15, %v2638_v56  ;;  %v2768_v63 = vpack.i.bf16 %v3215_v61, %v3219_v62  ;;  %v2650_v2 = vpack.c.bf16 %v3215_v61, %v3219_v62 }
  0xfd   : > { %2800 = vrcp.f32 %v628_v12 }
  0xfe   : > { %v3227_v3 = vpop.f32.mrb[12].mxu1 }
  0xff   : > { %v3229_v4 = vpop.f32.mrb[13].mxu1 }
 0x100   : > { %v2773_v5 = vpack.i.bf16 %v3227_v3, %v3229_v4  ;;  %v2656_v6 = vpack.c.bf16 %v3227_v3, %v3229_v4 }
 0x102   : > { %v3235_v0 = vpop.f32.mrb[14].mxu1  ;;  %v2799_v13 = vpop.eup %2798 }
 0x103   : > { %2643 = vmatpush3.bf16.xpose.msk.msra.mxu1 %vm3165_vm15, %v2638_v56  ;;  %v3239_v7 = vpop.f32.mrb[15].mxu1 }
 0x104   : > { %2646 = vmatprep.subr.msk.bf16.mxu1 %vm3165_vm15, %v2644_v60  ;;  %v2778_v1 = vpack.i.bf16 %v3235_v0, %v3239_v7  ;;  %v2662_v8 = vpack.c.bf16 %v3235_v0, %v3239_v7 }
 0x107   : > { %v2801_v14 = vpop.eup %2800 }
 0x10b   : > { %2649 = vmatpush3.bf16.xpose.msk.msra.mxu1 %vm3165_vm15, %v2644_v60 }
 0x10c   : > { %2652 = vmatprep.subr.msk.bf16.mxu1 %vm3165_vm15, %v2650_v2 }
 0x113   : > { %2655 = vmatpush3.bf16.xpose.msk.msra.mxu1 %vm3165_vm15, %v2650_v2 }
 0x114   : > { %2658 = vmatprep.subr.msk.bf16.mxu1 %vm3165_vm15, %v2656_v6 }
 0x11b   : > { %2661 = vmatpush3.bf16.xpose.msk.msra.mxu1 %vm3165_vm15, %v2656_v6 }
 0x11c   : > { %2664 = vmatprep.subr.msk.bf16.mxu1 %vm3165_vm15, %v2662_v8 }
 0x123   : > { %2667 = vmatpush3.bf16.xpose.msk.msra.mxu1 %vm3165_vm15, %v2662_v8 }
 0x193   : > { %v2372_v15 = vpop.f32.mrb[0].mxu0 }
 0x194   : > { %v612_v16 = vpop.f32.mrb[1].mxu0  ;;  %v632_v18 = vmul.f32 %v2801_v14, %v2372_v15 }
 0x195   : > { %v631_v17 = vmul.f32 %v2799_v13, %v612_v16 }
 0x197   : > { %2381 = vmatprep.mubr.msk.f32.mxu0 %vm508_vm0, %v631_v17 }
 0x198   : > { %2382 = vmatmul.mubr.msk.f32.vlgmr.msra.gmra.mrb[2].mxu0 %vm508_vm0, %v632_v18 }
 0x26b   : > { %v2383_v19 = vpop.f32.mrb[2].mxu0 }
 0x26c   : > { %1040 = vrot.lane.b32.xlu1 %v2383_v19, %s2919_s12  ;;  %v709_v20 = vpop.f32.mrb[3].mxu0 }
 0x26d   : > { %1038 = vrot.lane.b32.xlu0 %v709_v20, %s2919_s12  ;;  %2448 = vmatprep.mubr.msk.f32.mxu1 %vm502_vm2, %v709_v20 }
 0x26e   : > { %2449 = vmatmul.mubr.msk.f32.vlgmr.msra.gmra.mrb[16].mxu1 %vm502_vm2, %v2383_v19 }
 0x270   : > { %1044 = vrot.lane.b32.xlu1 %v2383_v19, %s2917_s17 }
 0x271   : > { %1042 = vrot.lane.b32.xlu0 %v709_v20, %s2917_s17 }
 0x274   : > { %1048 = vrot.lane.b32.xlu1 %v2383_v19, %s2915_s15 }
 0x275   : > { %1046 = vrot.lane.b32.xlu0 %v709_v20, %s2915_s15 }
 0x278   : > { %2744 = vrot.lane.b32.xlu1 %v2743_v36, %s2919_s12  ;;  %v1222_v36 = vadd.f32 %v1220_v38, %v406_v39 }
 0x279   : > { %2749 = vrot.lane.b32.xlu0 %v2748_v47, %s2919_s12 }
 0x2de   : > { %v1041_v21 = vpop.permute.xlu1 %1040 }
 0x2df   : > { %v1039_v22 = vpop.permute.xlu0 %1038 }
 0x2e0   : > { %2451 = vmatprep.mubr.msk.f32.mxu1 %vm502_vm2, %v1039_v22 }
 0x2e1   : > { %2452 = vmatmul.mubr.msk.f32.gmra.mrb[18].mxu1 %vm502_vm2, %v1041_v21 }
 0x2e2   : > { %v1045_v23 = vpop.permute.xlu1 %1044 }
 0x2e3   : > { %v1043_v24 = vpop.permute.xlu0 %1042 }
 0x2e4   : > { %2454 = vmatprep.mubr.msk.f32.mxu1 %vm502_vm2, %v1043_v24 }
 0x2e5   : > { %2455 = vmatmul.mubr.msk.f32.gmra.mrb[20].mxu1 %vm502_vm2, %v1045_v23 }
 0x2e6   : > { %v1049_v25 = vpop.permute.xlu1 %1048 }
 0x2e7   : > { %v1047_v26 = vpop.permute.xlu0 %1046 }
 0x2e8   : > { %2457 = vmatprep.mubr.msk.f32.mxu1 %vm502_vm2, %v1047_v26 }
 0x2e9   : > { %2458 = vmatmul.mubr.msk.f32.gmra.mrb[22].mxu1 %vm502_vm2, %v1049_v25 }
 0x2ea   : > { %v2745_v27 = vpop.permute.xlu1 %2744 }
 0x2eb   : > { %v2747_v28 = vunpack.i.h.bf16 %v2745_v27  ;;  %v2746_v29 = vunpack.i.l.bf16 %v2745_v27  ;;  %v2750_v30 = vpop.permute.xlu0 %2749 }
 0x2ec   : > { %v2752_v31 = vunpack.i.h.bf16 %v2750_v30  ;;  %v2751_v32 = vunpack.i.l.bf16 %v2750_v30 }
 0x2ed   : > { %v2668_v33 = vpack.c.bf16 %v2747_v28, %v2746_v29 }
 0x2ee   : > { %v2672_v34 = vpack.c.bf16 %v2752_v31, %v2751_v32 }
 0x2ef   : > { %2669 = vmatprep.subr.bf16.mxu0 %v2668_v33 }
 0x2f0   : > { %2671 = vmatpush3.bf16.msra.mxu0 %v2668_v33 }
 0x2f1   : > { %2673 = vmatprep.subr.bf16.mxu0 %v2672_v34 }
 0x2f4   : > { %2675 = vmatpush3.bf16.msra.mxu0 %v2672_v34 }
 0x341   : > { %v2450_v47 = vpop.f32.mrb[16].mxu1 }
 0x342   : > { %v1224_v48 = vadd.f32 %v2450_v47, %v1222_v36  ;;  %v1180_v52 = vpop.f32.mrb[17].mxu1 }
 0x343   : > { %v1223_v56 = vadd.f32 %v1221_v44, %v1180_v52 }
 0x344   : > { %1233 = vmax.xlane.f32.xlu1 %v1224_v48 }
 0x345   : > { %1231 = vmax.xlane.f32.xlu0 %v1223_v56 }
 0x355   : > { %2754 = vrot.lane.b32.xlu1 %v2753_v51, %s2919_s12 }
 0x3b4   : > { %v2453_v35 = vpop.f32.mrb[18].mxu1 }
 0x3b5   : > { %v1226_v60 = vadd.f32 %v2453_v35, %v1222_v36  ;;  %v1190_v37 = vpop.f32.mrb[19].mxu1 }
 0x3b6   : > { %v1225_v6 = vadd.f32 %v1221_v44, %v1190_v37 }
 0x3b7   : > { %1237 = vmax.xlane.f32.xlu0 %v1226_v60 }
 0x3b8   : > { %v2456_v2 = vpop.f32.mrb[20].mxu1 }
 0x3b9   : > { %v1200_v8 = vpop.f32.mrb[21].mxu1  ;;  %v1228_v11 = vadd.f32 %v2456_v2, %v1222_v36 }
 0x3ba   : > { %v1227_v9 = vadd.f32 %v1221_v44, %v1200_v8 }
 0x3bb   : > { %1235 = vmax.xlane.f32.xlu0 %v1225_v6 }
 0x3bc   : > { %1239 = vmax.xlane.f32.xlu1 %v1227_v9  ;;  %v2459_v10 = vpop.f32.mrb[22].mxu1 }
 0x3bd   : > { %v1210_v12 = vpop.f32.mrb[23].mxu1  ;;  %v1230_v14 = vadd.f32 %v2459_v10, %v1222_v36 }
 0x3be   : > { %v1229_v13 = vadd.f32 %v1221_v44, %v1210_v12 }
 0x3bf   : > { %1241 = vmax.xlane.f32.xlu0 %v1228_v11 }
 0x3c0   : > { %1243 = vmax.xlane.f32.xlu1 %v1229_v13 }
 0x3c3   : > { %1245 = vmax.xlane.f32.xlu0 %v1230_v14 }
 0x3d1   : > { %v1234_v15 = vpop.xlane.xlu1 %1233  ;;  %2764 = vrot.lane.b32.xlu1 %v2763_v59, %s2919_s12 }
 0x3d2   : > { %v1232_v19 = vpop.xlane.xlu0 %1231  ;;  %v1248_v20 = vsub.f32 %v1224_v48, %v1234_v15 }
 0x3d3   : > { %v1247_v21 = vsub.f32 %v1223_v56, %v1232_v19 }
 0x3d4   : > { %v1257_v59 = vmul.f32 1.442695, %v1248_v20 }
 0x3d5   : > { %v2755_v51 = vpop.permute.xlu1 %2754  ;;  %2769 = vrot.lane.b32.xlu1 %v2768_v63, %s2919_s12  ;;  %v1255_v22 = vmul.f32 1.442695, %v1247_v21 }
 0x3d6   : > { %v2757_v16 = vunpack.i.h.bf16 %v2755_v51  ;;  %v2756_v17 = vunpack.i.l.bf16 %v2755_v51  ;;  %2802 = vpow2.f32 %v1257_v59 }
 0x3d7   : > { %2804 = vpow2.f32 %v1255_v22 }
 0x3d8   : > { %v2676_v18 = vpack.c.bf16 %v2757_v16, %v2756_v17 }
 0x3d9   : > { %2759 = vrot.lane.b32.xlu0 %v2758_v55, %s2919_s12 }
 0x3da   : > { %2677 = vmatprep.subr.bf16.mxu0 %v2676_v18 }
 0x3db   : > { %2679 = vmatpush3.bf16.msra.mxu0 %v2676_v18 }
 0x3e0   : > { %v3309_v23 = vpop.eup %2802 }
 0x3e1   : > { %v2805_v63 = vpop.eup %2804 }
 0x3f8   : > { %1273 = vadd.xlane.f32.xlu0 %v3309_v23 }
 0x3f9   : > { %1271 = vadd.xlane.f32.xlu1 %v2805_v63 }
 0x444   : > { %v1238_v24 = vpop.xlane.xlu0 %1237 }
 0x445   : > { %v1250_v25 = vsub.f32 %v1226_v60, %v1238_v24 }
 0x447   : > { %v1261_v26 = vmul.f32 1.442695, %v1250_v25 }
 0x448   : > { %v1236_v27 = vpop.xlane.xlu0 %1235 }
 0x449   : > { %2806 = vpow2.f32 %v1261_v26  ;;  %v1249_v55 = vsub.f32 %v1225_v6, %v1236_v27  ;;  %v1240_v28 = vpop.xlane.xlu1 %1239 }
 0x44a   : > { %v1251_v29 = vsub.f32 %v1227_v9, %v1240_v28 }
 0x44b   : > { %v1259_v30 = vmul.f32 1.442695, %v1249_v55 }
 0x44c   : > { %v1263_v31 = vmul.f32 1.442695, %v1251_v29  ;;  %v1242_v32 = vpop.xlane.xlu0 %1241 }
 0x44d   : > { %2808 = vpow2.f32 %v1259_v30  ;;  %v1252_v33 = vsub.f32 %v1228_v11, %v1242_v32  ;;  %v1244_v34 = vpop.xlane.xlu1 %1243 }
 0x44e   : > { %2810 = vpow2.f32 %v1263_v31  ;;  %v1253_v39 = vsub.f32 %v1229_v13, %v1244_v34 }
 0x44f   : > { %v1265_v38 = vmul.f32 1.442695, %v1252_v33 }
 0x450   : > { %v1246_v40 = vpop.xlane.xlu0 %1245  ;;  %v1267_v48 = vmul.f32 1.442695, %v1253_v39 }
 0x451   : > { %2812 = vpow2.f32 %v1265_v38  ;;  %v1254_v43 = vsub.f32 %v1230_v14, %v1246_v40  ;;  %v2765_v36 = vpop.permute.xlu1 %2764 }
 0x452   : > { %v2767_v52 = vunpack.i.h.bf16 %v2765_v36  ;;  %v2766_v35 = vunpack.i.l.bf16 %v2765_v36 }
 0x453   : > { %v3312_v44 = vpop.eup %2806  ;;  %v1269_v47 = vmul.f32 1.442695, %v1254_v43 }
 0x454   : > { %1277 = vadd.xlane.f32.xlu0 %v3312_v44  ;;  %v2760_v56 = vpop.permute.xlu0 %2759  ;;  %v2684_v10 = vpack.c.bf16 %v2767_v52, %v2766_v35 }
 0x455   : > { %2814 = vpow2.f32 %v1269_v47  ;;  %v2762_v60 = vunpack.i.h.bf16 %v2760_v56  ;;  %v2761_v37 = vunpack.i.l.bf16 %v2760_v56  ;;  %v2770_v2 = vpop.permute.xlu1 %2769 }
 0x456   : > { %2816 = vpow2.f32 %v1267_v48  ;;  %v2772_v11 = vunpack.i.h.bf16 %v2770_v2  ;;  %v2771_v12 = vunpack.i.l.bf16 %v2770_v2 }
 0x457   : > { %v2809_v6 = vpop.eup %2808  ;;  %v2680_v8 = vpack.c.bf16 %v2762_v60, %v2761_v37 }
 0x458   : > { %v3315_v9 = vpop.eup %2810  ;;  %1275 = vadd.xlane.f32.xlu0 %v2809_v6  ;;  %v2688_v14 = vpack.c.bf16 %v2772_v11, %v2771_v12 }
 0x459   : > { %2681 = vmatprep.subr.bf16.mxu0 %v2680_v8  ;;  %1279 = vadd.xlane.f32.xlu1 %v3315_v9 }
 0x45a   : > { %2683 = vmatpush3.bf16.msra.mxu0 %v2680_v8  ;;  %v1486_v8 = vld [vmem:[%s3543_s4] sm:$0xff] }
 0x45b   : > { %v2813_v13 = vpop.eup %2812  ;;  %2685 = vmatprep.subr.bf16.mxu0 %v2684_v10 }
 0x45c   : > { %1281 = vadd.xlane.f32.xlu0 %v2813_v13 }
 0x45e   : > { %2687 = vmatpush3.bf16.msra.mxu0 %v2684_v10 }
 0x45f   : > { %v2815_v15 = vpop.eup %2814  ;;  %2689 = vmatprep.subr.bf16.mxu0 %v2688_v14 }
 0x460   : > { %1285 = vadd.xlane.f32.xlu0 %v2815_v15  ;;  %v2817_v51 = vpop.eup %2816 }
 0x462   : > { %2691 = vmatpush3.bf16.msra.mxu0 %v2688_v14 }
 0x464   : > { %1283 = vadd.xlane.f32.xlu0 %v2817_v51 }
 0x46a   : > { %2779 = vrot.lane.b32.xlu1 %v2778_v1, %s2919_s12 }
 0x47a   : > { %2774 = vrot.lane.b32.xlu0 %v2773_v5, %s2919_s12 }
 0x485   : > { %v1274_v19 = vpop.xlane.xlu0 %1273 }
 0x486   : > { %v1272_v16 = vpop.xlane.xlu1 %1271 }
 0x487   : > { %2818 = vrcp.f32 %v1272_v16 }
 0x488   : > { %2820 = vrcp.f32 %v1274_v19 }
 0x491   : > { %v2819_v17 = vpop.eup %2818 }
 0x492   : > { %v1295_v18 = vmul.f32 %v2819_v17, %v2805_v63  ;;  %v2821_v30 = vpop.eup %2820 }
 0x493   : > { %v1296_v32 = vmul.f32 %v2821_v30, %v3309_v23  ;;  %v1492_v30 = vld [vmem:[%s3543_s4 + $0x30] sm:$0xff] }
 0x494   : > { %2492 = vmatprep.mubr.f32.mxu0 %v1295_v18 }
 0x4e1   : > { %v1278_v20 = vpop.xlane.xlu0 %1277 }
 0x4e5   : > { %v1276_v21 = vpop.xlane.xlu0 %1275 }
 0x4e6   : > { %v1280_v22 = vpop.xlane.xlu1 %1279  ;;  %2822 = vrcp.f32 %v1276_v21 }
 0x4e7   : > { %2824 = vrcp.f32 %v1278_v20 }
 0x4e8   : > { %2826 = vrcp.f32 %v1280_v22 }
 0x4e9   : > { %v1282_v59 = vpop.xlane.xlu0 %1281 }
 0x4ea   : > { %v2780_v26 = vpop.permute.xlu1 %2779  ;;  %2828 = vrcp.f32 %v1282_v59 }
 0x4eb   : > { %v2782_v27 = vunpack.i.h.bf16 %v2780_v26  ;;  %v2781_v55 = vunpack.i.l.bf16 %v2780_v26 }
 0x4ed   : > { %v1286_v24 = vpop.xlane.xlu0 %1285  ;;  %v2696_v63 = vpack.c.bf16 %v2782_v27, %v2781_v55  ;;  %v1487_v55 = vld [vmem:[%s3543_s4 + $0x8] sm:$0xff] }
 0x4f0   : > { %v2823_v31 = vpop.eup %2822 }
 0x4f1   : > { %v1284_v25 = vpop.xlane.xlu0 %1283  ;;  %v2825_v33 = vpop.eup %2824  ;;  %v1297_v34 = vmul.f32 %v2823_v31, %v2809_v6  ;;  %v1493_v31 = vld [vmem:[%s3543_s4 + $0x38] sm:$0xff] }
 0x4f2   : > { %2830 = vrcp.f32 %v1284_v25  ;;  %v2827_v38 = vpop.eup %2826  ;;  %v1298_v39 = vmul.f32 %v2825_v33, %v3312_v44  ;;  %v1495_v33 = vld [vmem:[%s3543_s4 + $0x48] sm:$0xff] }
 0x4f3   : > { %2832 = vrcp.f32 %v1286_v24  ;;  %v1299_v43 = vmul.f32 %v2827_v38, %v3315_v9  ;;  %v1497_v38 = vld [vmem:[%s3543_s4 + $0x58] sm:$0xff] }
 0x4f4   : > { %v2829_v40 = vpop.eup %2828 }
 0x4f5   : > { %v2775_v1 = vpop.permute.xlu0 %2774  ;;  %v1300_v47 = vmul.f32 %v2829_v40, %v2813_v13  ;;  %v2128_v13 = vld [vmem:[%s3546_s7] ss:$0 sm:$0xff]  ;;  %v1499_v40 = vld [vmem:[%s3543_s4 + $0x68] sm:$0xff] }
 0x4f6   : > { %v2777_v28 = vunpack.i.h.bf16 %v2775_v1  ;;  %v2776_v5 = vunpack.i.l.bf16 %v2775_v1 }
 0x4f8   : > { %v2692_v29 = vpack.c.bf16 %v2777_v28, %v2776_v5  ;;  %v1488_v28 = vld [vmem:[%s3543_s4 + $0x10] sm:$0xff]  ;;  %v1489_v5 = vld [vmem:[%s3543_s4 + $0x18] sm:$0xff] }
 0x4fa   : > { %2693 = vmatprep.subr.bf16.mxu0 %v2692_v29 }
 0x4fb   : > { %2695 = vmatpush3.bf16.msra.mxu0 %v2692_v29  ;;  %v1490_v29 = vld [vmem:[%s3543_s4 + $0x20] sm:$0xff] }
 0x4fc   : > { %2697 = vmatprep.subr.bf16.mxu0 %v2696_v63  ;;  %v2831_v36 = vpop.eup %2830 }
 0x4fd   : > { %v2833_v48 = vpop.eup %2832  ;;  %v1301_v52 = vmul.f32 %v2831_v36, %v2817_v51  ;;  %v1501_v36 = vld [vmem:[%s3543_s4 + $0x78] sm:$0xff] }
 0x4fe   : > { %v1302_v56 = vmul.f32 %v2833_v48, %v2815_v15 }
 0x4ff   : > { %2699 = vmatpush3.bf16.msra.mxu0 %v2696_v63  ;;  %v1491_v63 = vld [vmem:[%s3543_s4 + $0x28] sm:$0xff] }
 0x502   : > { %2493 = vmatmul.mubr.f32.vlgmr.msra.gmra.mrb[4].mxu0 %v1296_v32  ;;  %v1494_v32 = vld [vmem:[%s3543_s4 + $0x40] sm:$0xff] }
 0x503   : > { %2495 = vmatprep.mubr.f32.mxu0 %v1297_v34  ;;  %v1496_v34 = vld [vmem:[%s3543_s4 + $0x50] sm:$0xff] }
 0x506   : > { %2496 = vmatmul.mubr.f32.gmra.mrb[6].mxu0 %v1298_v39  ;;  %v1498_v39 = vld [vmem:[%s3543_s4 + $0x60] sm:$0xff] }
 0x507   : > { %2498 = vmatprep.mubr.f32.mxu0 %v1299_v43  ;;  %v1500_v43 = vld [vmem:[%s3543_s4 + $0x70] sm:$0xff] }
 0x50a   : > { %2499 = vmatmul.mubr.f32.gmra.mrb[8].mxu0 %v1300_v47 }
 0x50b   : > { %2501 = vmatprep.mubr.f32.mxu0 %v1301_v52 }
 0x50e   : > { %2502 = vmatmul.mubr.f32.gmra.mrb[10].mxu0 %v1302_v56 }
 0x50f   : > { %2508 = vmatprep.mubr.msk.f32.mxu0 %vm502_vm2, %v1486_v8  ;;  %v1776_v8 = vld [vmem:[%s3547_s8 + $0x8] sm:$0xff] }
 0x5d5   : > { %v2494_v23 = vpop.f32.mrb[4].mxu0 }
 0x5d6   : > { %v1417_v35 = vpop.f32.mrb[5].mxu0 }
 0x5d9   : > { %v2497_v60 = vpop.f32.mrb[6].mxu0 }
 0x5da   : > { %v1427_v37 = vpop.f32.mrb[7].mxu0 }
 0x5db   : > { %v2783_v2 = vpack.i.bf16 %v2497_v60, %v1427_v37 }
 0x5dd   : > { %2784 = vrot.lane.b32.xlu1 %v2783_v2, %s2906_s20  ;;  %v2500_v44 = vpop.f32.mrb[8].mxu0 }
 0x5de   : > { %v1437_v6 = vpop.f32.mrb[9].mxu0 }
 0x5df   : > { %v2788_v9 = vpack.i.bf16 %v2500_v44, %v1437_v6  ;;  %v1775_v6 = vld [vmem:[%s3547_s8] sm:$0xff] }
 0x5e1   : > { %2789 = vrot.lane.b32.xlu1 %v2788_v9, %s2909_s28  ;;  %v2503_v10 = vpop.f32.mrb[10].mxu0  ;;  %v1777_v9 = vld [vmem:[%s3547_s8 + $0x10] sm:$0xff] }
 0x5e2   : > { %v1447_v11 = vpop.f32.mrb[11].mxu0 }
 0x5e3   : > { %v2793_v12 = vpack.i.bf16 %v2503_v10, %v1447_v11  ;;  %v2704_v11 = vpack.c.bf16 %v1776_v8, %v1775_v6 }
 0x5e5   : > { %2794 = vrot.lane.b32.xlu1 %v2793_v12, %s2911_s30  ;;  %v1778_v12 = vld [vmem:[%s3547_s8 + $0x18] sm:$0xff]  ;;  %2705 = vmatprep.subr.bf16.mxu1 %v2704_v11 }
 0x5e6   : > { %2707 = vmatpush3.bf16.msra.mxu1 %v2704_v11 }
 0x5e9   : > { %921 = vrot.lane.b32.xlu1 %v2128_v13, %s2909_s28 }
 0x64f   : > { %v2785_v14 = vpop.permute.xlu1 %2784 }
 0x650   : > { %v2787_v51 = vunpack.i.h.bf16 %v2785_v14  ;;  %v2786_v16 = vunpack.i.l.bf16 %v2785_v14  ;;  %v2708_v14 = vpack.c.bf16 %v1778_v12, %v1777_v9 }
 0x652   : > { %v1481_v20 = vsel %vm502_vm2, %v2494_v23, %v2787_v51  ;;  %v1480_v21 = vsel %vm502_vm2, %v1417_v35, %v2786_v16  ;;  %v1780_v51 = vld [vmem:[%s3547_s8 + $0x28] sm:$0xff]  ;;  %2709 = vmatprep.subr.bf16.mxu1 %v2708_v14 }
 0x653   : > { %v2790_v15 = vpop.permute.xlu1 %2789  ;;  %2711 = vmatpush3.bf16.msra.mxu1 %v2708_v14 }
 0x654   : > { %v2792_v17 = vunpack.i.h.bf16 %v2790_v15  ;;  %v2791_v18 = vunpack.i.l.bf16 %v2790_v15  ;;  %v1779_v15 = vld [vmem:[%s3547_s8 + $0x20] sm:$0xff] }
 0x656   : > { %v1483_v24 = vsel %vm508_vm0, %v1481_v20, %v2792_v17  ;;  %v1482_v25 = vsel %vm508_vm0, %v1480_v21, %v2791_v18  ;;  %v2712_v17 = vpack.c.bf16 %v1780_v51, %v1779_v15  ;;  %v1782_v20 = vld [vmem:[%s3547_s8 + $0x38] sm:$0xff] }
 0x657   : > { %v2795_v19 = vpop.permute.xlu1 %2794 }
 0x658   : > { %v2797_v59 = vunpack.i.h.bf16 %v2795_v19  ;;  %v2796_v22 = vunpack.i.l.bf16 %v2795_v19  ;;  %v1781_v19 = vld [vmem:[%s3547_s8 + $0x30] sm:$0xff]  ;;  %2713 = vmatprep.subr.bf16.mxu1 %v2712_v17 }
 0x659   : > { %2715 = vmatpush3.bf16.msra.mxu1 %v2712_v17 }
 0x65a   : > { %v1484_v26 = vsel %vm514_vm5, %v1482_v25, %v2796_v22  ;;  %v1485_v1 = vsel %vm514_vm5, %v1483_v24, %v2797_v59  ;;  %v2716_v59 = vpack.c.bf16 %v1782_v20, %v1781_v19 }
 0x65b   : > { %v2700_v27 = vpack.c.bf16 %v1485_v1, %v1484_v26  ;;  %v922_v24 = vpop.permute.xlu1 %921 }
 0x65c   : > { %2717 = vmatprep.subr.bf16.mxu1 %v2716_v59  ;;  %v925_v25 = vadd.f32 %v3159_v41, %v922_v24  ;;  %v924_v26 = vadd.f32 %v922_v24, %v3161_v42  ;;  %v930_v42 = vadd.f32 %v922_v24, %v3199_v54 }
 0x65d   : > { %2701 = vmatprep.subr.bf16.mxu0 %v2700_v27  ;;  %2719 = vmatpush3.bf16.msra.mxu1 %v2716_v59 }
 0x65e   : > { %2703 = vmatpush3.bf16.msra.mxu0 %v2700_v27  ;;  %v2130_v1 = vmul.f32 -1.442695, %v925_v25  ;;  %v927_v27 = vadd.f32 %v3175_v45, %v922_v24 }
 0x660   : > { %2834 = vpow2.f32 %v2130_v1 }
 0x661   : > { %2509 = vmatmul.mubr.msk.f32.vlgmr.msra.gmra.mrb[12].mxu0 %vm502_vm2, %v1487_v55  ;;  %v2129_v55 = vmul.f32 -1.442695, %v924_v26 }
 0x662   : > { %2511 = vmatprep.mubr.msk.f32.mxu0 %vm502_vm2, %v1488_v28  ;;  %v926_v28 = vadd.f32 %v922_v24, %v3179_v46  ;;  %v933_v46 = vadd.f32 %v3207_v57, %v922_v24 }
 0x663   : > { %2836 = vpow2.f32 %v2129_v55 }
 0x665   : > { %2512 = vmatmul.mubr.msk.f32.gmra.mrb[14].mxu0 %vm502_vm2, %v1489_v5  ;;  %v929_v5 = vadd.f32 %v3187_v49, %v922_v24  ;;  %v932_v49 = vadd.f32 %v922_v24, %v3209_v58  ;;  %v937_v58 = vadd.f32 %v3227_v3, %v922_v24  ;;  %v938_v3 = vadd.f32 %v922_v24, %v3239_v7 }
 0x666   : > { %2514 = vmatprep.mubr.msk.f32.mxu0 %vm502_vm2, %v1490_v29  ;;  %v2132_v29 = vmul.f32 -1.442695, %v927_v27 }
 0x667   : > { %v2143_v11 = vmul.f32 -1.442695, %v938_v3 }
 0x668   : > { %2838 = vpow2.f32 %v2132_v29 }
 0x669   : > { %2515 = vmatmul.mubr.msk.f32.gmra.mrb[16].mxu0 %vm502_vm2, %v1491_v63  ;;  %v2131_v63 = vmul.f32 -1.442695, %v926_v28 }
 0x66a   : > { %2517 = vmatprep.mubr.msk.f32.mxu0 %vm502_vm2, %v1492_v30  ;;  %v928_v30 = vadd.f32 %v922_v24, %v3189_v50  ;;  %v2138_v50 = vmul.f32 -1.442695, %v933_v46 }
 0x66b   : > { %2840 = vpow2.f32 %v2131_v63 }
 0x66c   : > { %v2133_v41 = vmul.f32 -1.442695, %v928_v30 }
 0x66d   : > { %2518 = vmatmul.mubr.msk.f32.gmra.mrb[18].mxu0 %vm502_vm2, %v1493_v31  ;;  %v931_v31 = vadd.f32 %v3195_v53, %v922_v24  ;;  %v935_v53 = vadd.f32 %v3215_v61, %v922_v24 }
 0x66e   : > { %2520 = vmatprep.mubr.msk.f32.mxu0 %vm502_vm2, %v1494_v32  ;;  %v2134_v32 = vmul.f32 -1.442695, %v929_v5 }
 0x66f   : > { %v2136_v45 = vmul.f32 -1.442695, %v931_v31  ;;  %v2140_v57 = vmul.f32 -1.442695, %v935_v53 }
 0x670   : > { %2842 = vpow2.f32 %v2134_v32 }
 0x671   : > { %2521 = vmatmul.mubr.msk.f32.gmra.mrb[20].mxu0 %vm502_vm2, %v1495_v33  ;;  %2844 = vpow2.f32 %v2133_v41  ;;  %v2135_v33 = vmul.f32 -1.442695, %v930_v42 }
 0x672   : > { %2523 = vmatprep.mubr.msk.f32.mxu0 %vm502_vm2, %v1496_v34  ;;  %v2835_v34 = vpop.eup %2834  ;;  %2846 = vpow2.f32 %v2136_v45 }
 0x673   : > { %2848 = vpow2.f32 %v2135_v33 }
 0x674   : > { %2850 = vpow2.f32 %v2138_v50 }
 0x675   : > { %2524 = vmatmul.mubr.msk.f32.gmra.mrb[22].mxu0 %vm502_vm2, %v1497_v38  ;;  %v2837_v38 = vpop.eup %2836 }
 0x676   : > { %2526 = vmatprep.mubr.msk.f32.mxu0 %vm502_vm2, %v1498_v39  ;;  %v2137_v39 = vmul.f32 -1.442695, %v932_v49  ;;  %v2839_v54 = vpop.eup %2838 }
 0x678   : > { %2852 = vpow2.f32 %v2137_v39 }
 0x679   : > { %2527 = vmatmul.mubr.msk.f32.gmra.mrb[24].mxu0 %vm502_vm2, %v1499_v40  ;;  %v934_v40 = vadd.f32 %v922_v24, %v3219_v62  ;;  %v2142_v62 = vmul.f32 -1.442695, %v937_v58 }
 0x67a   : > { %2529 = vmatprep.mubr.msk.f32.mxu0 %vm502_vm2, %v1500_v43  ;;  %v989_v43 = vadd.f32 1.0, %v2835_v34 }
 0x67c   : > { %2854 = vrcp.f32 %v989_v43 }
 0x67d   : > { %2530 = vmatmul.mubr.msk.f32.gmra.mrb[26].mxu0 %vm502_vm2, %v1501_v36  ;;  %v988_v36 = vadd.f32 1.0, %v2837_v38 }
 0x67f   : > { %2856 = vrcp.f32 %v988_v36 }
 0x680   : > { %2858 = vpow2.f32 %v2140_v57 }
 0x734   : > { %v2510_v47 = vpop.f32.mrb[12].mxu0 }
 0x735   : > { %1713 = vrot.lane.b32.xlu1 %v2510_v47, %s2909_s28  ;;  %v1616_v48 = vpop.f32.mrb[13].mxu0  ;;  %v2841_v47 = vpop.eup %2840 }
 0x736   : > { %1711 = vrot.lane.b32.xlu0 %v1616_v48, %s2909_s28  ;;  %v2139_v48 = vmul.f32 -1.442695, %v934_v40  ;;  %v990_v61 = vadd.f32 1.0, %v2841_v47 }
 0x738   : > { %v2513_v52 = vpop.f32.mrb[14].mxu0  ;;  %2860 = vpow2.f32 %v2139_v48 }
 0x739   : > { %1717 = vrot.lane.b32.xlu1 %v2513_v52, %s2909_s28  ;;  %v1626_v56 = vpop.f32.mrb[15].mxu0  ;;  %v2843_v52 = vpop.eup %2842 }
 0x73a   : > { %1715 = vrot.lane.b32.xlu0 %v1626_v56, %s2909_s28  ;;  %v991_v56 = vadd.f32 1.0, %v2839_v54 }
 0x73c   : > { %v2516_v23 = vpop.f32.mrb[16].mxu0  ;;  %2862 = vrcp.f32 %v991_v56 }
 0x73d   : > { %1721 = vrot.lane.b32.xlu1 %v2516_v23, %s2909_s28  ;;  %v1636_v35 = vpop.f32.mrb[17].mxu0  ;;  %v936_v23 = vadd.f32 %v922_v24, %v3229_v4  ;;  %2864 = vrcp.f32 %v990_v61 }
 0x73e   : > { %1719 = vrot.lane.b32.xlu0 %v1636_v35, %s2909_s28  ;;  %v2845_v35 = vpop.eup %2844  ;;  %2866 = vpow2.f32 %v2142_v62 }
 0x73f   : > { %v992_v6 = vadd.f32 1.0, %v2845_v35 }
 0x740   : > { %v2519_v60 = vpop.f32.mrb[18].mxu0 }
 0x741   : > { %1725 = vrot.lane.b32.xlu1 %v2519_v60, %s2909_s28  ;;  %v1646_v37 = vpop.f32.mrb[19].mxu0  ;;  %v2847_v60 = vpop.eup %2846 }
 0x742   : > { %1723 = vrot.lane.b32.xlu0 %v1646_v37, %s2909_s28  ;;  %v993_v37 = vadd.f32 1.0, %v2843_v52  ;;  %v2849_v8 = vpop.eup %2848  ;;  %v995_v9 = vadd.f32 1.0, %v2847_v60 }
 0x744   : > { %v2522_v2 = vpop.f32.mrb[20].mxu0  ;;  %2868 = vrcp.f32 %v993_v37 }
 0x745   : > { %1729 = vrot.lane.b32.xlu1 %v2522_v2, %s2909_s28  ;;  %v1656_v44 = vpop.f32.mrb[21].mxu0  ;;  %v939_v2 = vadd.f32 %v3235_v0, %v922_v24 }
 0x746   : > { %1727 = vrot.lane.b32.xlu0 %v1656_v44, %s2909_s28  ;;  %v2141_v44 = vmul.f32 -1.442695, %v936_v23 }
 0x747   : > { %v2144_v4 = vmul.f32 -1.442695, %v939_v2 }
 0x748   : > { %v2525_v10 = vpop.f32.mrb[22].mxu0  ;;  %2870 = vpow2.f32 %v2141_v44 }
 0x749   : > { %1733 = vrot.lane.b32.xlu1 %v2525_v10, %s2909_s28  ;;  %v1666_v13 = vpop.f32.mrb[23].mxu0  ;;  %v2851_v10 = vpop.eup %2850  ;;  %2872 = vrcp.f32 %v992_v6 }
 0x74a   : > { %1731 = vrot.lane.b32.xlu0 %v1666_v13, %s2909_s28  ;;  %v2853_v12 = vpop.eup %2852  ;;  %v994_v13 = vadd.f32 1.0, %v2849_v8  ;;  %2874 = vrcp.f32 %v995_v9 }
 0x74b   : > { %v2855_v14 = vpop.eup %2854  ;;  %2876 = vpow2.f32 %v2144_v4  ;;  %v996_v20 = vadd.f32 1.0, %v2853_v12 }
 0x74c   : > { %v2528_v16 = vpop.f32.mrb[24].mxu0  ;;  %v2857_v0 = vpop.eup %2856  ;;  %2878 = vpow2.f32 %v2143_v11 }
 0x74d   : > { %1737 = vrot.lane.b32.xlu1 %v2528_v16, %s2909_s28  ;;  %v1676_v18 = vpop.f32.mrb[25].mxu0  ;;  %v2859_v7 = vpop.eup %2858  ;;  %2880 = vrcp.f32 %v994_v13 }
 0x74e   : > { %1735 = vrot.lane.b32.xlu0 %v1676_v18, %s2909_s28  ;;  %v997_v18 = vadd.f32 1.0, %v2851_v10  ;;  %v2861_v19 = vpop.eup %2860  ;;  %v999_v27 = vadd.f32 1.0, %v2859_v7 }
 0x74f   : > { %v998_v28 = vadd.f32 1.0, %v2861_v19 }
 0x750   : > { %v2531_v21 = vpop.f32.mrb[26].mxu0  ;;  %2882 = vrcp.f32 %v997_v18 }
 0x751   : > { %1741 = vrot.lane.b32.xlu1 %v2531_v21, %s2909_s28  ;;  %v1686_v22 = vpop.f32.mrb[27].mxu0  ;;  %v2863_v21 = vpop.eup %2862  ;;  %2884 = vrcp.f32 %v996_v20 }
 0x752   : > { %1739 = vrot.lane.b32.xlu0 %v1686_v22, %s2909_s28  ;;  %v2865_v22 = vpop.eup %2864  ;;  %2886 = vrcp.f32 %v999_v27 }
 0x753   : > { %v2867_v26 = vpop.eup %2866  ;;  %2888 = vrcp.f32 %v998_v28 }
 0x754   : > { %v2869_v55 = vpop.eup %2868  ;;  %v1001_v42 = vadd.f32 1.0, %v2867_v26 }
 0x755   : > { %v2871_v5 = vpop.eup %2870 }
 0x756   : > { %v2873_v63 = vpop.eup %2872  ;;  %v1000_v46 = vadd.f32 1.0, %v2871_v5  ;;  %2890 = vrcp.f32 %v1001_v42 }
 0x757   : > { %v2875_v32 = vpop.eup %2874 }
 0x758   : > { %v2877_v45 = vpop.eup %2876  ;;  %2892 = vrcp.f32 %v1000_v46 }
 0x759   : > { %v2879_v49 = vpop.eup %2878  ;;  %v1003_v39 = vadd.f32 1.0, %v2877_v45 }
 0x75a   : > { %v2881_v34 = vpop.eup %2880  ;;  %v1002_v40 = vadd.f32 1.0, %v2879_v49 }
 0x75b   : > { %v2883_v43 = vpop.eup %2882  ;;  %2894 = vrcp.f32 %v1003_v39 }
 0x75c   : > { %v2885_v36 = vpop.eup %2884  ;;  %2896 = vrcp.f32 %v1002_v40 }
 0x75d   : > { %v2887_v48 = vpop.eup %2886 }
 0x75e   : > { %v2889_v56 = vpop.eup %2888 }
 0x760   : > { %v2891_v62 = vpop.eup %2890 }
 0x762   : > { %v2893_v37 = vpop.eup %2892 }
 0x765   : > { %v2895_v6 = vpop.eup %2894 }
 0x766   : > { %v2897_v9 = vpop.eup %2896 }
 0x7a7   : > { %v1714_v15 = vpop.permute.xlu1 %1713 }
 0x7a8   : > { %v1760_v51 = vmul.f32 %v2855_v14, %v1714_v15  ;;  %v1712_v16 = vpop.permute.xlu0 %1711 }
 0x7a9   : > { %v1759_v17 = vmul.f32 %v2857_v0, %v1712_v16 }
 0x7aa   : > { %1808 = vrot.lane.b32.xlu1 %v1760_v51, %s2917_s17 }
 0x7ab   : > { %v1718_v59 = vpop.permute.xlu1 %1717  ;;  %1806 = vrot.lane.b32.xlu0 %v1759_v17, %s2917_s17 }
 0x7ac   : > { %v1762_v24 = vmul.f32 %v2863_v21, %v1718_v59  ;;  %v1716_v25 = vpop.permute.xlu0 %1715 }
 0x7ad   : > { %v1761_v1 = vmul.f32 %v2865_v22, %v1716_v25  ;;  %v2185_v25 = vld [vmem:[%s3548_s9] ss:$0 sm:$0xff] }
 0x7ae   : > { %1812 = vrot.lane.b32.xlu1 %v1762_v24, %s2917_s17 }
 0x7af   : > { %v1722_v29 = vpop.permute.xlu1 %1721  ;;  %1810 = vrot.lane.b32.xlu0 %v1761_v1, %s2917_s17 }
 0x7b0   : > { %v1764_v30 = vmul.f32 %v2869_v55, %v1722_v29  ;;  %v1720_v31 = vpop.permute.xlu0 %1719 }
 0x7b1   : > { %v1763_v41 = vmul.f32 %v2873_v63, %v1720_v31 }
 0x7b2   : > { %1816 = vrot.lane.b32.xlu1 %v1764_v30, %s2917_s17 }
 0x7b3   : > { %v1726_v33 = vpop.permute.xlu1 %1725  ;;  %1814 = vrot.lane.b32.xlu0 %v1763_v41, %s2917_s17 }
 0x7b4   : > { %v1766_v38 = vmul.f32 %v2875_v32, %v1726_v33  ;;  %v1724_v50 = vpop.permute.xlu0 %1723 }
 0x7b5   : > { %v1765_v53 = vmul.f32 %v2881_v34, %v1724_v50 }
 0x7b6   : > { %1820 = vrot.lane.b32.xlu1 %v1766_v38, %s2917_s17 }
 0x7b7   : > { %v1730_v54 = vpop.permute.xlu1 %1729  ;;  %1818 = vrot.lane.b32.xlu0 %v1765_v53, %s2917_s17 }
 0x7b8   : > { %v1768_v47 = vmul.f32 %v2883_v43, %v1730_v54  ;;  %v1728_v57 = vpop.permute.xlu0 %1727 }
 0x7b9   : > { %v1767_v58 = vmul.f32 %v2885_v36, %v1728_v57 }
 0x7ba   : > { %1824 = vrot.lane.b32.xlu1 %v1768_v47, %s2917_s17 }
 0x7bb   : > { %v1734_v52 = vpop.permute.xlu1 %1733  ;;  %1822 = vrot.lane.b32.xlu0 %v1767_v58, %s2917_s17 }
 0x7bc   : > { %v1770_v23 = vmul.f32 %v2887_v48, %v1734_v52  ;;  %v1732_v61 = vpop.permute.xlu0 %1731 }
 0x7bd   : > { %v1769_v35 = vmul.f32 %v2889_v56, %v1732_v61 }
 0x7be   : > { %1828 = vrot.lane.b32.xlu1 %v1770_v23, %s2917_s17 }
 0x7bf   : > { %v1738_v60 = vpop.permute.xlu1 %1737  ;;  %1826 = vrot.lane.b32.xlu0 %v1769_v35, %s2917_s17 }
 0x7c0   : > { %v1772_v2 = vmul.f32 %v2891_v62, %v1738_v60  ;;  %v1736_v44 = vpop.permute.xlu0 %1735 }
 0x7c1   : > { %v1771_v3 = vmul.f32 %v2893_v37, %v1736_v44 }
 0x7c2   : > { %1832 = vrot.lane.b32.xlu1 %v1772_v2, %s2917_s17 }
 0x7c3   : > { %v1742_v8 = vpop.permute.xlu1 %1741  ;;  %1830 = vrot.lane.b32.xlu0 %v1771_v3, %s2917_s17 }
 0x7c4   : > { %v1774_v4 = vmul.f32 %v2895_v6, %v1742_v8  ;;  %v1740_v10 = vpop.permute.xlu0 %1739 }
 0x7c5   : > { %v1773_v11 = vmul.f32 %v2897_v9, %v1740_v10 }
 0x7c6   : > { %1836 = vrot.lane.b32.xlu1 %v1774_v4, %s2917_s17 }
 0x7c7   : > { %1834 = vrot.lane.b32.xlu0 %v1773_v11, %s2917_s17 }
 0x81c   : > { %v1809_v12 = vpop.permute.xlu1 %1808 }
 0x81d   : > { %v1807_v13 = vpop.permute.xlu0 %1806 }
 0x81e   : > { %2548 = vmatprep.mubr.msk.f32.mxu1 %vm520_vm7, %v1807_v13 }
 0x81f   : > { %2549 = vmatmul.mubr.msk.f32.vlgmr.msra.gmra.mrb[24].mxu1 %vm520_vm7, %v1809_v12 }
 0x820   : > { %v1813_v14 = vpop.permute.xlu1 %1812 }
 0x821   : > { %v1811_v15 = vpop.permute.xlu0 %1810 }
 0x822   : > { %2551 = vmatprep.mubr.msk.f32.mxu1 %vm520_vm7, %v1811_v15 }
 0x823   : > { %2552 = vmatmul.mubr.msk.f32.gmra.mrb[26].mxu1 %vm520_vm7, %v1813_v14 }
 0x824   : > { %v1817_v0 = vpop.permute.xlu1 %1816 }
 0x825   : > { %v1815_v51 = vpop.permute.xlu0 %1814 }
 0x826   : > { %2554 = vmatprep.mubr.msk.f32.mxu1 %vm520_vm7, %v1815_v51 }
 0x827   : > { %2555 = vmatmul.mubr.msk.f32.gmra.mrb[28].mxu1 %vm520_vm7, %v1817_v0 }
 0x828   : > { %v1821_v16 = vpop.permute.xlu1 %1820 }
 0x829   : > { %v1819_v7 = vpop.permute.xlu0 %1818 }
 0x82a   : > { %2557 = vmatprep.mubr.msk.f32.mxu1 %vm520_vm7, %v1819_v7 }
 0x82b   : > { %2558 = vmatmul.mubr.msk.f32.gmra.mrb[30].mxu1 %vm520_vm7, %v1821_v16 }
 0x82c   : > { %v1825_v17 = vpop.permute.xlu1 %1824 }
 0x82d   : > { %v1823_v18 = vpop.permute.xlu0 %1822 }
 0x82e   : > { %2560 = vmatprep.mubr.msk.f32.mxu1 %vm520_vm7, %v1823_v18 }
 0x82f   : > { %2561 = vmatmul.mubr.msk.f32.gmra.mrb[32].mxu1 %vm520_vm7, %v1825_v17 }
 0x830   : > { %v1829_v19 = vpop.permute.xlu1 %1828 }
 0x831   : > { %v1827_v20 = vpop.permute.xlu0 %1826 }
 0x832   : > { %2563 = vmatprep.mubr.msk.f32.mxu1 %vm520_vm7, %v1827_v20 }
 0x833   : > { %2564 = vmatmul.mubr.msk.f32.gmra.mrb[34].mxu1 %vm520_vm7, %v1829_v19 }
 0x834   : > { %v1833_v21 = vpop.permute.xlu1 %1832 }
 0x835   : > { %v1831_v59 = vpop.permute.xlu0 %1830 }
 0x836   : > { %2566 = vmatprep.mubr.msk.f32.mxu1 %vm520_vm7, %v1831_v59 }
 0x837   : > { %2567 = vmatmul.mubr.msk.f32.gmra.mrb[36].mxu1 %vm520_vm7, %v1833_v21 }
 0x838   : > { %v1837_v24 = vpop.permute.xlu1 %1836 }
 0x839   : > { %v1835_v22 = vpop.permute.xlu0 %1834 }
 0x83a   : > { %2569 = vmatprep.mubr.msk.f32.mxu1 %vm520_vm7, %v1835_v22 }
 0x83b   : > { %2570 = vmatmul.mubr.msk.f32.gmra.mrb[38].mxu1 %vm520_vm7, %v1837_v24 }
 0x8f2   : > { %v2550_v26 = vpop.f32.mrb[24].mxu1 }
 0x8f3   : > { %v1942_v1 = vadd.f32 %v2550_v26, %v2185_v25  ;;  %v1936_v27 = vpop.f32.mrb[25].mxu1 }
 0x8f4   : > { %v1937_v55 = vadd.f32 %v2185_v25, %v1936_v27 }
 0x8f5   : > { %2016 = vst.msk [vmem:[%s3502_s29 + $0x8] sm:$0xff] %vm508_vm0, %v1942_v1 }
 0x8f6   : > { %2015 = vst.msk [vmem:[%s3502_s29] sm:$0xff] %vm508_vm0, %v1937_v55  ;;  %v2553_v28 = vpop.f32.mrb[26].mxu1 }
 0x8f7   : > { %v1952_v5 = vadd.f32 %v2553_v28, %v2185_v25  ;;  %v1946_v29 = vpop.f32.mrb[27].mxu1 }
 0x8f8   : > { %v1947_v63 = vadd.f32 %v2185_v25, %v1946_v29 }
 0x8f9   : > { %2018 = vst.msk [vmem:[%s3502_s29 + $0x18] sm:$0xff] %vm508_vm0, %v1952_v5 }
 0x8fa   : > { %2017 = vst.msk [vmem:[%s3502_s29 + $0x10] sm:$0xff] %vm508_vm0, %v1947_v63  ;;  %v2556_v30 = vpop.f32.mrb[28].mxu1 }
 0x8fb   : > { %v1962_v31 = vadd.f32 %v2556_v30, %v2185_v25  ;;  %v1956_v32 = vpop.f32.mrb[29].mxu1 }
 0x8fc   : > { %v1957_v41 = vadd.f32 %v2185_v25, %v1956_v32 }
 0x8fd   : > { %2020 = vst.msk [vmem:[%s3502_s29 + $0x28] sm:$0xff] %vm508_vm0, %v1962_v31 }
 0x8fe   : > { %2019 = vst.msk [vmem:[%s3502_s29 + $0x20] sm:$0xff] %vm508_vm0, %v1957_v41  ;;  %v2559_v42 = vpop.f32.mrb[30].mxu1 }
 0x8ff   : > { %v1972_v45 = vadd.f32 %v2559_v42, %v2185_v25  ;;  %v1966_v46 = vpop.f32.mrb[31].mxu1 }
 0x900   : > { %v1967_v49 = vadd.f32 %v2185_v25, %v1966_v46 }
 0x901   : > { %2022 = vst.msk [vmem:[%s3502_s29 + $0x38] sm:$0xff] %vm508_vm0, %v1972_v45 }
 0x902   : > { %2021 = vst.msk [vmem:[%s3502_s29 + $0x30] sm:$0xff] %vm508_vm0, %v1967_v49  ;;  %v2562_v33 = vpop.f32.mrb[32].mxu1 }
 0x903   : > { %v1982_v34 = vadd.f32 %v2562_v33, %v2185_v25  ;;  %v1976_v38 = vpop.f32.mrb[33].mxu1 }
 0x904   : > { %v1977_v50 = vadd.f32 %v2185_v25, %v1976_v38 }
 0x905   : > { %2024 = vst.msk [vmem:[%s3502_s29 + $0x48] sm:$0xff] %vm508_vm0, %v1982_v34 }
 0x906   : > { %2023 = vst.msk [vmem:[%s3502_s29 + $0x40] sm:$0xff] %vm508_vm0, %v1977_v50  ;;  %v2565_v53 = vpop.f32.mrb[34].mxu1 }
 0x907   : > { %v1992_v39 = vadd.f32 %v2565_v53, %v2185_v25  ;;  %v1986_v40 = vpop.f32.mrb[35].mxu1 }
 0x908   : > { %v1987_v43 = vadd.f32 %v2185_v25, %v1986_v40 }
 0x909   : > { %2026 = vst.msk [vmem:[%s3502_s29 + $0x58] sm:$0xff] %vm508_vm0, %v1992_v39 }
 0x90a   : > { %2025 = vst.msk [vmem:[%s3502_s29 + $0x50] sm:$0xff] %vm508_vm0, %v1987_v43  ;;  %v2568_v54 = vpop.f32.mrb[36].mxu1 }
 0x90b   : > { %v2002_v36 = vadd.f32 %v2568_v54, %v2185_v25  ;;  %v1996_v47 = vpop.f32.mrb[37].mxu1 }
 0x90c   : > { %v1997_v57 = vadd.f32 %v2185_v25, %v1996_v47 }
 0x90d   : > { %2028 = vst.msk [vmem:[%s3502_s29 + $0x68] sm:$0xff] %vm508_vm0, %v2002_v36 }
 0x90e   : > { %2027 = vst.msk [vmem:[%s3502_s29 + $0x60] sm:$0xff] %vm508_vm0, %v1997_v57  ;;  %v2571_v58 = vpop.f32.mrb[38].mxu1 }
 0x90f   : > { %v2012_v48 = vadd.f32 %v2571_v58, %v2185_v25  ;;  %v2006_v52 = vpop.f32.mrb[39].mxu1 }
 0x910   : > { %v2007_v56 = vadd.f32 %v2185_v25, %v2006_v52 }
 0x911   : > { %2030 = vst.msk [vmem:[%s3502_s29 + $0x78] sm:$0xff] %vm508_vm0, %v2012_v48 }
 0x912   : > { %2029 = vst.msk [vmem:[%s3502_s29 + $0x70] sm:$0xff] %vm508_vm0, %v2007_v56 }
 0x913 PF: > { %s20_s13 = sadd.s32 1, %s2904_s13  }
 0x914   : > { %p17_p5 = scmp.ge.s32.totalorder %s20_s13, 4  }
 0x916   :  { %19 = sbr.rel (!%p17_p5) target bundleno = 1 (0x1), region = 93 }

// kernel: tpu_custom_call.1
= control target key start
LH: loop header
LB: loop body
LE: loop exit
PB: predicated region body
PF: predicated region fallthrough
CT: control target
= control target key end

     0   :  { %s2976_s13 = smov 0   ;;  %s3539_s0 = inlined_call_operand.vmem [shape: f32[256,32], index: 0, kind: input, shape index: {}]   ;;  %s3540_s1 = inlined_call_operand.vmem [shape: f32[32,8], index: 1, kind: input, shape index: {}]   ;;  %s3541_s2 = inlined_call_operand.vmem [shape: f32[16,128], index: 2, kind: input, shape index: {}]   ;;  %s3542_s3 = inlined_call_operand.vmem [shape: f32[16,128], index: 3, kind: input, shape index: {}]   ;;  %s3543_s4 = inlined_call_operand.vmem [shape: f32[128,16], index: 4, kind: input, shape index: {}]   ;;  %s3544_s5 = inlined_call_operand.vmem [shape: f32[32,64], index: 5, kind: input, shape index: {}]   ;;  %s3545_s6 = inlined_call_operand.vmem [shape: f32[32,96], index: 6, kind: input, shape index: {}]   ;;  %s3546_s7 = inlined_call_operand.vmem [shape: f32[1,64], index: 7, kind: input, shape index: {}]   ;;  %s3547_s8 = inlined_call_operand.vmem [shape: f32[64,32], index: 8, kind: input, shape index: {}]   ;;  %s3548_s9 = inlined_call_operand.vmem [shape: f32[1,32], index: 9, kind: input, shape index: {}]   ;;  %s3549_s10 = inlined_call_operand.vmem [shape: f32[256,32], index: 10, kind: output, shape index: {}]  }
   0x1 LB: > { %s2099_s14 = sadd.s32 4294967295, %s2904_s13   ;;  %p2103_p0 = scmp.ge.s32.totalorder %s2904_s13, 1  ;;  %s2904_s13 = sphi %s2976_s13, %s20_s13  }
   0x2   : > { %p324_p1 = scmp.lt.s32.totalorder %s2904_s13, 3 }
   0x4   : > { %p325_p2 = pnand %p2103_p0, %p324_p1 }
   0x5   : > { %s2106_s15 = sshll.u32 (!%p325_p2), %s2099_s14, 1  ;;  %s2906_s20 = smov (!%p325_p2), 16   ;;  %vm508_vm0 = vcmask (!%p325_p2), 261120   ;;  %v718_v26 = vld [vmem:[%s3545_s6] sm:$0xff] (!%p325_p2)  ;;  %v719_v27 = vld [vmem:[%s3545_s6 + $0x8] sm:$0xff] (!%p325_p2)  ;;  %v720_v29 = vld [vmem:[%s3545_s6 + $0x10] sm:$0xff] (!%p325_p2) }
   0x6   : > { %328 = sbr.rel (%p325_p2) target bundleno = 2323 (0x913), region = 60  ;;  %p374_p3 = scmp.lt.s32.totalorder (!%p325_p2), %s2106_s15, 3  ;;  %v2612_v28 = vpack.c.bf16 (!%p325_p2), %v719_v27, %v718_v26  ;;  %v721_v30 = vld [vmem:[%s3545_s6 + $0x18] sm:$0xff] (!%p325_p2)  ;;  %vm499_vm1 = vcmask (!%p325_p2), 64512   ;;  %v633_v34 = vld [vmem:[%s3544_s5] sm:$0xff] (!%p325_p2)  ;;  %v634_v35 = vld [vmem:[%s3544_s5 + $0x8] sm:$0xff] (!%p325_p2) }
   0x7   : > { %s2907_s21 = smov (!%p325_p2), 8   ;;  %s2104_s22 = sshll.u32 (!%p325_p2), %s2099_s14, 4  ;;  %v2616_v31 = vpack.c.bf16 (!%p325_p2), %v721_v30, %v720_v29  ;;  %v3125_v36 = vpack.c.bf16 (!%p325_p2), %v634_v35, %v633_v34  ;;  %vm502_vm2 = vcmask (!%p325_p2), 130048   ;;  %vm505_vm3 = vcmask (!%p325_p2), 195584   ;;  %v404_v27 = vld [vmem:[%s3541_s2 + $0x8] sm:$0xff] (!%p325_p2) }
   0x8   : > { %p368_p4 = scmp.lt.s32.totalorder (!%p325_p2), %s2104_s22, 31  ;;  %s2908_s23 = smov (!%p325_p2), 24   ;;  %2613 = vmatprep.subr.bf16.mxu1 (!%p325_p2), %v2612_v28  ;;  %vm511_vm4 = vcmask (!%p325_p2), 326656   ;;  %vm514_vm5 = vcmask (!%p325_p2), 392192   ;;  %vm517_vm6 = vcmask (!%p325_p2), 457728   ;;  %vm520_vm7 = vcmask (!%p325_p2), 523264   ;;  %vm3165_vm15 = vmpackc.low (!%p325_p2), %vm502_vm2, %vm502_vm2 }
   0x9   : > { %s2909_s28 = smov (!%p325_p2), 32   ;;  %s2910_s29 = smov (!%p325_p2), 40   ;;  %2615 = vmatpush3.bf16.msra.mxu1 (!%p325_p2), %v2612_v28  ;;  %vm523_vm8 = vcmask (!%p325_p2), 588800   ;;  %vm526_vm9 = vcmask (!%p325_p2), 654336   ;;  %vm529_vm10 = vcmask (!%p325_p2), 719872   ;;  %vm532_vm11 = vcmask (!%p325_p2), 785408  }
   0xa   : > { %s2911_s30 = smov (!%p325_p2), 48   ;;  %s2912_s11 = smov (!%p325_p2), 56   ;;  %2617 = vmatprep.subr.bf16.mxu1 (!%p325_p2), %v2616_v31  ;;  %vm535_vm12 = vcmask (!%p325_p2), 850944   ;;  %vm538_vm13 = vcmask (!%p325_p2), 916480   ;;  %vm541_vm14 = vcmask (!%p325_p2), 982016   ;;  %v403_v28 = vld [vmem:[%s3541_s2] sm:$0xff] (!%p325_p2) }
   0xb   : > { %s2913_s12 = smov (!%p325_p2), 64   ;;  %s2914_s14 = smov (!%p325_p2), 72  }
   0xc   : > { %s2917_s17 = smov (!%p325_p2), 96   ;;  %s2918_s18 = smov (!%p325_p2), 104  }
   0xd   : > { %s3553_s15 = smov (!%p374_p3, %s2106_s15), 3  ;;  %s3555_s22 = smov (!%p368_p4, %s2104_s22), 31  ;;  %2619 = vmatpush3.bf16.msra.mxu1 %v2616_v31 }
   0xe   : > { %s2107_s16 = sshll.u32 %s3553_s15, 3  ;;  %s2105_s24 = sshll.u32 %s3555_s22, 3 }
   0xf   : > { %s377_s19 = scalar_lea.vmem %s3540_s1, %s2107_s16  ;;  %s3007_s27 = scalar_lea.vmem %s3539_s0, %s2105_s24 }
  0x10   : > { %v2987_v0 = vld [vmem:[%s377_s19] sm:$0xff]  ;;  %v2992_v1 = vld [vmem:[%s377_s19 + $0x8] sm:$0xff]  ;;  %v3022_v5 = vld [vmem:[%s3007_s27 + $0x10] sm:$0xff]  ;;  %s2915_s15 = smov 80   ;;  %s2916_s16 = smov 88  }
  0x11   : > { %415 = vrot.lane.b32.xlu1 %v2987_v0, %s2906_s20  ;;  %409 = vrot.lane.b32.xlu0 %v2987_v0, %s2907_s21  ;;  %v385_v2 = vld [vmem:[%s3007_s27] sm:$0xff]  ;;  %v3015_v3 = vld [vmem:[%s3007_s27 + $0x8] sm:$0xff]  ;;  %v621_v32 = vsel %vm499_vm1, %v2987_v0, 0.0  ;;  %v624_v33 = vsel %vm499_vm1, %v2992_v1, 0.0 }
  0x12   : > { %v2572_v4 = vpack.c.bf16 %v3015_v3, %v385_v2  ;;  %2392 = vmatprep.mubr.msk.f32.mxu1 %vm508_vm0, %v385_v2  ;;  %v3025_v6 = vld [vmem:[%s3007_s27 + $0x18] sm:$0xff]  ;;  %v3034_v8 = vld [vmem:[%s3007_s27 + $0x20] sm:$0xff]  ;;  %v3037_v9 = vld [vmem:[%s3007_s27 + $0x28] sm:$0xff] }
  0x13   : > { %v2576_v7 = vpack.c.bf16 %v3025_v6, %v3022_v5  ;;  %v2580_v10 = vpack.c.bf16 %v3037_v9, %v3034_v8  ;;  %v3044_v11 = vld [vmem:[%s3007_s27 + $0x30] sm:$0xff]  ;;  %v3047_v12 = vld [vmem:[%s3007_s27 + $0x38] sm:$0xff]  ;;  %v393_v14 = vld [vmem:[%s3007_s27 + $0x40] sm:$0xff]  ;;  %2393 = vmatmul.mubr.msk.f32.vlgmr.msra.gmra.mrb[0].mxu1 %vm508_vm0, %v3015_v3 }
  0x14   : > { %2573 = vmatprep.subr.bf16.mxu0 %v2572_v4  ;;  %v2584_v13 = vpack.c.bf16 %v3047_v12, %v3044_v11  ;;  %v394_v15 = vld [vmem:[%s3007_s27 + $0x48] sm:$0xff]  ;;  %v395_v17 = vld [vmem:[%s3007_s27 + $0x50] sm:$0xff]  ;;  %v396_v18 = vld [vmem:[%s3007_s27 + $0x58] sm:$0xff]  ;;  %2395 = vmatprep.mubr.msk.f32.mxu1 %vm508_vm0, %v3022_v5 }
  0x15   : > { %417 = vrot.lane.b32.xlu1 %v2992_v1, %s2906_s20  ;;  %411 = vrot.lane.b32.xlu0 %v2992_v1, %s2907_s21  ;;  %v2588_v16 = vpack.c.bf16 %v394_v15, %v393_v14  ;;  %v2592_v19 = vpack.c.bf16 %v396_v18, %v395_v17  ;;  %v397_v20 = vld [vmem:[%s3007_s27 + $0x60] sm:$0xff]  ;;  %v398_v21 = vld [vmem:[%s3007_s27 + $0x68] sm:$0xff] }
  0x16   : > { %2575 = vmatpush3.bf16.msra.mxu0 %v2572_v4  ;;  %v2596_v22 = vpack.c.bf16 %v398_v21, %v397_v20  ;;  %v399_v23 = vld [vmem:[%s3007_s27 + $0x70] sm:$0xff]  ;;  %v400_v24 = vld [vmem:[%s3007_s27 + $0x78] sm:$0xff] }
  0x17   : > { %2577 = vmatprep.subr.bf16.mxu0 %v2576_v7  ;;  %v2600_v25 = vpack.c.bf16 %v400_v24, %v399_v23  ;;  %2396 = vmatmul.mubr.msk.f32.gmra.mrb[2].mxu1 %vm508_vm0, %v3025_v6 }
  0x18   : > { %2398 = vmatprep.mubr.msk.f32.mxu1 %vm508_vm0, %v3034_v8 }
  0x19   : > { %423 = vrot.lane.b32.xlu1 %v2992_v1, %s2908_s23  ;;  %421 = vrot.lane.b32.xlu0 %v2987_v0, %s2908_s23 }
  0x1a   : > { %2579 = vmatpush3.bf16.msra.mxu0 %v2576_v7 }
  0x1b   : > { %2581 = vmatprep.subr.bf16.mxu0 %v2580_v10  ;;  %2399 = vmatmul.mubr.msk.f32.gmra.mrb[4].mxu1 %vm508_vm0, %v3037_v9 }
  0x1c   : > { %2401 = vmatprep.mubr.msk.f32.mxu1 %vm508_vm0, %v3044_v11 }
  0x1d   : > { %429 = vrot.lane.b32.xlu1 %v2992_v1, %s2909_s28  ;;  %427 = vrot.lane.b32.xlu0 %v2987_v0, %s2909_s28 }
  0x1e   : > { %2583 = vmatpush3.bf16.msra.mxu0 %v2580_v10 }
  0x1f   : > { %2585 = vmatprep.subr.bf16.mxu0 %v2584_v13  ;;  %2402 = vmatmul.mubr.msk.f32.gmra.mrb[6].mxu1 %vm508_vm0, %v3047_v12 }
  0x20   : > { %2404 = vmatprep.mubr.msk.f32.mxu1 %vm508_vm0, %v393_v14 }
  0x21   : > { %435 = vrot.lane.b32.xlu1 %v2992_v1, %s2910_s29  ;;  %433 = vrot.lane.b32.xlu0 %v2987_v0, %s2910_s29  ;;  %s3502_s29 = scalar_lea.vmem %s3549_s10, %s2105_s24 }
  0x22   : > { %2587 = vmatpush3.bf16.msra.mxu0 %v2584_v13 }
  0x23   : > { %2589 = vmatprep.subr.bf16.mxu0 %v2588_v16  ;;  %2405 = vmatmul.mubr.msk.f32.gmra.mrb[8].mxu1 %vm508_vm0, %v394_v15 }
  0x24   : > { %2407 = vmatprep.mubr.msk.f32.mxu1 %vm508_vm0, %v395_v17 }
  0x25   : > { %441 = vrot.lane.b32.xlu1 %v2992_v1, %s2911_s30  ;;  %439 = vrot.lane.b32.xlu0 %v2987_v0, %s2911_s30 }
  0x26   : > { %2591 = vmatpush3.bf16.msra.mxu0 %v2588_v16 }
  0x27   : > { %2593 = vmatprep.subr.bf16.mxu0 %v2592_v19  ;;  %2408 = vmatmul.mubr.msk.f32.gmra.mrb[10].mxu1 %vm508_vm0, %v396_v18 }
  0x28   : > { %2410 = vmatprep.mubr.msk.f32.mxu1 %vm508_vm0, %v397_v20 }
  0x29   : > { %447 = vrot.lane.b32.xlu1 %v2992_v1, %s2912_s11  ;;  %445 = vrot.lane.b32.xlu0 %v2987_v0, %s2912_s11 }
  0x2a   : > { %2595 = vmatpush3.bf16.msra.mxu0 %v2592_v19 }
  0x2b   : > { %2597 = vmatprep.subr.bf16.mxu0 %v2596_v22  ;;  %2411 = vmatmul.mubr.msk.f32.gmra.mrb[12].mxu1 %vm508_vm0, %v398_v21 }
  0x2c   : > { %2413 = vmatprep.mubr.msk.f32.mxu1 %vm508_vm0, %v399_v23 }
  0x2d   : > { %453 = vrot.lane.b32.xlu1 %v2992_v1, %s2913_s12  ;;  %451 = vrot.lane.b32.xlu0 %v2987_v0, %s2913_s12  ;;  %s2919_s12 = smov 112  }
  0x2e   : > { %2599 = vmatpush3.bf16.msra.mxu0 %v2596_v22 }
  0x2f   : > { %2601 = vmatprep.subr.bf16.mxu0 %v2600_v25  ;;  %2414 = vmatmul.mubr.msk.f32.gmra.mrb[14].mxu1 %vm508_vm0, %v400_v24 }
  0x31   : > { %459 = vrot.lane.b32.xlu1 %v2992_v1, %s2914_s14  ;;  %457 = vrot.lane.b32.xlu0 %v2987_v0, %s2914_s14  ;;  %s2920_s14 = smov 120  }
  0x32   : > { %2603 = vmatpush3.bf16.msra.mxu0 %v2600_v25 }
  0x33   : > { %2605 = vmatprep.subr.bf16.mxu0 %v3125_v36 }
  0x35   : > { %465 = vrot.lane.b32.xlu1 %v2992_v1, %s2915_s15  ;;  %463 = vrot.lane.b32.xlu0 %v2987_v0, %s2915_s15 }
  0x39   : > { %471 = vrot.lane.b32.xlu1 %v2992_v1, %s2916_s16  ;;  %469 = vrot.lane.b32.xlu0 %v2987_v0, %s2916_s16 }
  0x3d   : > { %477 = vrot.lane.b32.xlu1 %v2992_v1, %s2917_s17  ;;  %475 = vrot.lane.b32.xlu0 %v2987_v0, %s2917_s17 }
  0x41   : > { %483 = vrot.lane.b32.xlu1 %v2992_v1, %s2918_s18  ;;  %481 = vrot.lane.b32.xlu0 %v2987_v0, %s2918_s18 }
  0x45   : > { %489 = vrot.lane.b32.xlu1 %v2992_v1, %s2919_s12  ;;  %487 = vrot.lane.b32.xlu0 %v2987_v0, %s2919_s12 }
  0x49   : > { %495 = vrot.lane.b32.xlu1 %v2992_v1, %s2920_s14  ;;  %493 = vrot.lane.b32.xlu0 %v2987_v0, %s2920_s14 }
  0x68   : > { %622 = vadd.xlane.f32.xlu0 %v621_v32 }
  0x6d   : > { %625 = vadd.xlane.f32.xlu1 %v624_v33 }
  0x83   : > { %v416_v37 = vpop.permute.xlu1 %415  ;;  %v410_v38 = vpop.permute.xlu0 %409 }
  0x84   : > { %v500_v59 = vsel %vm499_vm1, %v2987_v0, %v410_v38  ;;  %v635_v38 = vld [vmem:[%s3544_s5 + $0x10] sm:$0xff] }
  0x85   : > { %v503_v62 = vsel %vm502_vm2, %v500_v59, %v416_v37 }
  0x87   : > { %v418_v39 = vpop.permute.xlu1 %417  ;;  %v412_v40 = vpop.permute.xlu0 %411 }
  0x88   : > { %v501_v60 = vsel %vm499_vm1, %v2992_v1, %v412_v40 }
  0x89   : > { %v504_v61 = vsel %vm502_vm2, %v501_v60, %v418_v39  ;;  %v636_v39 = vld [vmem:[%s3544_s5 + $0x18] sm:$0xff] }
  0x8a   : > { %v2608_v40 = vpack.c.bf16 %v636_v39, %v635_v38  ;;  %v406_v39 = vld [vmem:[%s3542_s3 + $0x8] sm:$0xff] }
  0x8b   : > { %v424_v41 = vpop.permute.xlu1 %423  ;;  %v422_v42 = vpop.permute.xlu0 %421 }
  0x8c   : > { %v507_v3 = vsel %vm505_vm3, %v504_v61, %v424_v41  ;;  %v506_v4 = vsel %vm505_vm3, %v503_v62, %v422_v42 }
  0x8f   : > { %v430_v43 = vpop.permute.xlu1 %429  ;;  %v428_v44 = vpop.permute.xlu0 %427 }
  0x90   : > { %v510_v5 = vsel %vm508_vm0, %v507_v3, %v430_v43  ;;  %v509_v6 = vsel %vm508_vm0, %v506_v4, %v428_v44  ;;  %v405_v43 = vld [vmem:[%s3542_s3] sm:$0xff] }
  0x93   : > { %v436_v45 = vpop.permute.xlu1 %435  ;;  %v434_v46 = vpop.permute.xlu0 %433 }
  0x94   : > { %v513_v0 = vsel %vm511_vm4, %v510_v5, %v436_v45  ;;  %v512_v7 = vsel %vm511_vm4, %v509_v6, %v434_v46 }
  0x97   : > { %v442_v47 = vpop.permute.xlu1 %441  ;;  %v440_v48 = vpop.permute.xlu0 %439 }
  0x98   : > { %v516_v1 = vsel %vm514_vm5, %v513_v0, %v442_v47  ;;  %v515_v8 = vsel %vm514_vm5, %v512_v7, %v440_v48 }
  0x9b   : > { %v448_v49 = vpop.permute.xlu1 %447  ;;  %v446_v50 = vpop.permute.xlu0 %445 }
  0x9c   : > { %v519_v11 = vsel %vm517_vm6, %v516_v1, %v448_v49  ;;  %v518_v12 = vsel %vm517_vm6, %v515_v8, %v446_v50 }
  0x9f   : > { %v454_v51 = vpop.permute.xlu1 %453  ;;  %v452_v52 = vpop.permute.xlu0 %451 }
  0xa0   : > { %v522_v13 = vsel %vm520_vm7, %v519_v11, %v454_v51  ;;  %v521_v14 = vsel %vm520_vm7, %v518_v12, %v452_v52 }
  0xa3   : > { %v460_v53 = vpop.permute.xlu1 %459  ;;  %v458_v54 = vpop.permute.xlu0 %457 }
  0xa4   : > { %v525_v15 = vsel %vm523_vm8, %v522_v13, %v460_v53  ;;  %v524_v16 = vsel %vm523_vm8, %v521_v14, %v458_v54 }
  0xa7   : > { %v466_v55 = vpop.permute.xlu1 %465  ;;  %v464_v56 = vpop.permute.xlu0 %463 }
  0xa8   : > { %v528_v17 = vsel %vm526_vm9, %v525_v15, %v466_v55  ;;  %v527_v18 = vsel %vm526_vm9, %v524_v16, %v464_v56 }
  0xab   : > { %v472_v57 = vpop.permute.xlu1 %471  ;;  %v470_v58 = vpop.permute.xlu0 %469 }
  0xac   : > { %v531_v21 = vsel %vm529_vm10, %v528_v17, %v472_v57  ;;  %v530_v22 = vsel %vm529_vm10, %v527_v18, %v470_v58 }
  0xaf   : > { %v478_v63 = vpop.permute.xlu1 %477  ;;  %v476_v2 = vpop.permute.xlu0 %475 }
  0xb0   : > { %v534_v23 = vsel %vm532_vm11, %v531_v21, %v478_v63  ;;  %v533_v24 = vsel %vm532_vm11, %v530_v22, %v476_v2 }
  0xb3   : > { %v484_v9 = vpop.permute.xlu1 %483  ;;  %v482_v10 = vpop.permute.xlu0 %481 }
  0xb4   : > { %v537_v25 = vsel %vm535_vm12, %v534_v23, %v484_v9  ;;  %v536_v26 = vsel %vm535_vm12, %v533_v24, %v482_v10 }
  0xb7   : > { %v490_v19 = vpop.permute.xlu1 %489  ;;  %v488_v20 = vpop.permute.xlu0 %487 }
  0xb8   : > { %v540_v29 = vsel %vm538_vm13, %v537_v25, %v490_v19  ;;  %v539_v30 = vsel %vm538_vm13, %v536_v26, %v488_v20 }
  0xbb   : > { %v496_v31 = vpop.permute.xlu1 %495  ;;  %v494_v32 = vpop.permute.xlu0 %493 }
  0xbc   : > { %v543_v33 = vsel %vm541_vm14, %v540_v29, %v496_v31  ;;  %v542_v34 = vsel %vm541_vm14, %v539_v30, %v494_v32 }
  0xbd   : > { %v3146_v35 = vmul.f32 %v543_v33, %v404_v27  ;;  %v3148_v37 = vmul.f32 %v542_v34, %v403_v28 }
  0xbf   : > { %2370 = vmatprep.mubr.f32.mxu0 %v3148_v37  ;;  %v1220_v38 = vmul.f32 1e+09, %v3146_v35 }
  0xc0   : > { %2371 = vmatmul.mubr.f32.vlgmr.msra.gmra.mrb[0].mxu0 %v3146_v35 }
  0xc1   : > { %2607 = vmatpush3.bf16.msra.mxu0 %v3125_v36 }
  0xc2   : > { %2609 = vmatprep.subr.bf16.mxu0 %v2608_v40 }
  0xc5   : > { %2611 = vmatpush3.bf16.msra.mxu0 %v2608_v40  ;;  %v1219_v40 = vmul.f32 1e+09, %v3148_v37 }
  0xe6   : > { %v3159_v41 = vpop.f32.mrb[0].mxu1 }
  0xe7   : > { %v3161_v42 = vpop.f32.mrb[1].mxu1 }
  0xe8   : > { %v2743_v36 = vpack.i.bf16 %v3159_v41, %v3161_v42  ;;  %v2620_v44 = vpack.c.bf16 %v3159_v41, %v3161_v42 }
  0xea   : > { %2622 = vmatprep.subr.msk.bf16.mxu1 %vm3165_vm15, %v2620_v44  ;;  %v3175_v45 = vpop.f32.mrb[2].mxu1 }
  0xeb   : > { %2625 = vmatpush3.bf16.xpose.msk.msra.mxu1 %vm3165_vm15, %v2620_v44  ;;  %v3179_v46 = vpop.f32.mrb[3].mxu1  ;;  %v1221_v44 = vadd.f32 %v1219_v40, %v405_v43 }
  0xec   : > { %v2748_v47 = vpack.i.bf16 %v3175_v45, %v3179_v46  ;;  %v2626_v48 = vpack.c.bf16 %v3175_v45, %v3179_v46 }
  0xee   : > { %2628 = vmatprep.subr.msk.bf16.mxu1 %vm3165_vm15, %v2626_v48  ;;  %v3187_v49 = vpop.f32.mrb[4].mxu1 }
  0xef   : > { %v3189_v50 = vpop.f32.mrb[5].mxu1 }
  0xf0   : > { %v2753_v51 = vpack.i.bf16 %v3187_v49, %v3189_v50  ;;  %v2632_v52 = vpack.c.bf16 %v3187_v49, %v3189_v50 }
  0xf2   : > { %v3195_v53 = vpop.f32.mrb[6].mxu1 }
  0xf3   : > { %2631 = vmatpush3.bf16.xpose.msk.msra.mxu1 %vm3165_vm15, %v2626_v48  ;;  %v3199_v54 = vpop.f32.mrb[7].mxu1 }
  0xf4   : > { %2634 = vmatprep.subr.msk.bf16.mxu1 %vm3165_vm15, %v2632_v52  ;;  %v2758_v55 = vpack.i.bf16 %v3195_v53, %v3199_v54  ;;  %v2638_v56 = vpack.c.bf16 %v3195_v53, %v3199_v54 }
  0xf5   : > { %v623_v9 = vpop.xlane.xlu0 %622 }
  0xf6   : > { %v3207_v57 = vpop.f32.mrb[8].mxu1  ;;  %v627_v11 = vadd.f32 1e-08, %v623_v9 }
  0xf7   : > { %v3209_v58 = vpop.f32.mrb[9].mxu1 }
  0xf8   : > { %v2763_v59 = vpack.i.bf16 %v3207_v57, %v3209_v58  ;;  %v2644_v60 = vpack.c.bf16 %v3207_v57, %v3209_v58  ;;  %2798 = vrcp.f32 %v627_v11 }
  0xfa   : > { %v3215_v61 = vpop.f32.mrb[10].mxu1  ;;  %v626_v10 = vpop.xlane.xlu1 %625 }
  0xfb   : > { %2637 = vmatpush3.bf16.xpose.msk.msra.mxu1 %vm3165_vm15, %v2632_v52  ;;  %v3219_v62 = vpop.f32.mrb[11].mxu1  ;;  %v628_v12 = vadd.f32 1e-08, %v626_v10 }
  0xfc   : > { %2640 = vmatprep.subr.msk.bf16.mxu1 %vm3165_vm15, %v2638_v56  ;;  %v2768_v63 = vpack.i.bf16 %v3215_v61, %v3219_v62  ;;  %v2650_v2 = vpack.c.bf16 %v3215_v61, %v3219_v62 }
  0xfd   : > { %2800 = vrcp.f32 %v628_v12 }
  0xfe   : > { %v3227_v3 = vpop.f32.mrb[12].mxu1 }
  0xff   : > { %v3229_v4 = vpop.f32.mrb[13].mxu1 }
 0x100   : > { %v2773_v5 = vpack.i.bf16 %v3227_v3, %v3229_v4  ;;  %v2656_v6 = vpack.c.bf16 %v3227_v3, %v3229_v4 }
 0x102   : > { %v3235_v0 = vpop.f32.mrb[14].mxu1  ;;  %v2799_v13 = vpop.eup %2798 }
 0x103   : > { %2643 = vmatpush3.bf16.xpose.msk.msra.mxu1 %vm3165_vm15, %v2638_v56  ;;  %v3239_v7 = vpop.f32.mrb[15].mxu1 }
 0x104   : > { %2646 = vmatprep.subr.msk.bf16.mxu1 %vm3165_vm15, %v2644_v60  ;;  %v2778_v1 = vpack.i.bf16 %v3235_v0, %v3239_v7  ;;  %v2662_v8 = vpack.c.bf16 %v3235_v0, %v3239_v7 }
 0x107   : > { %v2801_v14 = vpop.eup %2800 }
 0x10b   : > { %2649 = vmatpush3.bf16.xpose.msk.msra.mxu1 %vm3165_vm15, %v2644_v60 }
 0x10c   : > { %2652 = vmatprep.subr.msk.bf16.mxu1 %vm3165_vm15, %v2650_v2 }
 0x113   : > { %2655 = vmatpush3.bf16.xpose.msk.msra.mxu1 %vm3165_vm15, %v2650_v2 }
 0x114   : > { %2658 = vmatprep.subr.msk.bf16.mxu1 %vm3165_vm15, %v2656_v6 }
 0x11b   : > { %2661 = vmatpush3.bf16.xpose.msk.msra.mxu1 %vm3165_vm15, %v2656_v6 }
 0x11c   : > { %2664 = vmatprep.subr.msk.bf16.mxu1 %vm3165_vm15, %v2662_v8 }
 0x123   : > { %2667 = vmatpush3.bf16.xpose.msk.msra.mxu1 %vm3165_vm15, %v2662_v8 }
 0x193   : > { %v2372_v15 = vpop.f32.mrb[0].mxu0 }
 0x194   : > { %v612_v16 = vpop.f32.mrb[1].mxu0  ;;  %v632_v18 = vmul.f32 %v2801_v14, %v2372_v15 }
 0x195   : > { %v631_v17 = vmul.f32 %v2799_v13, %v612_v16 }
 0x197   : > { %2381 = vmatprep.mubr.msk.f32.mxu0 %vm508_vm0, %v631_v17 }
 0x198   : > { %2382 = vmatmul.mubr.msk.f32.vlgmr.msra.gmra.mrb[2].mxu0 %vm508_vm0, %v632_v18 }
 0x26b   : > { %v2383_v19 = vpop.f32.mrb[2].mxu0 }
 0x26c   : > { %1040 = vrot.lane.b32.xlu1 %v2383_v19, %s2919_s12  ;;  %v709_v20 = vpop.f32.mrb[3].mxu0 }
 0x26d   : > { %1038 = vrot.lane.b32.xlu0 %v709_v20, %s2919_s12  ;;  %2448 = vmatprep.mubr.msk.f32.mxu1 %vm502_vm2, %v709_v20 }
 0x26e   : > { %2449 = vmatmul.mubr.msk.f32.vlgmr.msra.gmra.mrb[16].mxu1 %vm502_vm2, %v2383_v19 }
 0x270   : > { %1044 = vrot.lane.b32.xlu1 %v2383_v19, %s2917_s17 }
 0x271   : > { %1042 = vrot.lane.b32.xlu0 %v709_v20, %s2917_s17 }
 0x274   : > { %1048 = vrot.lane.b32.xlu1 %v2383_v19, %s2915_s15 }
 0x275   : > { %1046 = vrot.lane.b32.xlu0 %v709_v20, %s2915_s15 }
 0x278   : > { %2744 = vrot.lane.b32.xlu1 %v2743_v36, %s2919_s12  ;;  %v1222_v36 = vadd.f32 %v1220_v38, %v406_v39 }
 0x279   : > { %2749 = vrot.lane.b32.xlu0 %v2748_v47, %s2919_s12 }
 0x2de   : > { %v1041_v21 = vpop.permute.xlu1 %1040 }
 0x2df   : > { %v1039_v22 = vpop.permute.xlu0 %1038 }
 0x2e0   : > { %2451 = vmatprep.mubr.msk.f32.mxu1 %vm502_vm2, %v1039_v22 }
 0x2e1   : > { %2452 = vmatmul.mubr.msk.f32.gmra.mrb[18].mxu1 %vm502_vm2, %v1041_v21 }
 0x2e2   : > { %v1045_v23 = vpop.permute.xlu1 %1044 }
 0x2e3   : > { %v1043_v24 = vpop.permute.xlu0 %1042 }
 0x2e4   : > { %2454 = vmatprep.mubr.msk.f32.mxu1 %vm502_vm2, %v1043_v24 }
 0x2e5   : > { %2455 = vmatmul.mubr.msk.f32.gmra.mrb[20].mxu1 %vm502_vm2, %v1045_v23 }
 0x2e6   : > { %v1049_v25 = vpop.permute.xlu1 %1048 }
 0x2e7   : > { %v1047_v26 = vpop.permute.xlu0 %1046 }
 0x2e8   : > { %2457 = vmatprep.mubr.msk.f32.mxu1 %vm502_vm2, %v1047_v26 }
 0x2e9   : > { %2458 = vmatmul.mubr.msk.f32.gmra.mrb[22].mxu1 %vm502_vm2, %v1049_v25 }
 0x2ea   : > { %v2745_v27 = vpop.permute.xlu1 %2744 }
 0x2eb   : > { %v2747_v28 = vunpack.i.h.bf16 %v2745_v27  ;;  %v2746_v29 = vunpack.i.l.bf16 %v2745_v27  ;;  %v2750_v30 = vpop.permute.xlu0 %2749 }
 0x2ec   : > { %v2752_v31 = vunpack.i.h.bf16 %v2750_v30  ;;  %v2751_v32 = vunpack.i.l.bf16 %v2750_v30 }
 0x2ed   : > { %v2668_v33 = vpack.c.bf16 %v2747_v28, %v2746_v29 }
 0x2ee   : > { %v2672_v34 = vpack.c.bf16 %v2752_v31, %v2751_v32 }
 0x2ef   : > { %2669 = vmatprep.subr.bf16.mxu0 %v2668_v33 }
 0x2f0   : > { %2671 = vmatpush3.bf16.msra.mxu0 %v2668_v33 }
 0x2f1   : > { %2673 = vmatprep.subr.bf16.mxu0 %v2672_v34 }
 0x2f4   : > { %2675 = vmatpush3.bf16.msra.mxu0 %v2672_v34 }
 0x341   : > { %v2450_v47 = vpop.f32.mrb[16].mxu1 }
 0x342   : > { %v1224_v48 = vadd.f32 %v2450_v47, %v1222_v36  ;;  %v1180_v52 = vpop.f32.mrb[17].mxu1 }
 0x343   : > { %v1223_v56 = vadd.f32 %v1221_v44, %v1180_v52 }
 0x344   : > { %1233 = vmax.xlane.f32.xlu1 %v1224_v48 }
 0x345   : > { %1231 = vmax.xlane.f32.xlu0 %v1223_v56 }
 0x355   : > { %2754 = vrot.lane.b32.xlu1 %v2753_v51, %s2919_s12 }
 0x3b4   : > { %v2453_v35 = vpop.f32.mrb[18].mxu1 }
 0x3b5   : > { %v1226_v60 = vadd.f32 %v2453_v35, %v1222_v36  ;;  %v1190_v37 = vpop.f32.mrb[19].mxu1 }
 0x3b6   : > { %v1225_v6 = vadd.f32 %v1221_v44, %v1190_v37 }
 0x3b7   : > { %1237 = vmax.xlane.f32.xlu0 %v1226_v60 }
 0x3b8   : > { %v2456_v2 = vpop.f32.mrb[20].mxu1 }
 0x3b9   : > { %v1200_v8 = vpop.f32.mrb[21].mxu1  ;;  %v1228_v11 = vadd.f32 %v2456_v2, %v1222_v36 }
 0x3ba   : > { %v1227_v9 = vadd.f32 %v1221_v44, %v1200_v8 }
 0x3bb   : > { %1235 = vmax.xlane.f32.xlu0 %v1225_v6 }
 0x3bc   : > { %1239 = vmax.xlane.f32.xlu1 %v1227_v9  ;;  %v2459_v10 = vpop.f32.mrb[22].mxu1 }
 0x3bd   : > { %v1210_v12 = vpop.f32.mrb[23].mxu1  ;;  %v1230_v14 = vadd.f32 %v2459_v10, %v1222_v36 }
 0x3be   : > { %v1229_v13 = vadd.f32 %v1221_v44, %v1210_v12 }
 0x3bf   : > { %1241 = vmax.xlane.f32.xlu0 %v1228_v11 }
 0x3c0   : > { %1243 = vmax.xlane.f32.xlu1 %v1229_v13 }
 0x3c3   : > { %1245 = vmax.xlane.f32.xlu0 %v1230_v14 }
 0x3d1   : > { %v1234_v15 = vpop.xlane.xlu1 %1233  ;;  %2764 = vrot.lane.b32.xlu1 %v2763_v59, %s2919_s12 }
 0x3d2   : > { %v1232_v19 = vpop.xlane.xlu0 %1231  ;;  %v1248_v20 = vsub.f32 %v1224_v48, %v1234_v15 }
 0x3d3   : > { %v1247_v21 = vsub.f32 %v1223_v56, %v1232_v19 }
 0x3d4   : > { %v1257_v59 = vmul.f32 1.442695, %v1248_v20 }
 0x3d5   : > { %v2755_v51 = vpop.permute.xlu1 %2754  ;;  %2769 = vrot.lane.b32.xlu1 %v2768_v63, %s2919_s12  ;;  %v1255_v22 = vmul.f32 1.442695, %v1247_v21 }
 0x3d6   : > { %v2757_v16 = vunpack.i.h.bf16 %v2755_v51  ;;  %v2756_v17 = vunpack.i.l.bf16 %v2755_v51  ;;  %2802 = vpow2.f32 %v1257_v59 }
 0x3d7   : > { %2804 = vpow2.f32 %v1255_v22 }
 0x3d8   : > { %v2676_v18 = vpack.c.bf16 %v2757_v16, %v2756_v17 }
 0x3d9   : > { %2759 = vrot.lane.b32.xlu0 %v2758_v55, %s2919_s12 }
 0x3da   : > { %2677 = vmatprep.subr.bf16.mxu0 %v2676_v18 }
 0x3db   : > { %2679 = vmatpush3.bf16.msra.mxu0 %v2676_v18 }
 0x3e0   : > { %v3309_v23 = vpop.eup %2802 }
 0x3e1   : > { %v2805_v63 = vpop.eup %2804 }
 0x3f8   : > { %1273 = vadd.xlane.f32.xlu0 %v3309_v23 }
 0x3f9   : > { %1271 = vadd.xlane.f32.xlu1 %v2805_v63 }
 0x444   : > { %v1238_v24 = vpop.xlane.xlu0 %1237 }
 0x445   : > { %v1250_v25 = vsub.f32 %v1226_v60, %v1238_v24 }
 0x447   : > { %v1261_v26 = vmul.f32 1.442695, %v1250_v25 }
 0x448   : > { %v1236_v27 = vpop.xlane.xlu0 %1235 }
 0x449   : > { %2806 = vpow2.f32 %v1261_v26  ;;  %v1249_v55 = vsub.f32 %v1225_v6, %v1236_v27  ;;  %v1240_v28 = vpop.xlane.xlu1 %1239 }
 0x44a   : > { %v1251_v29 = vsub.f32 %v1227_v9, %v1240_v28 }
 0x44b   : > { %v1259_v30 = vmul.f32 1.442695, %v1249_v55 }
 0x44c   : > { %v1263_v31 = vmul.f32 1.442695, %v1251_v29  ;;  %v1242_v32 = vpop.xlane.xlu0 %1241 }
 0x44d   : > { %2808 = vpow2.f32 %v1259_v30  ;;  %v1252_v33 = vsub.f32 %v1228_v11, %v1242_v32  ;;  %v1244_v34 = vpop.xlane.xlu1 %1243 }
 0x44e   : > { %2810 = vpow2.f32 %v1263_v31  ;;  %v1253_v39 = vsub.f32 %v1229_v13, %v1244_v34 }
 0x44f   : > { %v1265_v38 = vmul.f32 1.442695, %v1252_v33 }
 0x450   : > { %v1246_v40 = vpop.xlane.xlu0 %1245  ;;  %v1267_v48 = vmul.f32 1.442695, %v1253_v39 }
 0x451   : > { %2812 = vpow2.f32 %v1265_v38  ;;  %v1254_v43 = vsub.f32 %v1230_v14, %v1246_v40  ;;  %v2765_v36 = vpop.permute.xlu1 %2764 }
 0x452   : > { %v2767_v52 = vunpack.i.h.bf16 %v2765_v36  ;;  %v2766_v35 = vunpack.i.l.bf16 %v2765_v36 }
 0x453   : > { %v3312_v44 = vpop.eup %2806  ;;  %v1269_v47 = vmul.f32 1.442695, %v1254_v43 }
 0x454   : > { %1277 = vadd.xlane.f32.xlu0 %v3312_v44  ;;  %v2760_v56 = vpop.permute.xlu0 %2759  ;;  %v2684_v10 = vpack.c.bf16 %v2767_v52, %v2766_v35 }
 0x455   : > { %2814 = vpow2.f32 %v1269_v47  ;;  %v2762_v60 = vunpack.i.h.bf16 %v2760_v56  ;;  %v2761_v37 = vunpack.i.l.bf16 %v2760_v56  ;;  %v2770_v2 = vpop.permute.xlu1 %2769 }
 0x456   : > { %2816 = vpow2.f32 %v1267_v48  ;;  %v2772_v11 = vunpack.i.h.bf16 %v2770_v2  ;;  %v2771_v12 = vunpack.i.l.bf16 %v2770_v2 }
 0x457   : > { %v2809_v6 = vpop.eup %2808  ;;  %v2680_v8 = vpack.c.bf16 %v2762_v60, %v2761_v37 }
 0x458   : > { %v3315_v9 = vpop.eup %2810  ;;  %1275 = vadd.xlane.f32.xlu0 %v2809_v6  ;;  %v2688_v14 = vpack.c.bf16 %v2772_v11, %v2771_v12 }
 0x459   : > { %2681 = vmatprep.subr.bf16.mxu0 %v2680_v8  ;;  %1279 = vadd.xlane.f32.xlu1 %v3315_v9 }
 0x45a   : > { %2683 = vmatpush3.bf16.msra.mxu0 %v2680_v8  ;;  %v1486_v8 = vld [vmem:[%s3543_s4] sm:$0xff] }
 0x45b   : > { %v2813_v13 = vpop.eup %2812  ;;  %2685 = vmatprep.subr.bf16.mxu0 %v2684_v10 }
 0x45c   : > { %1281 = vadd.xlane.f32.xlu0 %v2813_v13 }
 0x45e   : > { %2687 = vmatpush3.bf16.msra.mxu0 %v2684_v10 }
 0x45f   : > { %v2815_v15 = vpop.eup %2814  ;;  %2689 = vmatprep.subr.bf16.mxu0 %v2688_v14 }
 0x460   : > { %1285 = vadd.xlane.f32.xlu0 %v2815_v15  ;;  %v2817_v51 = vpop.eup %2816 }
 0x462   : > { %2691 = vmatpush3.bf16.msra.mxu0 %v2688_v14 }
 0x464   : > { %1283 = vadd.xlane.f32.xlu0 %v2817_v51 }
 0x46a   : > { %2779 = vrot.lane.b32.xlu1 %v2778_v1, %s2919_s12 }
 0x47a   : > { %2774 = vrot.lane.b32.xlu0 %v2773_v5, %s2919_s12 }
 0x485   : > { %v1274_v19 = vpop.xlane.xlu0 %1273 }
 0x486   : > { %v1272_v16 = vpop.xlane.xlu1 %1271 }
 0x487   : > { %2818 = vrcp.f32 %v1272_v16 }
 0x488   : > { %2820 = vrcp.f32 %v1274_v19 }
 0x491   : > { %v2819_v17 = vpop.eup %2818 }
 0x492   : > { %v1295_v18 = vmul.f32 %v2819_v17, %v2805_v63  ;;  %v2821_v30 = vpop.eup %2820 }
 0x493   : > { %v1296_v32 = vmul.f32 %v2821_v30, %v3309_v23  ;;  %v1492_v30 = vld [vmem:[%s3543_s4 + $0x30] sm:$0xff] }
 0x494   : > { %2492 = vmatprep.mubr.f32.mxu0 %v1295_v18 }
 0x4e1   : > { %v1278_v20 = vpop.xlane.xlu0 %1277 }
 0x4e5   : > { %v1276_v21 = vpop.xlane.xlu0 %1275 }
 0x4e6   : > { %v1280_v22 = vpop.xlane.xlu1 %1279  ;;  %2822 = vrcp.f32 %v1276_v21 }
 0x4e7   : > { %2824 = vrcp.f32 %v1278_v20 }
 0x4e8   : > { %2826 = vrcp.f32 %v1280_v22 }
 0x4e9   : > { %v1282_v59 = vpop.xlane.xlu0 %1281 }
 0x4ea   : > { %v2780_v26 = vpop.permute.xlu1 %2779  ;;  %2828 = vrcp.f32 %v1282_v59 }
 0x4eb   : > { %v2782_v27 = vunpack.i.h.bf16 %v2780_v26  ;;  %v2781_v55 = vunpack.i.l.bf16 %v2780_v26 }
 0x4ed   : > { %v1286_v24 = vpop.xlane.xlu0 %1285  ;;  %v2696_v63 = vpack.c.bf16 %v2782_v27, %v2781_v55  ;;  %v1487_v55 = vld [vmem:[%s3543_s4 + $0x8] sm:$0xff] }
 0x4f0   : > { %v2823_v31 = vpop.eup %2822 }
 0x4f1   : > { %v1284_v25 = vpop.xlane.xlu0 %1283  ;;  %v2825_v33 = vpop.eup %2824  ;;  %v1297_v34 = vmul.f32 %v2823_v31, %v2809_v6  ;;  %v1493_v31 = vld [vmem:[%s3543_s4 + $0x38] sm:$0xff] }
 0x4f2   : > { %2830 = vrcp.f32 %v1284_v25  ;;  %v2827_v38 = vpop.eup %2826  ;;  %v1298_v39 = vmul.f32 %v2825_v33, %v3312_v44  ;;  %v1495_v33 = vld [vmem:[%s3543_s4 + $0x48] sm:$0xff] }
 0x4f3   : > { %2832 = vrcp.f32 %v1286_v24  ;;  %v1299_v43 = vmul.f32 %v2827_v38, %v3315_v9  ;;  %v1497_v38 = vld [vmem:[%s3543_s4 + $0x58] sm:$0xff] }
 0x4f4   : > { %v2829_v40 = vpop.eup %2828 }
 0x4f5   : > { %v2775_v1 = vpop.permute.xlu0 %2774  ;;  %v1300_v47 = vmul.f32 %v2829_v40, %v2813_v13  ;;  %v2128_v13 = vld [vmem:[%s3546_s7] ss:$0 sm:$0xff]  ;;  %v1499_v40 = vld [vmem:[%s3543_s4 + $0x68] sm:$0xff] }
 0x4f6   : > { %v2777_v28 = vunpack.i.h.bf16 %v2775_v1  ;;  %v2776_v5 = vunpack.i.l.bf16 %v2775_v1 }
 0x4f8   : > { %v2692_v29 = vpack.c.bf16 %v2777_v28, %v2776_v5  ;;  %v1488_v28 = vld [vmem:[%s3543_s4 + $0x10] sm:$0xff]  ;;  %v1489_v5 = vld [vmem:[%s3543_s4 + $0x18] sm:$0xff] }
 0x4fa   : > { %2693 = vmatprep.subr.bf16.mxu0 %v2692_v29 }
 0x4fb   : > { %2695 = vmatpush3.bf16.msra.mxu0 %v2692_v29  ;;  %v1490_v29 = vld [vmem:[%s3543_s4 + $0x20] sm:$0xff] }
 0x4fc   : > { %2697 = vmatprep.subr.bf16.mxu0 %v2696_v63  ;;  %v2831_v36 = vpop.eup %2830 }
 0x4fd   : > { %v2833_v48 = vpop.eup %2832  ;;  %v1301_v52 = vmul.f32 %v2831_v36, %v2817_v51  ;;  %v1501_v36 = vld [vmem:[%s3543_s4 + $0x78] sm:$0xff] }
 0x4fe   : > { %v1302_v56 = vmul.f32 %v2833_v48, %v2815_v15 }
 0x4ff   : > { %2699 = vmatpush3.bf16.msra.mxu0 %v2696_v63  ;;  %v1491_v63 = vld [vmem:[%s3543_s4 + $0x28] sm:$0xff] }
 0x502   : > { %2493 = vmatmul.mubr.f32.vlgmr.msra.gmra.mrb[4].mxu0 %v1296_v32  ;;  %v1494_v32 = vld [vmem:[%s3543_s4 + $0x40] sm:$0xff] }
 0x503   : > { %2495 = vmatprep.mubr.f32.mxu0 %v1297_v34  ;;  %v1496_v34 = vld [vmem:[%s3543_s4 + $0x50] sm:$0xff] }
 0x506   : > { %2496 = vmatmul.mubr.f32.gmra.mrb[6].mxu0 %v1298_v39  ;;  %v1498_v39 = vld [vmem:[%s3543_s4 + $0x60] sm:$0xff] }
 0x507   : > { %2498 = vmatprep.mubr.f32.mxu0 %v1299_v43  ;;  %v1500_v43 = vld [vmem:[%s3543_s4 + $0x70] sm:$0xff] }
 0x50a   : > { %2499 = vmatmul.mubr.f32.gmra.mrb[8].mxu0 %v1300_v47 }
 0x50b   : > { %2501 = vmatprep.mubr.f32.mxu0 %v1301_v52 }
 0x50e   : > { %2502 = vmatmul.mubr.f32.gmra.mrb[10].mxu0 %v1302_v56 }
 0x50f   : > { %2508 = vmatprep.mubr.msk.f32.mxu0 %vm502_vm2, %v1486_v8  ;;  %v1776_v8 = vld [vmem:[%s3547_s8 + $0x8] sm:$0xff] }
 0x5d5   : > { %v2494_v23 = vpop.f32.mrb[4].mxu0 }
 0x5d6   : > { %v1417_v35 = vpop.f32.mrb[5].mxu0 }
 0x5d9   : > { %v2497_v60 = vpop.f32.mrb[6].mxu0 }
 0x5da   : > { %v1427_v37 = vpop.f32.mrb[7].mxu0 }
 0x5db   : > { %v2783_v2 = vpack.i.bf16 %v2497_v60, %v1427_v37 }
 0x5dd   : > { %2784 = vrot.lane.b32.xlu1 %v2783_v2, %s2906_s20  ;;  %v2500_v44 = vpop.f32.mrb[8].mxu0 }
 0x5de   : > { %v1437_v6 = vpop.f32.mrb[9].mxu0 }
 0x5df   : > { %v2788_v9 = vpack.i.bf16 %v2500_v44, %v1437_v6  ;;  %v1775_v6 = vld [vmem:[%s3547_s8] sm:$0xff] }
 0x5e1   : > { %2789 = vrot.lane.b32.xlu1 %v2788_v9, %s2909_s28  ;;  %v2503_v10 = vpop.f32.mrb[10].mxu0  ;;  %v1777_v9 = vld [vmem:[%s3547_s8 + $0x10] sm:$0xff] }
 0x5e2   : > { %v1447_v11 = vpop.f32.mrb[11].mxu0 }
 0x5e3   : > { %v2793_v12 = vpack.i.bf16 %v2503_v10, %v1447_v11  ;;  %v2704_v11 = vpack.c.bf16 %v1776_v8, %v1775_v6 }
 0x5e5   : > { %2794 = vrot.lane.b32.xlu1 %v2793_v12, %s2911_s30  ;;  %v1778_v12 = vld [vmem:[%s3547_s8 + $0x18] sm:$0xff]  ;;  %2705 = vmatprep.subr.bf16.mxu1 %v2704_v11 }
 0x5e6   : > { %2707 = vmatpush3.bf16.msra.mxu1 %v2704_v11 }
 0x5e9   : > { %921 = vrot.lane.b32.xlu1 %v2128_v13, %s2909_s28 }
 0x64f   : > { %v2785_v14 = vpop.permute.xlu1 %2784 }
 0x650   : > { %v2787_v51 = vunpack.i.h.bf16 %v2785_v14  ;;  %v2786_v16 = vunpack.i.l.bf16 %v2785_v14  ;;  %v2708_v14 = vpack.c.bf16 %v1778_v12, %v1777_v9 }
 0x652   : > { %v1481_v20 = vsel %vm502_vm2, %v2494_v23, %v2787_v51  ;;  %v1480_v21 = vsel %vm502_vm2, %v1417_v35, %v2786_v16  ;;  %v1780_v51 = vld [vmem:[%s3547_s8 + $0x28] sm:$0xff]  ;;  %2709 = vmatprep.subr.bf16.mxu1 %v2708_v14 }
 0x653   : > { %v2790_v15 = vpop.permute.xlu1 %2789  ;;  %2711 = vmatpush3.bf16.msra.mxu1 %v2708_v14 }
 0x654   : > { %v2792_v17 = vunpack.i.h.bf16 %v2790_v15  ;;  %v2791_v18 = vunpack.i.l.bf16 %v2790_v15  ;;  %v1779_v15 = vld [vmem:[%s3547_s8 + $0x20] sm:$0xff] }
 0x656   : > { %v1483_v24 = vsel %vm508_vm0, %v1481_v20, %v2792_v17  ;;  %v1482_v25 = vsel %vm508_vm0, %v1480_v21, %v2791_v18  ;;  %v2712_v17 = vpack.c.bf16 %v1780_v51, %v1779_v15  ;;  %v1782_v20 = vld [vmem:[%s3547_s8 + $0x38] sm:$0xff] }
 0x657   : > { %v2795_v19 = vpop.permute.xlu1 %2794 }
 0x658   : > { %v2797_v59 = vunpack.i.h.bf16 %v2795_v19  ;;  %v2796_v22 = vunpack.i.l.bf16 %v2795_v19  ;;  %v1781_v19 = vld [vmem:[%s3547_s8 + $0x30] sm:$0xff]  ;;  %2713 = vmatprep.subr.bf16.mxu1 %v2712_v17 }
 0x659   : > { %2715 = vmatpush3.bf16.msra.mxu1 %v2712_v17 }
 0x65a   : > { %v1484_v26 = vsel %vm514_vm5, %v1482_v25, %v2796_v22  ;;  %v1485_v1 = vsel %vm514_vm5, %v1483_v24, %v2797_v59  ;;  %v2716_v59 = vpack.c.bf16 %v1782_v20, %v1781_v19 }
 0x65b   : > { %v2700_v27 = vpack.c.bf16 %v1485_v1, %v1484_v26  ;;  %v922_v24 = vpop.permute.xlu1 %921 }
 0x65c   : > { %2717 = vmatprep.subr.bf16.mxu1 %v2716_v59  ;;  %v925_v25 = vadd.f32 %v3159_v41, %v922_v24  ;;  %v924_v26 = vadd.f32 %v922_v24, %v3161_v42  ;;  %v930_v42 = vadd.f32 %v922_v24, %v3199_v54 }
 0x65d   : > { %2701 = vmatprep.subr.bf16.mxu0 %v2700_v27  ;;  %2719 = vmatpush3.bf16.msra.mxu1 %v2716_v59 }
 0x65e   : > { %2703 = vmatpush3.bf16.msra.mxu0 %v2700_v27  ;;  %v2130_v1 = vmul.f32 -1.442695, %v925_v25  ;;  %v927_v27 = vadd.f32 %v3175_v45, %v922_v24 }
 0x660   : > { %2834 = vpow2.f32 %v2130_v1 }
 0x661   : > { %2509 = vmatmul.mubr.msk.f32.vlgmr.msra.gmra.mrb[12].mxu0 %vm502_vm2, %v1487_v55  ;;  %v2129_v55 = vmul.f32 -1.442695, %v924_v26 }
 0x662   : > { %2511 = vmatprep.mubr.msk.f32.mxu0 %vm502_vm2, %v1488_v28  ;;  %v926_v28 = vadd.f32 %v922_v24, %v3179_v46  ;;  %v933_v46 = vadd.f32 %v3207_v57, %v922_v24 }
 0x663   : > { %2836 = vpow2.f32 %v2129_v55 }
 0x665   : > { %2512 = vmatmul.mubr.msk.f32.gmra.mrb[14].mxu0 %vm502_vm2, %v1489_v5  ;;  %v929_v5 = vadd.f32 %v3187_v49, %v922_v24  ;;  %v932_v49 = vadd.f32 %v922_v24, %v3209_v58  ;;  %v937_v58 = vadd.f32 %v3227_v3, %v922_v24  ;;  %v938_v3 = vadd.f32 %v922_v24, %v3239_v7 }
 0x666   : > { %2514 = vmatprep.mubr.msk.f32.mxu0 %vm502_vm2, %v1490_v29  ;;  %v2132_v29 = vmul.f32 -1.442695, %v927_v27 }
 0x667   : > { %v2143_v11 = vmul.f32 -1.442695, %v938_v3 }
 0x668   : > { %2838 = vpow2.f32 %v2132_v29 }
 0x669   : > { %2515 = vmatmul.mubr.msk.f32.gmra.mrb[16].mxu0 %vm502_vm2, %v1491_v63  ;;  %v2131_v63 = vmul.f32 -1.442695, %v926_v28 }
 0x66a   : > { %2517 = vmatprep.mubr.msk.f32.mxu0 %vm502_vm2, %v1492_v30  ;;  %v928_v30 = vadd.f32 %v922_v24, %v3189_v50  ;;  %v2138_v50 = vmul.f32 -1.442695, %v933_v46 }
 0x66b   : > { %2840 = vpow2.f32 %v2131_v63 }
 0x66c   : > { %v2133_v41 = vmul.f32 -1.442695, %v928_v30 }
 0x66d   : > { %2518 = vmatmul.mubr.msk.f32.gmra.mrb[18].mxu0 %vm502_vm2, %v1493_v31  ;;  %v931_v31 = vadd.f32 %v3195_v53, %v922_v24  ;;  %v935_v53 = vadd.f32 %v3215_v61, %v922_v24 }
 0x66e   : > { %2520 = vmatprep.mubr.msk.f32.mxu0 %vm502_vm2, %v1494_v32  ;;  %v2134_v32 = vmul.f32 -1.442695, %v929_v5 }
 0x66f   : > { %v2136_v45 = vmul.f32 -1.442695, %v931_v31  ;;  %v2140_v57 = vmul.f32 -1.442695, %v935_v53 }
 0x670   : > { %2842 = vpow2.f32 %v2134_v32 }
 0x671   : > { %2521 = vmatmul.mubr.msk.f32.gmra.mrb[20].mxu0 %vm502_vm2, %v1495_v33  ;;  %2844 = vpow2.f32 %v2133_v41  ;;  %v2135_v33 = vmul.f32 -1.442695, %v930_v42 }
 0x672   : > { %2523 = vmatprep.mubr.msk.f32.mxu0 %vm502_vm2, %v1496_v34  ;;  %v2835_v34 = vpop.eup %2834  ;;  %2846 = vpow2.f32 %v2136_v45 }
 0x673   : > { %2848 = vpow2.f32 %v2135_v33 }
 0x674   : > { %2850 = vpow2.f32 %v2138_v50 }
 0x675   : > { %2524 = vmatmul.mubr.msk.f32.gmra.mrb[22].mxu0 %vm502_vm2, %v1497_v38  ;;  %v2837_v38 = vpop.eup %2836 }
 0x676   : > { %2526 = vmatprep.mubr.msk.f32.mxu0 %vm502_vm2, %v1498_v39  ;;  %v2137_v39 = vmul.f32 -1.442695, %v932_v49  ;;  %v2839_v54 = vpop.eup %2838 }
 0x678   : > { %2852 = vpow2.f32 %v2137_v39 }
 0x679   : > { %2527 = vmatmul.mubr.msk.f32.gmra.mrb[24].mxu0 %vm502_vm2, %v1499_v40  ;;  %v934_v40 = vadd.f32 %v922_v24, %v3219_v62  ;;  %v2142_v62 = vmul.f32 -1.442695, %v937_v58 }
 0x67a   : > { %2529 = vmatprep.mubr.msk.f32.mxu0 %vm502_vm2, %v1500_v43  ;;  %v989_v43 = vadd.f32 1.0, %v2835_v34 }
 0x67c   : > { %2854 = vrcp.f32 %v989_v43 }
 0x67d   : > { %2530 = vmatmul.mubr.msk.f32.gmra.mrb[26].mxu0 %vm502_vm2, %v1501_v36  ;;  %v988_v36 = vadd.f32 1.0, %v2837_v38 }
 0x67f   : > { %2856 = vrcp.f32 %v988_v36 }
 0x680   : > { %2858 = vpow2.f32 %v2140_v57 }
 0x734   : > { %v2510_v47 = vpop.f32.mrb[12].mxu0 }
 0x735   : > { %1713 = vrot.lane.b32.xlu1 %v2510_v47, %s2909_s28  ;;  %v1616_v48 = vpop.f32.mrb[13].mxu0  ;;  %v2841_v47 = vpop.eup %2840 }
 0x736   : > { %1711 = vrot.lane.b32.xlu0 %v1616_v48, %s2909_s28  ;;  %v2139_v48 = vmul.f32 -1.442695, %v934_v40  ;;  %v990_v61 = vadd.f32 1.0, %v2841_v47 }
 0x738   : > { %v2513_v52 = vpop.f32.mrb[14].mxu0  ;;  %2860 = vpow2.f32 %v2139_v48 }
 0x739   : > { %1717 = vrot.lane.b32.xlu1 %v2513_v52, %s2909_s28  ;;  %v1626_v56 = vpop.f32.mrb[15].mxu0  ;;  %v2843_v52 = vpop.eup %2842 }
 0x73a   : > { %1715 = vrot.lane.b32.xlu0 %v1626_v56, %s2909_s28  ;;  %v991_v56 = vadd.f32 1.0, %v2839_v54 }
 0x73c   : > { %v2516_v23 = vpop.f32.mrb[16].mxu0  ;;  %2862 = vrcp.f32 %v991_v56 }
 0x73d   : > { %1721 = vrot.lane.b32.xlu1 %v2516_v23, %s2909_s28  ;;  %v1636_v35 = vpop.f32.mrb[17].mxu0  ;;  %v936_v23 = vadd.f32 %v922_v24, %v3229_v4  ;;  %2864 = vrcp.f32 %v990_v61 }
 0x73e   : > { %1719 = vrot.lane.b32.xlu0 %v1636_v35, %s2909_s28  ;;  %v2845_v35 = vpop.eup %2844  ;;  %2866 = vpow2.f32 %v2142_v62 }
 0x73f   : > { %v992_v6 = vadd.f32 1.0, %v2845_v35 }
 0x740   : > { %v2519_v60 = vpop.f32.mrb[18].mxu0 }
 0x741   : > { %1725 = vrot.lane.b32.xlu1 %v2519_v60, %s2909_s28  ;;  %v1646_v37 = vpop.f32.mrb[19].mxu0  ;;  %v2847_v60 = vpop.eup %2846 }
 0x742   : > { %1723 = vrot.lane.b32.xlu0 %v1646_v37, %s2909_s28  ;;  %v993_v37 = vadd.f32 1.0, %v2843_v52  ;;  %v2849_v8 = vpop.eup %2848  ;;  %v995_v9 = vadd.f32 1.0, %v2847_v60 }
 0x744   : > { %v2522_v2 = vpop.f32.mrb[20].mxu0  ;;  %2868 = vrcp.f32 %v993_v37 }
 0x745   : > { %1729 = vrot.lane.b32.xlu1 %v2522_v2, %s2909_s28  ;;  %v1656_v44 = vpop.f32.mrb[21].mxu0  ;;  %v939_v2 = vadd.f32 %v3235_v0, %v922_v24 }
 0x746   : > { %1727 = vrot.lane.b32.xlu0 %v1656_v44, %s2909_s28  ;;  %v2141_v44 = vmul.f32 -1.442695, %v936_v23 }
 0x747   : > { %v2144_v4 = vmul.f32 -1.442695, %v939_v2 }
 0x748   : > { %v2525_v10 = vpop.f32.mrb[22].mxu0  ;;  %2870 = vpow2.f32 %v2141_v44 }
 0x749   : > { %1733 = vrot.lane.b32.xlu1 %v2525_v10, %s2909_s28  ;;  %v1666_v13 = vpop.f32.mrb[23].mxu0  ;;  %v2851_v10 = vpop.eup %2850  ;;  %2872 = vrcp.f32 %v992_v6 }
 0x74a   : > { %1731 = vrot.lane.b32.xlu0 %v1666_v13, %s2909_s28  ;;  %v2853_v12 = vpop.eup %2852  ;;  %v994_v13 = vadd.f32 1.0, %v2849_v8  ;;  %2874 = vrcp.f32 %v995_v9 }
 0x74b   : > { %v2855_v14 = vpop.eup %2854  ;;  %2876 = vpow2.f32 %v2144_v4  ;;  %v996_v20 = vadd.f32 1.0, %v2853_v12 }
 0x74c   : > { %v2528_v16 = vpop.f32.mrb[24].mxu0  ;;  %v2857_v0 = vpop.eup %2856  ;;  %2878 = vpow2.f32 %v2143_v11 }
 0x74d   : > { %1737 = vrot.lane.b32.xlu1 %v2528_v16, %s2909_s28  ;;  %v1676_v18 = vpop.f32.mrb[25].mxu0  ;;  %v2859_v7 = vpop.eup %2858  ;;  %2880 = vrcp.f32 %v994_v13 }
 0x74e   : > { %1735 = vrot.lane.b32.xlu0 %v1676_v18, %s2909_s28  ;;  %v997_v18 = vadd.f32 1.0, %v2851_v10  ;;  %v2861_v19 = vpop.eup %2860  ;;  %v999_v27 = vadd.f32 1.0, %v2859_v7 }
 0x74f   : > { %v998_v28 = vadd.f32 1.0, %v2861_v19 }
 0x750   : > { %v2531_v21 = vpop.f32.mrb[26].mxu0  ;;  %2882 = vrcp.f32 %v997_v18 }
 0x751   : > { %1741 = vrot.lane.b32.xlu1 %v2531_v21, %s2909_s28  ;;  %v1686_v22 = vpop.f32.mrb[27].mxu0  ;;  %v2863_v21 = vpop.eup %2862  ;;  %2884 = vrcp.f32 %v996_v20 }
 0x752   : > { %1739 = vrot.lane.b32.xlu0 %v1686_v22, %s2909_s28  ;;  %v2865_v22 = vpop.eup %2864  ;;  %2886 = vrcp.f32 %v999_v27 }
 0x753   : > { %v2867_v26 = vpop.eup %2866  ;;  %2888 = vrcp.f32 %v998_v28 }
 0x754   : > { %v2869_v55 = vpop.eup %2868  ;;  %v1001_v42 = vadd.f32 1.0, %v2867_v26 }
 0x755   : > { %v2871_v5 = vpop.eup %2870 }
 0x756   : > { %v2873_v63 = vpop.eup %2872  ;;  %v1000_v46 = vadd.f32 1.0, %v2871_v5  ;;  %2890 = vrcp.f32 %v1001_v42 }
 0x757   : > { %v2875_v32 = vpop.eup %2874 }
 0x758   : > { %v2877_v45 = vpop.eup %2876  ;;  %2892 = vrcp.f32 %v1000_v46 }
 0x759   : > { %v2879_v49 = vpop.eup %2878  ;;  %v1003_v39 = vadd.f32 1.0, %v2877_v45 }
 0x75a   : > { %v2881_v34 = vpop.eup %2880  ;;  %v1002_v40 = vadd.f32 1.0, %v2879_v49 }
 0x75b   : > { %v2883_v43 = vpop.eup %2882  ;;  %2894 = vrcp.f32 %v1003_v39 }
 0x75c   : > { %v2885_v36 = vpop.eup %2884  ;;  %2896 = vrcp.f32 %v1002_v40 }
 0x75d   : > { %v2887_v48 = vpop.eup %2886 }
 0x75e   : > { %v2889_v56 = vpop.eup %2888 }
 0x760   : > { %v2891_v62 = vpop.eup %2890 }
 0x762   : > { %v2893_v37 = vpop.eup %2892 }
 0x765   : > { %v2895_v6 = vpop.eup %2894 }
 0x766   : > { %v2897_v9 = vpop.eup %2896 }
 0x7a7   : > { %v1714_v15 = vpop.permute.xlu1 %1713 }
 0x7a8   : > { %v1760_v51 = vmul.f32 %v2855_v14, %v1714_v15  ;;  %v1712_v16 = vpop.permute.xlu0 %1711 }
 0x7a9   : > { %v1759_v17 = vmul.f32 %v2857_v0, %v1712_v16 }
 0x7aa   : > { %1808 = vrot.lane.b32.xlu1 %v1760_v51, %s2917_s17 }
 0x7ab   : > { %v1718_v59 = vpop.permute.xlu1 %1717  ;;  %1806 = vrot.lane.b32.xlu0 %v1759_v17, %s2917_s17 }
 0x7ac   : > { %v1762_v24 = vmul.f32 %v2863_v21, %v1718_v59  ;;  %v1716_v25 = vpop.permute.xlu0 %1715 }
 0x7ad   : > { %v1761_v1 = vmul.f32 %v2865_v22, %v1716_v25  ;;  %v2185_v25 = vld [vmem:[%s3548_s9] ss:$0 sm:$0xff] }
 0x7ae   : > { %1812 = vrot.lane.b32.xlu1 %v1762_v24, %s2917_s17 }
 0x7af   : > { %v1722_v29 = vpop.permute.xlu1 %1721  ;;  %1810 = vrot.lane.b32.xlu0 %v1761_v1, %s2917_s17 }
 0x7b0   : > { %v1764_v30 = vmul.f32 %v2869_v55, %v1722_v29  ;;  %v1720_v31 = vpop.permute.xlu0 %1719 }
 0x7b1   : > { %v1763_v41 = vmul.f32 %v2873_v63, %v1720_v31 }
 0x7b2   : > { %1816 = vrot.lane.b32.xlu1 %v1764_v30, %s2917_s17 }
 0x7b3   : > { %v1726_v33 = vpop.permute.xlu1 %1725  ;;  %1814 = vrot.lane.b32.xlu0 %v1763_v41, %s2917_s17 }
 0x7b4   : > { %v1766_v38 = vmul.f32 %v2875_v32, %v1726_v33  ;;  %v1724_v50 = vpop.permute.xlu0 %1723 }
 0x7b5   : > { %v1765_v53 = vmul.f32 %v2881_v34, %v1724_v50 }
 0x7b6   : > { %1820 = vrot.lane.b32.xlu1 %v1766_v38, %s2917_s17 }
 0x7b7   : > { %v1730_v54 = vpop.permute.xlu1 %1729  ;;  %1818 = vrot.lane.b32.xlu0 %v1765_v53, %s2917_s17 }
 0x7b8   : > { %v1768_v47 = vmul.f32 %v2883_v43, %v1730_v54  ;;  %v1728_v57 = vpop.permute.xlu0 %1727 }
 0x7b9   : > { %v1767_v58 = vmul.f32 %v2885_v36, %v1728_v57 }
 0x7ba   : > { %1824 = vrot.lane.b32.xlu1 %v1768_v47, %s2917_s17 }
 0x7bb   : > { %v1734_v52 = vpop.permute.xlu1 %1733  ;;  %1822 = vrot.lane.b32.xlu0 %v1767_v58, %s2917_s17 }
 0x7bc   : > { %v1770_v23 = vmul.f32 %v2887_v48, %v1734_v52  ;;  %v1732_v61 = vpop.permute.xlu0 %1731 }
 0x7bd   : > { %v1769_v35 = vmul.f32 %v2889_v56, %v1732_v61 }
 0x7be   : > { %1828 = vrot.lane.b32.xlu1 %v1770_v23, %s2917_s17 }
 0x7bf   : > { %v1738_v60 = vpop.permute.xlu1 %1737  ;;  %1826 = vrot.lane.b32.xlu0 %v1769_v35, %s2917_s17 }
 0x7c0   : > { %v1772_v2 = vmul.f32 %v2891_v62, %v1738_v60  ;;  %v1736_v44 = vpop.permute.xlu0 %1735 }
 0x7c1   : > { %v1771_v3 = vmul.f32 %v2893_v37, %v1736_v44 }
 0x7c2   : > { %1832 = vrot.lane.b32.xlu1 %v1772_v2, %s2917_s17 }
 0x7c3   : > { %v1742_v8 = vpop.permute.xlu1 %1741  ;;  %1830 = vrot.lane.b32.xlu0 %v1771_v3, %s2917_s17 }
 0x7c4   : > { %v1774_v4 = vmul.f32 %v2895_v6, %v1742_v8  ;;  %v1740_v10 = vpop.permute.xlu0 %1739 }
 0x7c5   : > { %v1773_v11 = vmul.f32 %v2897_v9, %v1740_v10 }
 0x7c6   : > { %1836 = vrot.lane.b32.xlu1 %v1774_v4, %s2917_s17 }
 0x7c7   : > { %1834 = vrot.lane.b32.xlu0 %v1773_v11, %s2917_s17 }
 0x81c   : > { %v1809_v12 = vpop.permute.xlu1 %1808 }
 0x81d   : > { %v1807_v13 = vpop.permute.xlu0 %1806 }
 0x81e   : > { %2548 = vmatprep.mubr.msk.f32.mxu1 %vm520_vm7, %v1807_v13 }
 0x81f   : > { %2549 = vmatmul.mubr.msk.f32.vlgmr.msra.gmra.mrb[24].mxu1 %vm520_vm7, %v1809_v12 }
 0x820   : > { %v1813_v14 = vpop.permute.xlu1 %1812 }
 0x821   : > { %v1811_v15 = vpop.permute.xlu0 %1810 }
 0x822   : > { %2551 = vmatprep.mubr.msk.f32.mxu1 %vm520_vm7, %v1811_v15 }
 0x823   : > { %2552 = vmatmul.mubr.msk.f32.gmra.mrb[26].mxu1 %vm520_vm7, %v1813_v14 }
 0x824   : > { %v1817_v0 = vpop.permute.xlu1 %1816 }
 0x825   : > { %v1815_v51 = vpop.permute.xlu0 %1814 }
 0x826   : > { %2554 = vmatprep.mubr.msk.f32.mxu1 %vm520_vm7, %v1815_v51 }
 0x827   : > { %2555 = vmatmul.mubr.msk.f32.gmra.mrb[28].mxu1 %vm520_vm7, %v1817_v0 }
 0x828   : > { %v1821_v16 = vpop.permute.xlu1 %1820 }
 0x829   : > { %v1819_v7 = vpop.permute.xlu0 %1818 }
 0x82a   : > { %2557 = vmatprep.mubr.msk.f32.mxu1 %vm520_vm7, %v1819_v7 }
 0x82b   : > { %2558 = vmatmul.mubr.msk.f32.gmra.mrb[30].mxu1 %vm520_vm7, %v1821_v16 }
 0x82c   : > { %v1825_v17 = vpop.permute.xlu1 %1824 }
 0x82d   : > { %v1823_v18 = vpop.permute.xlu0 %1822 }
 0x82e   : > { %2560 = vmatprep.mubr.msk.f32.mxu1 %vm520_vm7, %v1823_v18 }
 0x82f   : > { %2561 = vmatmul.mubr.msk.f32.gmra.mrb[32].mxu1 %vm520_vm7, %v1825_v17 }
 0x830   : > { %v1829_v19 = vpop.permute.xlu1 %1828 }
 0x831   : > { %v1827_v20 = vpop.permute.xlu0 %1826 }
 0x832   : > { %2563 = vmatprep.mubr.msk.f32.mxu1 %vm520_vm7, %v1827_v20 }
 0x833   : > { %2564 = vmatmul.mubr.msk.f32.gmra.mrb[34].mxu1 %vm520_vm7, %v1829_v19 }
 0x834   : > { %v1833_v21 = vpop.permute.xlu1 %1832 }
 0x835   : > { %v1831_v59 = vpop.permute.xlu0 %1830 }
 0x836   : > { %2566 = vmatprep.mubr.msk.f32.mxu1 %vm520_vm7, %v1831_v59 }
 0x837   : > { %2567 = vmatmul.mubr.msk.f32.gmra.mrb[36].mxu1 %vm520_vm7, %v1833_v21 }
 0x838   : > { %v1837_v24 = vpop.permute.xlu1 %1836 }
 0x839   : > { %v1835_v22 = vpop.permute.xlu0 %1834 }
 0x83a   : > { %2569 = vmatprep.mubr.msk.f32.mxu1 %vm520_vm7, %v1835_v22 }
 0x83b   : > { %2570 = vmatmul.mubr.msk.f32.gmra.mrb[38].mxu1 %vm520_vm7, %v1837_v24 }
 0x8f2   : > { %v2550_v26 = vpop.f32.mrb[24].mxu1 }
 0x8f3   : > { %v1942_v1 = vadd.f32 %v2550_v26, %v2185_v25  ;;  %v1936_v27 = vpop.f32.mrb[25].mxu1 }
 0x8f4   : > { %v1937_v55 = vadd.f32 %v2185_v25, %v1936_v27 }
 0x8f5   : > { %2016 = vst.msk [vmem:[%s3502_s29 + $0x8] sm:$0xff] %vm508_vm0, %v1942_v1 }
 0x8f6   : > { %2015 = vst.msk [vmem:[%s3502_s29] sm:$0xff] %vm508_vm0, %v1937_v55  ;;  %v2553_v28 = vpop.f32.mrb[26].mxu1 }
 0x8f7   : > { %v1952_v5 = vadd.f32 %v2553_v28, %v2185_v25  ;;  %v1946_v29 = vpop.f32.mrb[27].mxu1 }
 0x8f8   : > { %v1947_v63 = vadd.f32 %v2185_v25, %v1946_v29 }
 0x8f9   : > { %2018 = vst.msk [vmem:[%s3502_s29 + $0x18] sm:$0xff] %vm508_vm0, %v1952_v5 }
 0x8fa   : > { %2017 = vst.msk [vmem:[%s3502_s29 + $0x10] sm:$0xff] %vm508_vm0, %v1947_v63  ;;  %v2556_v30 = vpop.f32.mrb[28].mxu1 }
 0x8fb   : > { %v1962_v31 = vadd.f32 %v2556_v30, %v2185_v25  ;;  %v1956_v32 = vpop.f32.mrb[29].mxu1 }
 0x8fc   : > { %v1957_v41 = vadd.f32 %v2185_v25, %v1956_v32 }
 0x8fd   : > { %2020 = vst.msk [vmem:[%s3502_s29 + $0x28] sm:$0xff] %vm508_vm0, %v1962_v31 }
 0x8fe   : > { %2019 = vst.msk [vmem:[%s3502_s29 + $0x20] sm:$0xff] %vm508_vm0, %v1957_v41  ;;  %v2559_v42 = vpop.f32.mrb[30].mxu1 }
 0x8ff   : > { %v1972_v45 = vadd.f32 %v2559_v42, %v2185_v25  ;;  %v1966_v46 = vpop.f32.mrb[31].mxu1 }
 0x900   : > { %v1967_v49 = vadd.f32 %v2185_v25, %v1966_v46 }
 0x901   : > { %2022 = vst.msk [vmem:[%s3502_s29 + $0x38] sm:$0xff] %vm508_vm0, %v1972_v45 }
 0x902   : > { %2021 = vst.msk [vmem:[%s3502_s29 + $0x30] sm:$0xff] %vm508_vm0, %v1967_v49  ;;  %v2562_v33 = vpop.f32.mrb[32].mxu1 }
 0x903   : > { %v1982_v34 = vadd.f32 %v2562_v33, %v2185_v25  ;;  %v1976_v38 = vpop.f32.mrb[33].mxu1 }
 0x904   : > { %v1977_v50 = vadd.f32 %v2185_v25, %v1976_v38 }
 0x905   : > { %2024 = vst.msk [vmem:[%s3502_s29 + $0x48] sm:$0xff] %vm508_vm0, %v1982_v34 }
 0x906   : > { %2023 = vst.msk [vmem:[%s3502_s29 + $0x40] sm:$0xff] %vm508_vm0, %v1977_v50  ;;  %v2565_v53 = vpop.f32.mrb[34].mxu1 }
 0x907   : > { %v1992_v39 = vadd.f32 %v2565_v53, %v2185_v25  ;;  %v1986_v40 = vpop.f32.mrb[35].mxu1 }
 0x908   : > { %v1987_v43 = vadd.f32 %v2185_v25, %v1986_v40 }
 0x909   : > { %2026 = vst.msk [vmem:[%s3502_s29 + $0x58] sm:$0xff] %vm508_vm0, %v1992_v39 }
 0x90a   : > { %2025 = vst.msk [vmem:[%s3502_s29 + $0x50] sm:$0xff] %vm508_vm0, %v1987_v43  ;;  %v2568_v54 = vpop.f32.mrb[36].mxu1 }
 0x90b   : > { %v2002_v36 = vadd.f32 %v2568_v54, %v2185_v25  ;;  %v1996_v47 = vpop.f32.mrb[37].mxu1 }
 0x90c   : > { %v1997_v57 = vadd.f32 %v2185_v25, %v1996_v47 }
 0x90d   : > { %2028 = vst.msk [vmem:[%s3502_s29 + $0x68] sm:$0xff] %vm508_vm0, %v2002_v36 }
 0x90e   : > { %2027 = vst.msk [vmem:[%s3502_s29 + $0x60] sm:$0xff] %vm508_vm0, %v1997_v57  ;;  %v2571_v58 = vpop.f32.mrb[38].mxu1 }
 0x90f   : > { %v2012_v48 = vadd.f32 %v2571_v58, %v2185_v25  ;;  %v2006_v52 = vpop.f32.mrb[39].mxu1 }
 0x910   : > { %v2007_v56 = vadd.f32 %v2185_v25, %v2006_v52 }
 0x911   : > { %2030 = vst.msk [vmem:[%s3502_s29 + $0x78] sm:$0xff] %vm508_vm0, %v2012_v48 }
 0x912   : > { %2029 = vst.msk [vmem:[%s3502_s29 + $0x70] sm:$0xff] %vm508_vm0, %v2007_v56 }
 0x913 PF: > { %s20_s13 = sadd.s32 1, %s2904_s13  }
 0x914   : > { %p17_p5 = scmp.ge.s32.totalorder %s20_s13, 4  }
 0x916   :  { %19 = sbr.rel (!%p17_p5) target bundleno = 1 (0x1), region = 93 }

</bundles_post_ra>
